<compile_context>
chip_gen: v7x
topology: tpu7x:2x2x1
jax: 0.10.0
libtpu: 0.0.40
codegen_flags: <defaults>
</compile_context>

<pallas_src>
import functools
import math
from math import prod

import jax
import jax.numpy as jnp
from jax.experimental import pallas as pl
from jax.experimental.pallas import tpu as pltpu

NEG_SLOPE = 0.01                     # nn.LeakyReLU default
MATMUL_IN_DTYPE = jnp.bfloat16       # MXU inputs (f32 accumulation). Flip to f32 if desired.
VMEM_LIMIT = 32 * 1024 * 1024        # safe scoped-VMEM ceiling on v5e/v6e/v7x


def _round_up(x, m):
    return (x + m - 1) // m * m


def _pad2d(x, rows, cols):
    r, c = x.shape
    if r == rows and c == cols:
        return x
    return jnp.pad(x, ((0, rows - r), (0, cols - c)))


# --------------------------------------------------------------------------------------
# Tiled matmul + bias (+ fused activation) kernel
# --------------------------------------------------------------------------------------
def _matmul_bias_kernel(a_ref, b_ref, bias_ref, o_ref, acc_ref, *, activation):
    @pl.when(pl.program_id(2) == 0)
    def _():
        acc_ref[...] = jnp.zeros_like(acc_ref)

    acc_ref[...] += jnp.dot(a_ref[...], b_ref[...], preferred_element_type=jnp.float32)

    @pl.when(pl.program_id(2) == pl.num_programs(2) - 1)
    def _():
        acc = acc_ref[...] + bias_ref[...]
        if activation == "leaky_relu":
            acc = jnp.where(acc >= 0, acc, NEG_SLOPE * acc)
        elif activation == "relu":
            acc = jnp.maximum(acc, 0.0)
        o_ref[...] = acc.astype(o_ref.dtype)


def matmul_bias(a, b, bias, activation=None):
    """a: (M, K) @ b: (K, N) + bias (1, N) -> (M, N) f32, with optional fused activation.

    Tiled and pipelined: grid (M/tm, N/tn, K/tk), VMEM accumulator, lane-dense (128-padded)
    N, bf16 MXU inputs with f32 accumulation.  Padding is sliced off before returning.
    """
    M, K = a.shape
    K2, N = b.shape
    assert K == K2 and bias.shape == (1, N)

    # --- tile selection (kept well under v7x's 32 MiB usable scoped VMEM w/ double buffers)
    if M <= 256:
        Mp = _round_up(M, 16)
        tm = Mp
    else:
        Mp = _round_up(M, 128)
        tm = 256 if Mp % 256 == 0 else 128
    if N <= 256:
        Np = _round_up(N, 128)          # lane-dense stores even for tiny N
        tn = Np
    else:
        Np = _round_up(N, 128)
        tn = 256 if Np % 256 == 0 else 128
    if K <= 2048:
        Kp = _round_up(K, 16)           # whole-K block per step; minimal im2col padding
        tk = Kp
    else:
        tk = 1024
        Kp = _round_up(K, tk)

    a_p = _pad2d(a.astype(MATMUL_IN_DTYPE), Mp, Kp)
    b_p = _pad2d(b.astype(MATMUL_IN_DTYPE), Kp, Np)
    bias_p = _pad2d(bias.astype(jnp.float32), 1, Np)

    grid = (Mp // tm, Np // tn, Kp // tk)
    out = pl.pallas_call(
        functools.partial(_matmul_bias_kernel, activation=activation),
        out_shape=jax.ShapeDtypeStruct((Mp, Np), jnp.float32),
        grid=grid,
        in_specs=[
            pl.BlockSpec((tm, tk), lambda i, j, k: (i, k)),
            pl.BlockSpec((tk, tn), lambda i, j, k: (k, j)),
            pl.BlockSpec((1, tn), lambda i, j, k: (0, j)),
        ],
        out_specs=pl.BlockSpec((tm, tn), lambda i, j, k: (i, j)),
        scratch_shapes=[pltpu.VMEM((tm, tn), jnp.float32)],
        compiler_params=pltpu.CompilerParams(
            dimension_semantics=("parallel", "parallel", "arbitrary"),
            vmem_limit_bytes=VMEM_LIMIT,
        ),
    )(a_p, b_p, bias_p)
    if Mp != M or Np != N:
        out = out[:M, :N]
    return out


# --------------------------------------------------------------------------------------
# Fused BatchNorm(eval) + residual + activation (row-tiled, lane-dense)
# --------------------------------------------------------------------------------------
def _bn_add_act_kernel(x_ref, r_ref, g_ref, b_ref, m_ref, v_ref, o_ref, *, eps, activation):
    x = x_ref[...]
    y = (x - m_ref[...]) * jax.lax.rsqrt(v_ref[...] + eps) * g_ref[...] + b_ref[...]
    y = y + r_ref[...]
    if activation == "relu":
        y = jnp.maximum(y, 0.0)
    else:  # leaky_relu
        y = jnp.where(y >= 0, y, NEG_SLOPE * y)
    o_ref[...] = y


def bn_add_act(x, res, bn, activation):
    """x, res: (B, H, W, C) NHWC.  BatchNorm2d (eval) + residual add + activation, fused.

    Re-lays the tensor out as (rows, lane) with lane = lcm(C, 128) so the lane axis is
    dense; per-channel params are tiled to the lane width and kept resident per grid step.
    """
    B, H, W, C = x.shape
    total = B * H * W * C
    lane = C * (128 // math.gcd(C, 128))        # lcm(C, 128)
    if lane > 4096:
        lane = C                                # fallback for awkward channel counts
    reps = lane // C
    rows = -(-total // lane)
    tail = rows * lane - total

    def flat(t):
        t = t.reshape(-1)
        if tail:
            t = jnp.pad(t, (0, tail))
        return t.reshape(rows, lane)

    xf, rf = flat(x), flat(res)
    g = jnp.tile(bn["gamma"], reps)[None]
    bta = jnp.tile(bn["beta"], reps)[None]
    mu = jnp.tile(bn["mean"], reps)[None]
    var = jnp.tile(bn["var"], reps)[None]

    if rows > 256:
        tr, rows_p = 256, _round_up(rows, 256)
    else:
        tr, rows_p = rows, rows
    if rows_p != rows:
        xf = jnp.pad(xf, ((0, rows_p - rows), (0, 0)))
        rf = jnp.pad(rf, ((0, rows_p - rows), (0, 0)))

    out = pl.pallas_call(
        functools.partial(_bn_add_act_kernel, eps=1e-5, activation=activation),
        out_shape=jax.ShapeDtypeStruct((rows_p, lane), jnp.float32),
        grid=(rows_p // tr,),
        in_specs=[pl.BlockSpec((tr, lane), lambda i: (i, 0))] * 2
        + [pl.BlockSpec((1, lane), lambda i: (0, 0))] * 4,
        out_specs=pl.BlockSpec((tr, lane), lambda i: (i, 0)),
        compiler_params=pltpu.CompilerParams(
            dimension_semantics=("parallel",), vmem_limit_bytes=VMEM_LIMIT),
    )(xf, rf, g, bta, mu, var)
    return out.reshape(-1)[:total].reshape(B, H, W, C)


# --------------------------------------------------------------------------------------
# Fused residual add + LayerNorm (row-tiled)
# --------------------------------------------------------------------------------------
def _add_ln_kernel(x_ref, r_ref, g_ref, b_ref, o_ref, *, eps):
    x = x_ref[...] + r_ref[...]
    mu = jnp.mean(x, axis=-1, keepdims=True)
    var = jnp.mean(jnp.square(x - mu), axis=-1, keepdims=True)
    o_ref[...] = (x - mu) * jax.lax.rsqrt(var + eps) * g_ref[...] + b_ref[...]


def add_layernorm(x, res, gamma, beta, eps=1e-5):
    """LayerNorm(x + res) over last dim; x, res: (B, L, E)."""
    B, L, E = x.shape
    R = B * L
    xr, rr = x.reshape(R, E), res.reshape(R, E)
    if R > 512:
        tr, Rp = 512, _round_up(R, 512)
    else:
        tr, Rp = R, R
    if Rp != R:
        xr = jnp.pad(xr, ((0, Rp - R), (0, 0)))
        rr = jnp.pad(rr, ((0, Rp - R), (0, 0)))
    out = pl.pallas_call(
        functools.partial(_add_ln_kernel, eps=eps),
        out_shape=jax.ShapeDtypeStruct((Rp, E), jnp.float32),
        grid=(Rp // tr,),
        in_specs=[pl.BlockSpec((tr, E), lambda i: (i, 0))] * 2
        + [pl.BlockSpec((1, E), lambda i: (0, 0))] * 2,
        out_specs=pl.BlockSpec((tr, E), lambda i: (i, 0)),
        compiler_params=pltpu.CompilerParams(
            dimension_semantics=("parallel",), vmem_limit_bytes=VMEM_LIMIT),
    )(xr, rr, gamma[None], beta[None])
    return out[:R].reshape(B, L, E)


# --------------------------------------------------------------------------------------
# Attention: all heads of one batch element per grid step, in-kernel causal mask
# --------------------------------------------------------------------------------------
def _attention_kernel(q_ref, k_ref, v_ref, o_ref, *, scale, causal):
    q = q_ref[0]                       # (H, Lq, Dh)
    k = k_ref[0]                       # (H, Lk, Dh)
    v = v_ref[0]
    s = jnp.einsum("hqd,hkd->hqk", q, k, preferred_element_type=jnp.float32) * scale
    if causal:
        Lq, Lk = s.shape[1], s.shape[2]
        row = jax.lax.broadcasted_iota(jnp.int32, (Lq, Lk), 0)
        col = jax.lax.broadcasted_iota(jnp.int32, (Lq, Lk), 1)
        s = jnp.where((col > row)[None], jnp.float32(-1e30), s)
    m = jnp.max(s, axis=-1, keepdims=True)
    p = jnp.exp(s - m)
    p = p * pl.reciprocal(jnp.sum(p, axis=-1, keepdims=True), approx=True)
    o_ref[0] = jnp.einsum("hqk,hkd->hqd", p, v, preferred_element_type=jnp.float32)


def fused_attention(q, k, v, causal):
    """q: (B, H, Lq, Dh); k, v: (B, H, Lk, Dh) -> (B, H, Lq, Dh)."""
    B, H, Lq, Dh = q.shape
    Lk = k.shape[2]
    scale = 1.0 / math.sqrt(Dh)
    return pl.pallas_call(
        functools.partial(_attention_kernel, scale=scale, causal=causal),
        out_shape=jax.ShapeDtypeStruct((B, H, Lq, Dh), jnp.float32),
        grid=(B,),
        in_specs=[
            pl.BlockSpec((1, H, Lq, Dh), lambda b: (b, 0, 0, 0)),
            pl.BlockSpec((1, H, Lk, Dh), lambda b: (b, 0, 0, 0)),
            pl.BlockSpec((1, H, Lk, Dh), lambda b: (b, 0, 0, 0)),
        ],
        out_specs=pl.BlockSpec((1, H, Lq, Dh), lambda b: (b, 0, 0, 0)),
        compiler_params=pltpu.CompilerParams(
            dimension_semantics=("parallel",), vmem_limit_bytes=VMEM_LIMIT),
    )(q, k, v)


# --------------------------------------------------------------------------------------
# Conv2d (NHWC) = patch extraction glue + Pallas tiled matmul
# --------------------------------------------------------------------------------------
def conv2d(x, w, b, stride=1, padding=0, activation=None):
    """x: (B, H, W, C) NHWC; w: (Cout, Cin, kh, kw) (PyTorch layout); b: (Cout,)."""
    B, H, W, C = x.shape
    Co, Ci, kh, kw = w.shape
    assert C == Ci
    if kh == 1 and kw == 1 and padding == 0:
        xs = x[:, ::stride, ::stride, :]
        Ho, Wo = xs.shape[1], xs.shape[2]
        a = xs.reshape(-1, C)
        wm = w.reshape(Co, Ci).T
    else:
        # feature ordering of patches is (Cin, kh, kw) -> matches w.reshape(Co, Ci*kh*kw)
        patches = jax.lax.conv_general_dilated_patches(
            x, (kh, kw), (stride, stride),
            padding=[(padding, padding), (padding, padding)],
            dimension_numbers=("NHWC", "HWIO", "NHWC"))
        Ho, Wo = patches.shape[1], patches.shape[2]
        a = patches.reshape(-1, Ci * kh * kw)
        wm = w.reshape(Co, Ci * kh * kw).T
    # TODO(synk): fully fusing patch extraction into the matmul kernel (manual DMA per
    # output-row tile) would remove the remaining im2col materialization in HBM.
    out = matmul_bias(a, wm, b.reshape(1, Co), activation=activation)
    return out.reshape(B, Ho, Wo, Co)


# --------------------------------------------------------------------------------------
# ConvEmbedding (NHWC throughout)
# --------------------------------------------------------------------------------------
def down_block_ext_fwd(x, p, r):
    res = conv2d(x, p["res"]["w"], p["res"]["b"], stride=r, padding=0)
    h = conv2d(x, p["c3"]["w"], p["c3"]["b"], stride=1, padding=1, activation="leaky_relu")
    h = conv2d(h, p["c5"]["w"], p["c5"]["b"], stride=1, padding=2)
    h = conv2d(h, p["c1"]["w"], p["c1"]["b"], stride=r, padding=0)
    return bn_add_act(h, res, p["bn"], activation="leaky_relu")


def down_block_int_fwd(x, p, r):
    res = conv2d(x, p["res"]["w"], p["res"]["b"], stride=r, padding=0)
    h = conv2d(x, p["c3"]["w"], p["c3"]["b"], stride=1, padding=1, activation="leaky_relu")
    h = conv2d(h, p["c5"]["w"], p["c5"]["b"], stride=r, padding=2)
    # relu_() followed by leaky_relu == relu
    return bn_add_act(h, res, p["bn"], activation="relu")


def conv_embedding_fwd(x_nchw, p, r_list, proj_filter_size):
    x = jnp.transpose(x_nchw, (0, 2, 3, 1))   # single NCHW -> NHWC transpose at the boundary
    nb = len(r_list)
    res = None
    for i in range(nb):
        e = down_block_ext_fwd(x, p["ext"][i], int(prod(r_list[i:])))
        res = e if i == 0 else jnp.concatenate([res, e], axis=-1)
        x = down_block_int_fwd(x, p["int"][i], r_list[i])
    res = jnp.concatenate([res, x], axis=-1)
    out = conv2d(res, p["conv_channel"]["w"], p["conv_channel"]["b"], stride=1, padding=0)
    f = proj_filter_size
    out = conv2d(out, p["proj"]["w"], p["proj"]["b"], stride=f // 4, padding=(f - 1) // 2)
    return out  # (B, h', w', c_o) NHWC


# --------------------------------------------------------------------------------------
# TransformerSeqGen (post-LN TransformerDecoder, batch_first, relu FF)
# --------------------------------------------------------------------------------------
def mha_fwd(query, key, value, p, num_heads, causal):
    """key is value for both self- and cross-attention in this model."""
    B, Lq, E = query.shape
    Lk = key.shape[1]
    assert E % num_heads == 0
    Dh = E // num_heads
    in_w, in_b = p["in_w"], p["in_b"]   # PyTorch stacked (3E, E) in_proj layout: [q; k; v]
    if query is key:                    # self-attention: fused QKV projection
        qkv = matmul_bias(query.reshape(-1, E), in_w.T, in_b[None])       # (B*Lq, 3E)
        qkv = qkv.reshape(B, Lq, 3, num_heads, Dh).transpose(2, 0, 3, 1, 4)
        q, k, v = qkv[0], qkv[1], qkv[2]                                  # (B, H, L, Dh)
    else:                               # cross-attention: q proj + fused KV projection
        q = matmul_bias(query.reshape(-1, E), in_w[:E].T, in_b[:E][None])
        q = q.reshape(B, Lq, num_heads, Dh).transpose(0, 2, 1, 3)
        kv = matmul_bias(key.reshape(-1, E), in_w[E:].T, in_b[E:][None])  # (B*Lk, 2E)
        kv = kv.reshape(B, Lk, 2, num_heads, Dh).transpose(2, 0, 3, 1, 4)
        k, v = kv[0], kv[1]
    o = fused_attention(q, k, v, causal=causal)                           # (B, H, Lq, Dh)
    o = o.transpose(0, 2, 1, 3).reshape(B * Lq, E)
    return matmul_bias(o, p["out_w"].T, p["out_b"][None]).reshape(B, Lq, E)


def decoder_layer_fwd(x, memory, p, num_heads):
    B, L, E = x.shape
    sa = mha_fwd(x, x, x, p["self_attn"], num_heads, causal=True)
    x = add_layernorm(x, sa, p["norm1"]["w"], p["norm1"]["b"])
    ca = mha_fwd(x, memory, memory, p["cross_attn"], num_heads, causal=False)
    x = add_layernorm(x, ca, p["norm2"]["w"], p["norm2"]["b"])
    h = matmul_bias(x.reshape(-1, E), p["linear1"]["w"].T, p["linear1"]["b"][None],
                    activation="relu")
    h = matmul_bias(h, p["linear2"]["w"].T, p["linear2"]["b"][None]).reshape(B, L, E)
    x = add_layernorm(x, h, p["norm3"]["w"], p["norm3"]["b"])
    return x


def seq_gen_fwd(memory, target_ids, p, num_heads):
    B, L = target_ids.shape
    E = p["token_emb"].shape[1]
    tok = jnp.take(p["token_emb"], target_ids, axis=0)
    pos = p["pos_emb"][:L]
    x = tok + pos[None]
    for lp in p["layers"]:
        x = decoder_layer_fwd(x, memory, lp, num_heads)
    logits = matmul_bias(x.reshape(-1, E), p["out_proj"]["w"].T, p["out_proj"]["b"][None])
    return logits.reshape(B, L, -1)


def conv_embedding_to_seq_fwd(image, target_ids, params, conv_cfg, seq_cfg):
    emb = conv_embedding_fwd(image, params["conv_embedding"],
                             conv_cfg["sampling_ratio_list"], conv_cfg["proj_filter_size"])
    B, Hp, Wp, Co = emb.shape
    # emb.reshape(b, c_o, -1) in PyTorch requires h'*w' == hidden_dim for cross-attention.
    assert Hp * Wp == seq_cfg["hidden_dim"], (Hp, Wp, seq_cfg["hidden_dim"])
    memory = jnp.transpose(emb, (0, 3, 1, 2)).reshape(B, Co, Hp * Wp)
    return seq_gen_fwd(memory, target_ids, params["seq_generator"], seq_cfg["num_heads"])


# --------------------------------------------------------------------------------------
# Deterministic parameter initialization (shapes follow the PyTorch __init__)
# --------------------------------------------------------------------------------------
def init_conv(key, c_out, c_in, kh, kw):
    k1, k2 = jax.random.split(key)
    fan = c_in * kh * kw
    return {"w": jax.random.normal(k1, (c_out, c_in, kh, kw), jnp.float32) / math.sqrt(fan),
            "b": jax.random.normal(k2, (c_out,), jnp.float32) * 0.01}


def init_bn(key, c):
    k1, k2, k3, k4 = jax.random.split(key, 4)
    return {"gamma": 1.0 + 0.1 * jax.random.normal(k1, (c,), jnp.float32),
            "beta": 0.1 * jax.random.normal(k2, (c,), jnp.float32),
            "mean": 0.1 * jax.random.normal(k3, (c,), jnp.float32),
            "var": 0.9 + 0.2 * jax.random.uniform(k4, (c,), jnp.float32)}


def init_linear(key, out_f, in_f):
    k1, k2 = jax.random.split(key)
    return {"w": jax.random.normal(k1, (out_f, in_f), jnp.float32) / math.sqrt(in_f),
            "b": jax.random.normal(k2, (out_f,), jnp.float32) * 0.01}


def init_mha(key, E):
    k1, k2, k3, k4 = jax.random.split(key, 4)
    return {"in_w": jax.random.normal(k1, (3 * E, E), jnp.float32) / math.sqrt(E),
            "in_b": jax.random.normal(k2, (3 * E,), jnp.float32) * 0.01,
            "out_w": jax.random.normal(k3, (E, E), jnp.float32) / math.sqrt(E),
            "out_b": jax.random.normal(k4, (E,), jnp.float32) * 0.01}


def init_params(key, conv_cfg, seq_cfg):
    keys = iter(jax.random.split(key, 256))
    r_list, c_list = conv_cfg["sampling_ratio_list"], conv_cfg["channels_list"]
    c_o, f, nb = conv_cfg["num_out_channels"], conv_cfg["proj_filter_size"], len(r_list)
    ext, internal = [], []
    for i in range(nb):
        c_i, c_n, c_last = c_list[i], c_list[i + 1], c_list[-1]
        ext.append({"res": init_conv(next(keys), c_last, c_i, 1, 1),
                    "c3": init_conv(next(keys), c_i, c_i, 3, 3),
                    "c5": init_conv(next(keys), c_i, c_i, 5, 5),
                    "c1": init_conv(next(keys), c_last, c_i, 1, 1),
                    "bn": init_bn(next(keys), c_last)})
        internal.append({"res": init_conv(next(keys), c_n, c_i, 1, 1),
                         "c3": init_conv(next(keys), c_n, c_i, 3, 3),
                         "c5": init_conv(next(keys), c_n, c_n, 5, 5),
                         "bn": init_bn(next(keys), c_n)})
    conv_emb = {"ext": ext, "int": internal,
                "conv_channel": init_conv(next(keys), c_o, c_list[-1] * (nb + 1), 1, 1),
                "proj": init_conv(next(keys), c_o, c_o, f, f)}

    E, V, ML = seq_cfg["hidden_dim"], seq_cfg["vocab_size"], seq_cfg["max_len"]
    layers = []
    for _ in range(seq_cfg["num_layers"]):
        layers.append({"self_attn": init_mha(next(keys), E),
                       "cross_attn": init_mha(next(keys), E),
                       "linear1": init_linear(next(keys), seq_cfg["dim_feedforward"], E),
                       "linear2": init_linear(next(keys), E, seq_cfg["dim_feedforward"]),
                       "norm1": {"w": jnp.ones((E,), jnp.float32), "b": jnp.zeros((E,), jnp.float32)},
                       "norm2": {"w": jnp.ones((E,), jnp.float32), "b": jnp.zeros((E,), jnp.float32)},
                       "norm3": {"w": jnp.ones((E,), jnp.float32), "b": jnp.zeros((E,), jnp.float32)}})
    seq_gen = {"token_emb": 0.5 * jax.random.normal(next(keys), (V, E), jnp.float32),
               "pos_emb": 0.5 * jax.random.normal(next(keys), (ML, E), jnp.float32),
               "layers": layers,
               "out_proj": init_linear(next(keys), V, E)}
    return {"conv_embedding": conv_emb, "seq_generator": seq_gen}


# --------------------------------------------------------------------------------------
if __name__ == "__main__":
    # Config chosen so the ConvEmbedding output spatial product (4*4=16) == hidden_dim,
    # matching emb.reshape(b, c_o, -1) feeding the transformer memory.
    conv_cfg = {"sampling_ratio_list": [2, 2], "channels_list": [4, 8, 8],
                "num_out_channels": 6, "proj_filter_size": 8, "dropout": 0.0}
    seq_cfg = {"hidden_dim": 16, "vocab_size": 40, "max_len": 32,
               "num_layers": 2, "num_heads": 4, "dim_feedforward": 32, "dropout": 0.0}

    key = jax.random.PRNGKey(0)
    k_params, k_img, k_seq = jax.random.split(key, 3)
    params = init_params(k_params, conv_cfg, seq_cfg)

    image = jax.random.normal(k_img, (2, 4, 32, 32), jnp.float32)             # NCHW
    target_ids = jax.random.randint(k_seq, (2, 8), 0, seq_cfg["vocab_size"])  # (b, l)

    fwd = jax.jit(functools.partial(conv_embedding_to_seq_fwd,
                                    conv_cfg=conv_cfg, seq_cfg=seq_cfg))
    logits = fwd(image, target_ids, params)
    jax.block_until_ready(logits)
    assert logits.shape == (2, 8, seq_cfg["vocab_size"]), logits.shape
    assert bool(jnp.all(jnp.isfinite(logits)))
    print("KERNEL_OK")
</pallas_src>

<mosaic_0001>
module attributes {stable_mosaic.version = 11 : i64} {
  func.func @_matmul_bias_kernel(%arg0: i32, %arg1: i32, %arg2: i32, %arg3: memref<256x48xbf16, #tpu.memory_space<vmem>>, %arg4: memref<48x128xbf16, #tpu.memory_space<vmem>>, %arg5: memref<1x128xf32, #tpu.memory_space<vmem>>, %arg6: memref<256x128xf32, #tpu.memory_space<vmem>>, %arg7: memref<256x128xf32, #tpu.memory_space<vmem>>) attributes {dimension_semantics = [#tpu.dimension_semantics<parallel>, #tpu.dimension_semantics<parallel>, #tpu.dimension_semantics<arbitrary>], iteration_bounds = array<i64: 8, 1, 1>, scalar_prefetch = 0 : i64, scratch_operands = 1 : i64, tpu.core_type = #tpu.core_type<tc>, window_params = [{transform_indices = @transform_0, window_bounds = array<i64: 256, 48>}, {transform_indices = @transform_1, window_bounds = array<i64: 48, 128>}, {transform_indices = @transform_2, window_bounds = array<i64: 1, 128>}, {transform_indices = @transform_3, window_bounds = array<i64: 256, 128>}]} {
    %c0_i32 = arith.constant 0 : i32
    %0 = arith.cmpi eq, %arg2, %c0_i32 : i32
    %1 = arith.extui %0 : i1 to i32
    %c0_i32_0 = arith.constant 0 : i32
    %2 = arith.cmpi ne, %1, %c0_i32_0 : i32
    scf.if %2 {
      %cst_10 = arith.constant 0.000000e+00 : f32
      %12 = vector.broadcast %cst_10 : f32 to vector<256x128xf32>
      %c0_11 = arith.constant 0 : index
      %c0_12 = arith.constant 0 : index
      %13 = vector.load %arg7[%c0_11, %c0_12] : memref<256x128xf32, #tpu.memory_space<vmem>>, vector<256x128xf32>
      tpu.vector_store %arg7[%c0_11, %c0_12], %12 {strides = array<i32>} : memref<256x128xf32, #tpu.memory_space<vmem>>, vector<256x128xf32>,
    } else {
    }
    %c0 = arith.constant 0 : index
    %c0_1 = arith.constant 0 : index
    %3 = vector.load %arg7[%c0, %c0_1] : memref<256x128xf32, #tpu.memory_space<vmem>>, vector<256x128xf32>
    %c0_2 = arith.constant 0 : index
    %c0_3 = arith.constant 0 : index
    %4 = vector.load %arg3[%c0_2, %c0_3] : memref<256x48xbf16, #tpu.memory_space<vmem>>, vector<256x48xbf16>
    %c0_4 = arith.constant 0 : index
    %c0_5 = arith.constant 0 : index
    %5 = vector.load %arg4[%c0_4, %c0_5] : memref<48x128xbf16, #tpu.memory_space<vmem>>, vector<48x128xbf16>
    %cst = arith.constant dense<0.000000e+00> : vector<256x128xf32>
    %6 = tpu.matmul %4, %5, %cst {dimension_numbers = #tpu.dot_dimension_numbers<[1], [0], [0], [1], [0, 0, 1, 1], [], []>} : vector<256x48xbf16>, vector<48x128xbf16>, vector<256x128xf32> -> vector<256x128xf32>
    %7 = arith.addf %3, %6 : vector<256x128xf32>
    %c0_6 = arith.constant 0 : index
    %c0_7 = arith.constant 0 : index
    %8 = vector.load %arg7[%c0_6, %c0_7] : memref<256x128xf32, #tpu.memory_space<vmem>>, vector<256x128xf32>
    tpu.vector_store %arg7[%c0_6, %c0_7], %7 {strides = array<i32>} : memref<256x128xf32, #tpu.memory_space<vmem>>, vector<256x128xf32>,
    %c0_i32_8 = arith.constant 0 : i32
    %9 = arith.cmpi eq, %arg2, %c0_i32_8 : i32
    %10 = arith.extui %9 : i1 to i32
    %c0_i32_9 = arith.constant 0 : i32
    %11 = arith.cmpi ne, %10, %c0_i32_9 : i32
    scf.if %11 {
      %c0_10 = arith.constant 0 : index
      %c0_11 = arith.constant 0 : index
      %12 = vector.load %arg7[%c0_10, %c0_11] : memref<256x128xf32, #tpu.memory_space<vmem>>, vector<256x128xf32>
      %c0_12 = arith.constant 0 : index
      %c0_13 = arith.constant 0 : index
      %13 = vector.load %arg5[%c0_12, %c0_13] : memref<1x128xf32, #tpu.memory_space<vmem>>, vector<1x128xf32>
      %14 = vector.broadcast %13 : vector<1x128xf32> to vector<256x128xf32>
      %15 = arith.addf %12, %14 : vector<256x128xf32>
      %cst_14 = arith.constant 0.000000e+00 : f32
      %16 = vector.broadcast %cst_14 : f32 to vector<256x128xf32>
      %17 = arith.cmpf oge, %15, %16 : vector<256x128xf32>
      %cst_15 = arith.constant 0.00999999977 : f32
      %18 = vector.broadcast %cst_15 : f32 to vector<256x128xf32>
      %19 = arith.mulf %18, %15 : vector<256x128xf32>
      %20 = arith.select %17, %15, %19 : vector<256x128xi1>, vector<256x128xf32>
      %c0_16 = arith.constant 0 : index
      %c0_17 = arith.constant 0 : index
      %21 = vector.load %arg6[%c0_16, %c0_17] : memref<256x128xf32, #tpu.memory_space<vmem>>, vector<256x128xf32>
      tpu.vector_store %arg6[%c0_16, %c0_17], %20 {strides = array<i32>} : memref<256x128xf32, #tpu.memory_space<vmem>>, vector<256x128xf32>,
    } else {
    }
    return
  }
  func.func @transform_0(%arg0: i32, %arg1: i32, %arg2: i32) -> (i32, i32) {
    %c0_i32 = arith.constant 0 : i32
    return %arg0, %arg2 : i32, i32
  }
  func.func @transform_1(%arg0: i32, %arg1: i32, %arg2: i32) -> (i32, i32) {
    %c0_i32 = arith.constant 0 : i32
    return %arg2, %arg1 : i32, i32
  }
  func.func @transform_2(%arg0: i32, %arg1: i32, %arg2: i32) -> (i32, i32) {
    %c0_i32 = arith.constant 0 : i32
    %c0_i32_0 = arith.constant 0 : i32
    return %c0_i32, %arg1 : i32, i32
  }
  func.func @transform_3(%arg0: i32, %arg1: i32, %arg2: i32) -> (i32, i32) {
    %c0_i32 = arith.constant 0 : i32
    return %arg0, %arg1 : i32, i32
  }
}

module attributes {stable_mosaic.version = 11 : i64} {
  func.func @_matmul_bias_kernel(%arg0: i32, %arg1: i32, %arg2: i32, %arg3: memref<256x208xbf16, #tpu.memory_space<vmem>>, %arg4: memref<208x128xbf16, #tpu.memory_space<vmem>>, %arg5: memref<1x128xf32, #tpu.memory_space<vmem>>, %arg6: memref<256x128xf32, #tpu.memory_space<vmem>>, %arg7: memref<256x128xf32, #tpu.memory_space<vmem>>) attributes {dimension_semantics = [#tpu.dimension_semantics<parallel>, #tpu.dimension_semantics<parallel>, #tpu.dimension_semantics<arbitrary>], iteration_bounds = array<i64: 2, 1, 1>, scalar_prefetch = 0 : i64, scratch_operands = 1 : i64, tpu.core_type = #tpu.core_type<tc>, window_params = [{transform_indices = @transform_0, window_bounds = array<i64: 256, 208>}, {transform_indices = @transform_1, window_bounds = array<i64: 208, 128>}, {transform_indices = @transform_2, window_bounds = array<i64: 1, 128>}, {transform_indices = @transform_3, window_bounds = array<i64: 256, 128>}]} {
    %c0_i32 = arith.constant 0 : i32
    %0 = arith.cmpi eq, %arg2, %c0_i32 : i32
    %1 = arith.extui %0 : i1 to i32
    %c0_i32_0 = arith.constant 0 : i32
    %2 = arith.cmpi ne, %1, %c0_i32_0 : i32
    scf.if %2 {
      %cst_10 = arith.constant 0.000000e+00 : f32
      %12 = vector.broadcast %cst_10 : f32 to vector<256x128xf32>
      %c0_11 = arith.constant 0 : index
      %c0_12 = arith.constant 0 : index
      %13 = vector.load %arg7[%c0_11, %c0_12] : memref<256x128xf32, #tpu.memory_space<vmem>>, vector<256x128xf32>
      tpu.vector_store %arg7[%c0_11, %c0_12], %12 {strides = array<i32>} : memref<256x128xf32, #tpu.memory_space<vmem>>, vector<256x128xf32>,
    } else {
    }
    %c0 = arith.constant 0 : index
    %c0_1 = arith.constant 0 : index
    %3 = vector.load %arg7[%c0, %c0_1] : memref<256x128xf32, #tpu.memory_space<vmem>>, vector<256x128xf32>
    %c0_2 = arith.constant 0 : index
    %c0_3 = arith.constant 0 : index
    %4 = vector.load %arg3[%c0_2, %c0_3] : memref<256x208xbf16, #tpu.memory_space<vmem>>, vector<256x208xbf16>
    %c0_4 = arith.constant 0 : index
    %c0_5 = arith.constant 0 : index
    %5 = vector.load %arg4[%c0_4, %c0_5] : memref<208x128xbf16, #tpu.memory_space<vmem>>, vector<208x128xbf16>
    %cst = arith.constant dense<0.000000e+00> : vector<256x128xf32>
    %6 = tpu.matmul %4, %5, %cst {dimension_numbers = #tpu.dot_dimension_numbers<[1], [0], [0], [1], [0, 0, 1, 1], [], []>} : vector<256x208xbf16>, vector<208x128xbf16>, vector<256x128xf32> -> vector<256x128xf32>
    %7 = arith.addf %3, %6 : vector<256x128xf32>
    %c0_6 = arith.constant 0 : index
    %c0_7 = arith.constant 0 : index
    %8 = vector.load %arg7[%c0_6, %c0_7] : memref<256x128xf32, #tpu.memory_space<vmem>>, vector<256x128xf32>
    tpu.vector_store %arg7[%c0_6, %c0_7], %7 {strides = array<i32>} : memref<256x128xf32, #tpu.memory_space<vmem>>, vector<256x128xf32>,
    %c0_i32_8 = arith.constant 0 : i32
    %9 = arith.cmpi eq, %arg2, %c0_i32_8 : i32
    %10 = arith.extui %9 : i1 to i32
    %c0_i32_9 = arith.constant 0 : i32
    %11 = arith.cmpi ne, %10, %c0_i32_9 : i32
    scf.if %11 {
      %c0_10 = arith.constant 0 : index
      %c0_11 = arith.constant 0 : index
      %12 = vector.load %arg7[%c0_10, %c0_11] : memref<256x128xf32, #tpu.memory_space<vmem>>, vector<256x128xf32>
      %c0_12 = arith.constant 0 : index
      %c0_13 = arith.constant 0 : index
      %13 = vector.load %arg5[%c0_12, %c0_13] : memref<1x128xf32, #tpu.memory_space<vmem>>, vector<1x128xf32>
      %14 = vector.broadcast %13 : vector<1x128xf32> to vector<256x128xf32>
      %15 = arith.addf %12, %14 : vector<256x128xf32>
      %c0_14 = arith.constant 0 : index
      %c0_15 = arith.constant 0 : index
      %16 = vector.load %arg6[%c0_14, %c0_15] : memref<256x128xf32, #tpu.memory_space<vmem>>, vector<256x128xf32>
      tpu.vector_store %arg6[%c0_14, %c0_15], %15 {strides = array<i32>} : memref<256x128xf32, #tpu.memory_space<vmem>>, vector<256x128xf32>,
    } else {
    }
    return
  }
  func.func @transform_0(%arg0: i32, %arg1: i32, %arg2: i32) -> (i32, i32) {
    %c0_i32 = arith.constant 0 : i32
    return %arg0, %arg2 : i32, i32
  }
  func.func @transform_1(%arg0: i32, %arg1: i32, %arg2: i32) -> (i32, i32) {
    %c0_i32 = arith.constant 0 : i32
    return %arg2, %arg1 : i32, i32
  }
  func.func @transform_2(%arg0: i32, %arg1: i32, %arg2: i32) -> (i32, i32) {
    %c0_i32 = arith.constant 0 : i32
    %c0_i32_0 = arith.constant 0 : i32
    return %c0_i32, %arg1 : i32, i32
  }
  func.func @transform_3(%arg0: i32, %arg1: i32, %arg2: i32) -> (i32, i32) {
    %c0_i32 = arith.constant 0 : i32
    return %arg0, %arg1 : i32, i32
  }
}

module attributes {stable_mosaic.version = 11 : i64} {
  func.func @_matmul_bias_kernel(%arg0: i32, %arg1: i32, %arg2: i32, %arg3: memref<256x16xbf16, #tpu.memory_space<vmem>>, %arg4: memref<16x128xbf16, #tpu.memory_space<vmem>>, %arg5: memref<1x128xf32, #tpu.memory_space<vmem>>, %arg6: memref<256x128xf32, #tpu.memory_space<vmem>>, %arg7: memref<256x128xf32, #tpu.memory_space<vmem>>) attributes {dimension_semantics = [#tpu.dimension_semantics<parallel>, #tpu.dimension_semantics<parallel>, #tpu.dimension_semantics<arbitrary>], iteration_bounds = array<i64: 2, 1, 1>, scalar_prefetch = 0 : i64, scratch_operands = 1 : i64, tpu.core_type = #tpu.core_type<tc>, window_params = [{transform_indices = @transform_0, window_bounds = array<i64: 256, 16>}, {transform_indices = @transform_1, window_bounds = array<i64: 16, 128>}, {transform_indices = @transform_2, window_bounds = array<i64: 1, 128>}, {transform_indices = @transform_3, window_bounds = array<i64: 256, 128>}]} {
    %c0_i32 = arith.constant 0 : i32
    %0 = arith.cmpi eq, %arg2, %c0_i32 : i32
    %1 = arith.extui %0 : i1 to i32
    %c0_i32_0 = arith.constant 0 : i32
    %2 = arith.cmpi ne, %1, %c0_i32_0 : i32
    scf.if %2 {
      %cst_10 = arith.constant 0.000000e+00 : f32
      %12 = vector.broadcast %cst_10 : f32 to vector<256x128xf32>
      %c0_11 = arith.constant 0 : index
      %c0_12 = arith.constant 0 : index
      %13 = vector.load %arg7[%c0_11, %c0_12] : memref<256x128xf32, #tpu.memory_space<vmem>>, vector<256x128xf32>
      tpu.vector_store %arg7[%c0_11, %c0_12], %12 {strides = array<i32>} : memref<256x128xf32, #tpu.memory_space<vmem>>, vector<256x128xf32>,
    } else {
    }
    %c0 = arith.constant 0 : index
    %c0_1 = arith.constant 0 : index
    %3 = vector.load %arg7[%c0, %c0_1] : memref<256x128xf32, #tpu.memory_space<vmem>>, vector<256x128xf32>
    %c0_2 = arith.constant 0 : index
    %c0_3 = arith.constant 0 : index
    %4 = vector.load %arg3[%c0_2, %c0_3] : memref<256x16xbf16, #tpu.memory_space<vmem>>, vector<256x16xbf16>
    %c0_4 = arith.constant 0 : index
    %c0_5 = arith.constant 0 : index
    %5 = vector.load %arg4[%c0_4, %c0_5] : memref<16x128xbf16, #tpu.memory_space<vmem>>, vector<16x128xbf16>
    %cst = arith.constant dense<0.000000e+00> : vector<256x128xf32>
    %6 = tpu.matmul %4, %5, %cst {dimension_numbers = #tpu.dot_dimension_numbers<[1], [0], [0], [1], [0, 0, 1, 1], [], []>} : vector<256x16xbf16>, vector<16x128xbf16>, vector<256x128xf32> -> vector<256x128xf32>
    %7 = arith.addf %3, %6 : vector<256x128xf32>
    %c0_6 = arith.constant 0 : index
    %c0_7 = arith.constant 0 : index
    %8 = vector.load %arg7[%c0_6, %c0_7] : memref<256x128xf32, #tpu.memory_space<vmem>>, vector<256x128xf32>
    tpu.vector_store %arg7[%c0_6, %c0_7], %7 {strides = array<i32>} : memref<256x128xf32, #tpu.memory_space<vmem>>, vector<256x128xf32>,
    %c0_i32_8 = arith.constant 0 : i32
    %9 = arith.cmpi eq, %arg2, %c0_i32_8 : i32
    %10 = arith.extui %9 : i1 to i32
    %c0_i32_9 = arith.constant 0 : i32
    %11 = arith.cmpi ne, %10, %c0_i32_9 : i32
    scf.if %11 {
      %c0_10 = arith.constant 0 : index
      %c0_11 = arith.constant 0 : index
      %12 = vector.load %arg7[%c0_10, %c0_11] : memref<256x128xf32, #tpu.memory_space<vmem>>, vector<256x128xf32>
      %c0_12 = arith.constant 0 : index
      %c0_13 = arith.constant 0 : index
      %13 = vector.load %arg5[%c0_12, %c0_13] : memref<1x128xf32, #tpu.memory_space<vmem>>, vector<1x128xf32>
      %14 = vector.broadcast %13 : vector<1x128xf32> to vector<256x128xf32>
      %15 = arith.addf %12, %14 : vector<256x128xf32>
      %c0_14 = arith.constant 0 : index
      %c0_15 = arith.constant 0 : index
      %16 = vector.load %arg6[%c0_14, %c0_15] : memref<256x128xf32, #tpu.memory_space<vmem>>, vector<256x128xf32>
      tpu.vector_store %arg6[%c0_14, %c0_15], %15 {strides = array<i32>} : memref<256x128xf32, #tpu.memory_space<vmem>>, vector<256x128xf32>,
    } else {
    }
    return
  }
  func.func @transform_0(%arg0: i32, %arg1: i32, %arg2: i32) -> (i32, i32) {
    %c0_i32 = arith.constant 0 : i32
    return %arg0, %arg2 : i32, i32
  }
  func.func @transform_1(%arg0: i32, %arg1: i32, %arg2: i32) -> (i32, i32) {
    %c0_i32 = arith.constant 0 : i32
    return %arg2, %arg1 : i32, i32
  }
  func.func @transform_2(%arg0: i32, %arg1: i32, %arg2: i32) -> (i32, i32) {
    %c0_i32 = arith.constant 0 : i32
    %c0_i32_0 = arith.constant 0 : i32
    return %c0_i32, %arg1 : i32, i32
  }
  func.func @transform_3(%arg0: i32, %arg1: i32, %arg2: i32) -> (i32, i32) {
    %c0_i32 = arith.constant 0 : i32
    return %arg0, %arg1 : i32, i32
  }
}

module attributes {stable_mosaic.version = 11 : i64} {
  func.func @_bn_add_act_kernel(%arg0: i32, %arg1: memref<32x128xf32, #tpu.memory_space<vmem>>, %arg2: memref<32x128xf32, #tpu.memory_space<vmem>>, %arg3: memref<1x128xf32, #tpu.memory_space<vmem>>, %arg4: memref<1x128xf32, #tpu.memory_space<vmem>>, %arg5: memref<1x128xf32, #tpu.memory_space<vmem>>, %arg6: memref<1x128xf32, #tpu.memory_space<vmem>>, %arg7: memref<32x128xf32, #tpu.memory_space<vmem>>) attributes {dimension_semantics = [#tpu.dimension_semantics<parallel>], iteration_bounds = array<i64: 1>, scalar_prefetch = 0 : i64, scratch_operands = 0 : i64, tpu.core_type = #tpu.core_type<tc>, window_params = [{transform_indices = @transform_0, window_bounds = array<i64: 32, 128>}, {transform_indices = @transform_1, window_bounds = array<i64: 32, 128>}, {pipeline_mode = #tpu.pipeline_mode<synchronous>, transform_indices = @transform_2, window_bounds = array<i64: 1, 128>}, {pipeline_mode = #tpu.pipeline_mode<synchronous>, transform_indices = @transform_3, window_bounds = array<i64: 1, 128>}, {pipeline_mode = #tpu.pipeline_mode<synchronous>, transform_indices = @transform_4, window_bounds = array<i64: 1, 128>}, {pipeline_mode = #tpu.pipeline_mode<synchronous>, transform_indices = @transform_5, window_bounds = array<i64: 1, 128>}, {transform_indices = @transform_6, window_bounds = array<i64: 32, 128>}]} {
    %c0 = arith.constant 0 : index
    %c0_0 = arith.constant 0 : index
    %0 = vector.load %arg1[%c0, %c0_0] : memref<32x128xf32, #tpu.memory_space<vmem>>, vector<32x128xf32>
    %c0_1 = arith.constant 0 : index
    %c0_2 = arith.constant 0 : index
    %1 = vector.load %arg5[%c0_1, %c0_2] : memref<1x128xf32, #tpu.memory_space<vmem>>, vector<1x128xf32>
    %2 = vector.broadcast %1 : vector<1x128xf32> to vector<32x128xf32>
    %3 = arith.subf %0, %2 : vector<32x128xf32>
    %c0_3 = arith.constant 0 : index
    %c0_4 = arith.constant 0 : index
    %4 = vector.load %arg6[%c0_3, %c0_4] : memref<1x128xf32, #tpu.memory_space<vmem>>, vector<1x128xf32>
    %cst = arith.constant 9.99999974E-6 : f32
    %5 = vector.broadcast %cst : f32 to vector<1x128xf32>
    %6 = arith.addf %4, %5 : vector<1x128xf32>
    %7 = math.rsqrt %6 : vector<1x128xf32>
    %8 = vector.broadcast %7 : vector<1x128xf32> to vector<32x128xf32>
    %9 = arith.mulf %3, %8 : vector<32x128xf32>
    %c0_5 = arith.constant 0 : index
    %c0_6 = arith.constant 0 : index
    %10 = vector.load %arg3[%c0_5, %c0_6] : memref<1x128xf32, #tpu.memory_space<vmem>>, vector<1x128xf32>
    %11 = vector.broadcast %10 : vector<1x128xf32> to vector<32x128xf32>
    %12 = arith.mulf %9, %11 : vector<32x128xf32>
    %c0_7 = arith.constant 0 : index
    %c0_8 = arith.constant 0 : index
    %13 = vector.load %arg4[%c0_7, %c0_8] : memref<1x128xf32, #tpu.memory_space<vmem>>, vector<1x128xf32>
    %14 = vector.broadcast %13 : vector<1x128xf32> to vector<32x128xf32>
    %15 = arith.addf %12, %14 : vector<32x128xf32>
    %c0_9 = arith.constant 0 : index
    %c0_10 = arith.constant 0 : index
    %16 = vector.load %arg2[%c0_9, %c0_10] : memref<32x128xf32, #tpu.memory_space<vmem>>, vector<32x128xf32>
    %17 = arith.addf %15, %16 : vector<32x128xf32>
    %cst_11 = arith.constant 0.000000e+00 : f32
    %18 = vector.broadcast %cst_11 : f32 to vector<32x128xf32>
    %19 = arith.maximumf %17, %18 : vector<32x128xf32>
    %c0_12 = arith.constant 0 : index
    %c0_13 = arith.constant 0 : index
    %20 = vector.load %arg7[%c0_12, %c0_13] : memref<32x128xf32, #tpu.memory_space<vmem>>, vector<32x128xf32>
    tpu.vector_store %arg7[%c0_12, %c0_13], %19 {strides = array<i32>} : memref<32x128xf32, #tpu.memory_space<vmem>>, vector<32x128xf32>,
    return
  }
  func.func @transform_0(%arg0: i32) -> (i32, i32) {
    %c0_i32 = arith.constant 0 : i32
    %c0_i32_0 = arith.constant 0 : i32
    return %arg0, %c0_i32 : i32, i32
  }
  func.func @transform_1(%arg0: i32) -> (i32, i32) {
    %c0_i32 = arith.constant 0 : i32
    %c0_i32_0 = arith.constant 0 : i32
    return %arg0, %c0_i32 : i32, i32
  }
  func.func @transform_2(%arg0: i32) -> (i32, i32) {
    %c0_i32 = arith.constant 0 : i32
    %c0_i32_0 = arith.constant 0 : i32
    %c0_i32_1 = arith.constant 0 : i32
    return %c0_i32, %c0_i32_0 : i32, i32
  }
  func.func @transform_3(%arg0: i32) -> (i32, i32) {
    %c0_i32 = arith.constant 0 : i32
    %c0_i32_0 = arith.constant 0 : i32
    %c0_i32_1 = arith.constant 0 : i32
    return %c0_i32, %c0_i32_0 : i32, i32
  }
  func.func @transform_4(%arg0: i32) -> (i32, i32) {
    %c0_i32 = arith.constant 0 : i32
    %c0_i32_0 = arith.constant 0 : i32
    %c0_i32_1 = arith.constant 0 : i32
    return %c0_i32, %c0_i32_0 : i32, i32
  }
  func.func @transform_5(%arg0: i32) -> (i32, i32) {
    %c0_i32 = arith.constant 0 : i32
    %c0_i32_0 = arith.constant 0 : i32
    %c0_i32_1 = arith.constant 0 : i32
    return %c0_i32, %c0_i32_0 : i32, i32
  }
  func.func @transform_6(%arg0: i32) -> (i32, i32) {
    %c0_i32 = arith.constant 0 : i32
    %c0_i32_0 = arith.constant 0 : i32
    return %arg0, %c0_i32 : i32, i32
  }
}

module attributes {stable_mosaic.version = 11 : i64} {
  func.func @_matmul_bias_kernel(%arg0: i32, %arg1: i32, %arg2: i32, %arg3: memref<256x80xbf16, #tpu.memory_space<vmem>>, %arg4: memref<80x128xbf16, #tpu.memory_space<vmem>>, %arg5: memref<1x128xf32, #tpu.memory_space<vmem>>, %arg6: memref<256x128xf32, #tpu.memory_space<vmem>>, %arg7: memref<256x128xf32, #tpu.memory_space<vmem>>) attributes {dimension_semantics = [#tpu.dimension_semantics<parallel>, #tpu.dimension_semantics<parallel>, #tpu.dimension_semantics<arbitrary>], iteration_bounds = array<i64: 2, 1, 1>, scalar_prefetch = 0 : i64, scratch_operands = 1 : i64, tpu.core_type = #tpu.core_type<tc>, window_params = [{transform_indices = @transform_0, window_bounds = array<i64: 256, 80>}, {transform_indices = @transform_1, window_bounds = array<i64: 80, 128>}, {transform_indices = @transform_2, window_bounds = array<i64: 1, 128>}, {transform_indices = @transform_3, window_bounds = array<i64: 256, 128>}]} {
    %c0_i32 = arith.constant 0 : i32
    %0 = arith.cmpi eq, %arg2, %c0_i32 : i32
    %1 = arith.extui %0 : i1 to i32
    %c0_i32_0 = arith.constant 0 : i32
    %2 = arith.cmpi ne, %1, %c0_i32_0 : i32
    scf.if %2 {
      %cst_10 = arith.constant 0.000000e+00 : f32
      %12 = vector.broadcast %cst_10 : f32 to vector<256x128xf32>
      %c0_11 = arith.constant 0 : index
      %c0_12 = arith.constant 0 : index
      %13 = vector.load %arg7[%c0_11, %c0_12] : memref<256x128xf32, #tpu.memory_space<vmem>>, vector<256x128xf32>
      tpu.vector_store %arg7[%c0_11, %c0_12], %12 {strides = array<i32>} : memref<256x128xf32, #tpu.memory_space<vmem>>, vector<256x128xf32>,
    } else {
    }
    %c0 = arith.constant 0 : index
    %c0_1 = arith.constant 0 : index
    %3 = vector.load %arg7[%c0, %c0_1] : memref<256x128xf32, #tpu.memory_space<vmem>>, vector<256x128xf32>
    %c0_2 = arith.constant 0 : index
    %c0_3 = arith.constant 0 : index
    %4 = vector.load %arg3[%c0_2, %c0_3] : memref<256x80xbf16, #tpu.memory_space<vmem>>, vector<256x80xbf16>
    %c0_4 = arith.constant 0 : index
    %c0_5 = arith.constant 0 : index
    %5 = vector.load %arg4[%c0_4, %c0_5] : memref<80x128xbf16, #tpu.memory_space<vmem>>, vector<80x128xbf16>
    %cst = arith.constant dense<0.000000e+00> : vector<256x128xf32>
    %6 = tpu.matmul %4, %5, %cst {dimension_numbers = #tpu.dot_dimension_numbers<[1], [0], [0], [1], [0, 0, 1, 1], [], []>} : vector<256x80xbf16>, vector<80x128xbf16>, vector<256x128xf32> -> vector<256x128xf32>
    %7 = arith.addf %3, %6 : vector<256x128xf32>
    %c0_6 = arith.constant 0 : index
    %c0_7 = arith.constant 0 : index
    %8 = vector.load %arg7[%c0_6, %c0_7] : memref<256x128xf32, #tpu.memory_space<vmem>>, vector<256x128xf32>
    tpu.vector_store %arg7[%c0_6, %c0_7], %7 {strides = array<i32>} : memref<256x128xf32, #tpu.memory_space<vmem>>, vector<256x128xf32>,
    %c0_i32_8 = arith.constant 0 : i32
    %9 = arith.cmpi eq, %arg2, %c0_i32_8 : i32
    %10 = arith.extui %9 : i1 to i32
    %c0_i32_9 = arith.constant 0 : i32
    %11 = arith.cmpi ne, %10, %c0_i32_9 : i32
    scf.if %11 {
      %c0_10 = arith.constant 0 : index
      %c0_11 = arith.constant 0 : index
      %12 = vector.load %arg7[%c0_10, %c0_11] : memref<256x128xf32, #tpu.memory_space<vmem>>, vector<256x128xf32>
      %c0_12 = arith.constant 0 : index
      %c0_13 = arith.constant 0 : index
      %13 = vector.load %arg5[%c0_12, %c0_13] : memref<1x128xf32, #tpu.memory_space<vmem>>, vector<1x128xf32>
      %14 = vector.broadcast %13 : vector<1x128xf32> to vector<256x128xf32>
      %15 = arith.addf %12, %14 : vector<256x128xf32>
      %cst_14 = arith.constant 0.000000e+00 : f32
      %16 = vector.broadcast %cst_14 : f32 to vector<256x128xf32>
      %17 = arith.cmpf oge, %15, %16 : vector<256x128xf32>
      %cst_15 = arith.constant 0.00999999977 : f32
      %18 = vector.broadcast %cst_15 : f32 to vector<256x128xf32>
      %19 = arith.mulf %18, %15 : vector<256x128xf32>
      %20 = arith.select %17, %15, %19 : vector<256x128xi1>, vector<256x128xf32>
      %c0_16 = arith.constant 0 : index
      %c0_17 = arith.constant 0 : index
      %21 = vector.load %arg6[%c0_16, %c0_17] : memref<256x128xf32, #tpu.memory_space<vmem>>, vector<256x128xf32>
      tpu.vector_store %arg6[%c0_16, %c0_17], %20 {strides = array<i32>} : memref<256x128xf32, #tpu.memory_space<vmem>>, vector<256x128xf32>,
    } else {
    }
    return
  }
  func.func @transform_0(%arg0: i32, %arg1: i32, %arg2: i32) -> (i32, i32) {
    %c0_i32 = arith.constant 0 : i32
    return %arg0, %arg2 : i32, i32
  }
  func.func @transform_1(%arg0: i32, %arg1: i32, %arg2: i32) -> (i32, i32) {
    %c0_i32 = arith.constant 0 : i32
    return %arg2, %arg1 : i32, i32
  }
  func.func @transform_2(%arg0: i32, %arg1: i32, %arg2: i32) -> (i32, i32) {
    %c0_i32 = arith.constant 0 : i32
    %c0_i32_0 = arith.constant 0 : i32
    return %c0_i32, %arg1 : i32, i32
  }
  func.func @transform_3(%arg0: i32, %arg1: i32, %arg2: i32) -> (i32, i32) {
    %c0_i32 = arith.constant 0 : i32
    return %arg0, %arg1 : i32, i32
  }
}

module attributes {stable_mosaic.version = 11 : i64} {
  func.func @_matmul_bias_kernel(%arg0: i32, %arg1: i32, %arg2: i32, %arg3: memref<128x16xbf16, #tpu.memory_space<vmem>>, %arg4: memref<16x128xbf16, #tpu.memory_space<vmem>>, %arg5: memref<1x128xf32, #tpu.memory_space<vmem>>, %arg6: memref<128x128xf32, #tpu.memory_space<vmem>>, %arg7: memref<128x128xf32, #tpu.memory_space<vmem>>) attributes {dimension_semantics = [#tpu.dimension_semantics<parallel>, #tpu.dimension_semantics<parallel>, #tpu.dimension_semantics<arbitrary>], iteration_bounds = array<i64: 1, 1, 1>, scalar_prefetch = 0 : i64, scratch_operands = 1 : i64, tpu.core_type = #tpu.core_type<tc>, window_params = [{transform_indices = @transform_0, window_bounds = array<i64: 128, 16>}, {transform_indices = @transform_1, window_bounds = array<i64: 16, 128>}, {transform_indices = @transform_2, window_bounds = array<i64: 1, 128>}, {transform_indices = @transform_3, window_bounds = array<i64: 128, 128>}]} {
    %c0_i32 = arith.constant 0 : i32
    %0 = arith.cmpi eq, %arg2, %c0_i32 : i32
    %1 = arith.extui %0 : i1 to i32
    %c0_i32_0 = arith.constant 0 : i32
    %2 = arith.cmpi ne, %1, %c0_i32_0 : i32
    scf.if %2 {
      %cst_10 = arith.constant 0.000000e+00 : f32
      %12 = vector.broadcast %cst_10 : f32 to vector<128x128xf32>
      %c0_11 = arith.constant 0 : index
      %c0_12 = arith.constant 0 : index
      %13 = vector.load %arg7[%c0_11, %c0_12] : memref<128x128xf32, #tpu.memory_space<vmem>>, vector<128x128xf32>
      tpu.vector_store %arg7[%c0_11, %c0_12], %12 {strides = array<i32>} : memref<128x128xf32, #tpu.memory_space<vmem>>, vector<128x128xf32>,
    } else {
    }
    %c0 = arith.constant 0 : index
    %c0_1 = arith.constant 0 : index
    %3 = vector.load %arg7[%c0, %c0_1] : memref<128x128xf32, #tpu.memory_space<vmem>>, vector<128x128xf32>
    %c0_2 = arith.constant 0 : index
    %c0_3 = arith.constant 0 : index
    %4 = vector.load %arg3[%c0_2, %c0_3] : memref<128x16xbf16, #tpu.memory_space<vmem>>, vector<128x16xbf16>
    %c0_4 = arith.constant 0 : index
    %c0_5 = arith.constant 0 : index
    %5 = vector.load %arg4[%c0_4, %c0_5] : memref<16x128xbf16, #tpu.memory_space<vmem>>, vector<16x128xbf16>
    %cst = arith.constant dense<0.000000e+00> : vector<128x128xf32>
    %6 = tpu.matmul %4, %5, %cst {dimension_numbers = #tpu.dot_dimension_numbers<[1], [0], [0], [1], [0, 0, 1, 1], [], []>} : vector<128x16xbf16>, vector<16x128xbf16>, vector<128x128xf32> -> vector<128x128xf32>
    %7 = arith.addf %3, %6 : vector<128x128xf32>
    %c0_6 = arith.constant 0 : index
    %c0_7 = arith.constant 0 : index
    %8 = vector.load %arg7[%c0_6, %c0_7] : memref<128x128xf32, #tpu.memory_space<vmem>>, vector<128x128xf32>
    tpu.vector_store %arg7[%c0_6, %c0_7], %7 {strides = array<i32>} : memref<128x128xf32, #tpu.memory_space<vmem>>, vector<128x128xf32>,
    %c0_i32_8 = arith.constant 0 : i32
    %9 = arith.cmpi eq, %arg2, %c0_i32_8 : i32
    %10 = arith.extui %9 : i1 to i32
    %c0_i32_9 = arith.constant 0 : i32
    %11 = arith.cmpi ne, %10, %c0_i32_9 : i32
    scf.if %11 {
      %c0_10 = arith.constant 0 : index
      %c0_11 = arith.constant 0 : index
      %12 = vector.load %arg7[%c0_10, %c0_11] : memref<128x128xf32, #tpu.memory_space<vmem>>, vector<128x128xf32>
      %c0_12 = arith.constant 0 : index
      %c0_13 = arith.constant 0 : index
      %13 = vector.load %arg5[%c0_12, %c0_13] : memref<1x128xf32, #tpu.memory_space<vmem>>, vector<1x128xf32>
      %14 = vector.broadcast %13 : vector<1x128xf32> to vector<128x128xf32>
      %15 = arith.addf %12, %14 : vector<128x128xf32>
      %c0_14 = arith.constant 0 : index
      %c0_15 = arith.constant 0 : index
      %16 = vector.load %arg6[%c0_14, %c0_15] : memref<128x128xf32, #tpu.memory_space<vmem>>, vector<128x128xf32>
      tpu.vector_store %arg6[%c0_14, %c0_15], %15 {strides = array<i32>} : memref<128x128xf32, #tpu.memory_space<vmem>>, vector<128x128xf32>,
    } else {
    }
    return
  }
  func.func @transform_0(%arg0: i32, %arg1: i32, %arg2: i32) -> (i32, i32) {
    %c0_i32 = arith.constant 0 : i32
    return %arg0, %arg2 : i32, i32
  }
  func.func @transform_1(%arg0: i32, %arg1: i32, %arg2: i32) -> (i32, i32) {
    %c0_i32 = arith.constant 0 : i32
    return %arg2, %arg1 : i32, i32
  }
  func.func @transform_2(%arg0: i32, %arg1: i32, %arg2: i32) -> (i32, i32) {
    %c0_i32 = arith.constant 0 : i32
    %c0_i32_0 = arith.constant 0 : i32
    return %c0_i32, %arg1 : i32, i32
  }
  func.func @transform_3(%arg0: i32, %arg1: i32, %arg2: i32) -> (i32, i32) {
    %c0_i32 = arith.constant 0 : i32
    return %arg0, %arg1 : i32, i32
  }
}

module attributes {stable_mosaic.version = 11 : i64} {
  func.func @_bn_add_act_kernel(%arg0: i32, %arg1: memref<8x128xf32, #tpu.memory_space<vmem>>, %arg2: memref<8x128xf32, #tpu.memory_space<vmem>>, %arg3: memref<1x128xf32, #tpu.memory_space<vmem>>, %arg4: memref<1x128xf32, #tpu.memory_space<vmem>>, %arg5: memref<1x128xf32, #tpu.memory_space<vmem>>, %arg6: memref<1x128xf32, #tpu.memory_space<vmem>>, %arg7: memref<8x128xf32, #tpu.memory_space<vmem>>) attributes {dimension_semantics = [#tpu.dimension_semantics<parallel>], iteration_bounds = array<i64: 1>, scalar_prefetch = 0 : i64, scratch_operands = 0 : i64, tpu.core_type = #tpu.core_type<tc>, window_params = [{transform_indices = @transform_0, window_bounds = array<i64: 8, 128>}, {transform_indices = @transform_1, window_bounds = array<i64: 8, 128>}, {pipeline_mode = #tpu.pipeline_mode<synchronous>, transform_indices = @transform_2, window_bounds = array<i64: 1, 128>}, {pipeline_mode = #tpu.pipeline_mode<synchronous>, transform_indices = @transform_3, window_bounds = array<i64: 1, 128>}, {pipeline_mode = #tpu.pipeline_mode<synchronous>, transform_indices = @transform_4, window_bounds = array<i64: 1, 128>}, {pipeline_mode = #tpu.pipeline_mode<synchronous>, transform_indices = @transform_5, window_bounds = array<i64: 1, 128>}, {transform_indices = @transform_6, window_bounds = array<i64: 8, 128>}]} {
    %c0 = arith.constant 0 : index
    %c0_0 = arith.constant 0 : index
    %0 = vector.load %arg1[%c0, %c0_0] : memref<8x128xf32, #tpu.memory_space<vmem>>, vector<8x128xf32>
    %c0_1 = arith.constant 0 : index
    %c0_2 = arith.constant 0 : index
    %1 = vector.load %arg5[%c0_1, %c0_2] : memref<1x128xf32, #tpu.memory_space<vmem>>, vector<1x128xf32>
    %2 = vector.broadcast %1 : vector<1x128xf32> to vector<8x128xf32>
    %3 = arith.subf %0, %2 : vector<8x128xf32>
    %c0_3 = arith.constant 0 : index
    %c0_4 = arith.constant 0 : index
    %4 = vector.load %arg6[%c0_3, %c0_4] : memref<1x128xf32, #tpu.memory_space<vmem>>, vector<1x128xf32>
    %cst = arith.constant 9.99999974E-6 : f32
    %5 = vector.broadcast %cst : f32 to vector<1x128xf32>
    %6 = arith.addf %4, %5 : vector<1x128xf32>
    %7 = math.rsqrt %6 : vector<1x128xf32>
    %8 = vector.broadcast %7 : vector<1x128xf32> to vector<8x128xf32>
    %9 = arith.mulf %3, %8 : vector<8x128xf32>
    %c0_5 = arith.constant 0 : index
    %c0_6 = arith.constant 0 : index
    %10 = vector.load %arg3[%c0_5, %c0_6] : memref<1x128xf32, #tpu.memory_space<vmem>>, vector<1x128xf32>
    %11 = vector.broadcast %10 : vector<1x128xf32> to vector<8x128xf32>
    %12 = arith.mulf %9, %11 : vector<8x128xf32>
    %c0_7 = arith.constant 0 : index
    %c0_8 = arith.constant 0 : index
    %13 = vector.load %arg4[%c0_7, %c0_8] : memref<1x128xf32, #tpu.memory_space<vmem>>, vector<1x128xf32>
    %14 = vector.broadcast %13 : vector<1x128xf32> to vector<8x128xf32>
    %15 = arith.addf %12, %14 : vector<8x128xf32>
    %c0_9 = arith.constant 0 : index
    %c0_10 = arith.constant 0 : index
    %16 = vector.load %arg2[%c0_9, %c0_10] : memref<8x128xf32, #tpu.memory_space<vmem>>, vector<8x128xf32>
    %17 = arith.addf %15, %16 : vector<8x128xf32>
    %cst_11 = arith.constant 0.000000e+00 : f32
    %18 = vector.broadcast %cst_11 : f32 to vector<8x128xf32>
    %19 = arith.cmpf oge, %17, %18 : vector<8x128xf32>
    %cst_12 = arith.constant 0.00999999977 : f32
    %20 = vector.broadcast %cst_12 : f32 to vector<8x128xf32>
    %21 = arith.mulf %20, %17 : vector<8x128xf32>
    %22 = arith.select %19, %17, %21 : vector<8x128xi1>, vector<8x128xf32>
    %c0_13 = arith.constant 0 : index
    %c0_14 = arith.constant 0 : index
    %23 = vector.load %arg7[%c0_13, %c0_14] : memref<8x128xf32, #tpu.memory_space<vmem>>, vector<8x128xf32>
    tpu.vector_store %arg7[%c0_13, %c0_14], %22 {strides = array<i32>} : memref<8x128xf32, #tpu.memory_space<vmem>>, vector<8x128xf32>,
    return
  }
  func.func @transform_0(%arg0: i32) -> (i32, i32) {
    %c0_i32 = arith.constant 0 : i32
    %c0_i32_0 = arith.constant 0 : i32
    return %arg0, %c0_i32 : i32, i32
  }
  func.func @transform_1(%arg0: i32) -> (i32, i32) {
    %c0_i32 = arith.constant 0 : i32
    %c0_i32_0 = arith.constant 0 : i32
    return %arg0, %c0_i32 : i32, i32
  }
  func.func @transform_2(%arg0: i32) -> (i32, i32) {
    %c0_i32 = arith.constant 0 : i32
    %c0_i32_0 = arith.constant 0 : i32
    %c0_i32_1 = arith.constant 0 : i32
    return %c0_i32, %c0_i32_0 : i32, i32
  }
  func.func @transform_3(%arg0: i32) -> (i32, i32) {
    %c0_i32 = arith.constant 0 : i32
    %c0_i32_0 = arith.constant 0 : i32
    %c0_i32_1 = arith.constant 0 : i32
    return %c0_i32, %c0_i32_0 : i32, i32
  }
  func.func @transform_4(%arg0: i32) -> (i32, i32) {
    %c0_i32 = arith.constant 0 : i32
    %c0_i32_0 = arith.constant 0 : i32
    %c0_i32_1 = arith.constant 0 : i32
    return %c0_i32, %c0_i32_0 : i32, i32
  }
  func.func @transform_5(%arg0: i32) -> (i32, i32) {
    %c0_i32 = arith.constant 0 : i32
    %c0_i32_0 = arith.constant 0 : i32
    %c0_i32_1 = arith.constant 0 : i32
    return %c0_i32, %c0_i32_0 : i32, i32
  }
  func.func @transform_6(%arg0: i32) -> (i32, i32) {
    %c0_i32 = arith.constant 0 : i32
    %c0_i32_0 = arith.constant 0 : i32
    return %arg0, %c0_i32 : i32, i32
  }
}

module attributes {stable_mosaic.version = 11 : i64} {
  func.func @_matmul_bias_kernel(%arg0: i32, %arg1: i32, %arg2: i32, %arg3: memref<128x208xbf16, #tpu.memory_space<vmem>>, %arg4: memref<208x128xbf16, #tpu.memory_space<vmem>>, %arg5: memref<1x128xf32, #tpu.memory_space<vmem>>, %arg6: memref<128x128xf32, #tpu.memory_space<vmem>>, %arg7: memref<128x128xf32, #tpu.memory_space<vmem>>) attributes {dimension_semantics = [#tpu.dimension_semantics<parallel>, #tpu.dimension_semantics<parallel>, #tpu.dimension_semantics<arbitrary>], iteration_bounds = array<i64: 1, 1, 1>, scalar_prefetch = 0 : i64, scratch_operands = 1 : i64, tpu.core_type = #tpu.core_type<tc>, window_params = [{transform_indices = @transform_0, window_bounds = array<i64: 128, 208>}, {transform_indices = @transform_1, window_bounds = array<i64: 208, 128>}, {transform_indices = @transform_2, window_bounds = array<i64: 1, 128>}, {transform_indices = @transform_3, window_bounds = array<i64: 128, 128>}]} {
    %c0_i32 = arith.constant 0 : i32
    %0 = arith.cmpi eq, %arg2, %c0_i32 : i32
    %1 = arith.extui %0 : i1 to i32
    %c0_i32_0 = arith.constant 0 : i32
    %2 = arith.cmpi ne, %1, %c0_i32_0 : i32
    scf.if %2 {
      %cst_10 = arith.constant 0.000000e+00 : f32
      %12 = vector.broadcast %cst_10 : f32 to vector<128x128xf32>
      %c0_11 = arith.constant 0 : index
      %c0_12 = arith.constant 0 : index
      %13 = vector.load %arg7[%c0_11, %c0_12] : memref<128x128xf32, #tpu.memory_space<vmem>>, vector<128x128xf32>
      tpu.vector_store %arg7[%c0_11, %c0_12], %12 {strides = array<i32>} : memref<128x128xf32, #tpu.memory_space<vmem>>, vector<128x128xf32>,
    } else {
    }
    %c0 = arith.constant 0 : index
    %c0_1 = arith.constant 0 : index
    %3 = vector.load %arg7[%c0, %c0_1] : memref<128x128xf32, #tpu.memory_space<vmem>>, vector<128x128xf32>
    %c0_2 = arith.constant 0 : index
    %c0_3 = arith.constant 0 : index
    %4 = vector.load %arg3[%c0_2, %c0_3] : memref<128x208xbf16, #tpu.memory_space<vmem>>, vector<128x208xbf16>
    %c0_4 = arith.constant 0 : index
    %c0_5 = arith.constant 0 : index
    %5 = vector.load %arg4[%c0_4, %c0_5] : memref<208x128xbf16, #tpu.memory_space<vmem>>, vector<208x128xbf16>
    %cst = arith.constant dense<0.000000e+00> : vector<128x128xf32>
    %6 = tpu.matmul %4, %5, %cst {dimension_numbers = #tpu.dot_dimension_numbers<[1], [0], [0], [1], [0, 0, 1, 1], [], []>} : vector<128x208xbf16>, vector<208x128xbf16>, vector<128x128xf32> -> vector<128x128xf32>
    %7 = arith.addf %3, %6 : vector<128x128xf32>
    %c0_6 = arith.constant 0 : index
    %c0_7 = arith.constant 0 : index
    %8 = vector.load %arg7[%c0_6, %c0_7] : memref<128x128xf32, #tpu.memory_space<vmem>>, vector<128x128xf32>
    tpu.vector_store %arg7[%c0_6, %c0_7], %7 {strides = array<i32>} : memref<128x128xf32, #tpu.memory_space<vmem>>, vector<128x128xf32>,
    %c0_i32_8 = arith.constant 0 : i32
    %9 = arith.cmpi eq, %arg2, %c0_i32_8 : i32
    %10 = arith.extui %9 : i1 to i32
    %c0_i32_9 = arith.constant 0 : i32
    %11 = arith.cmpi ne, %10, %c0_i32_9 : i32
    scf.if %11 {
      %c0_10 = arith.constant 0 : index
      %c0_11 = arith.constant 0 : index
      %12 = vector.load %arg7[%c0_10, %c0_11] : memref<128x128xf32, #tpu.memory_space<vmem>>, vector<128x128xf32>
      %c0_12 = arith.constant 0 : index
      %c0_13 = arith.constant 0 : index
      %13 = vector.load %arg5[%c0_12, %c0_13] : memref<1x128xf32, #tpu.memory_space<vmem>>, vector<1x128xf32>
      %14 = vector.broadcast %13 : vector<1x128xf32> to vector<128x128xf32>
      %15 = arith.addf %12, %14 : vector<128x128xf32>
      %c0_14 = arith.constant 0 : index
      %c0_15 = arith.constant 0 : index
      %16 = vector.load %arg6[%c0_14, %c0_15] : memref<128x128xf32, #tpu.memory_space<vmem>>, vector<128x128xf32>
      tpu.vector_store %arg6[%c0_14, %c0_15], %15 {strides = array<i32>} : memref<128x128xf32, #tpu.memory_space<vmem>>, vector<128x128xf32>,
    } else {
    }
    return
  }
  func.func @transform_0(%arg0: i32, %arg1: i32, %arg2: i32) -> (i32, i32) {
    %c0_i32 = arith.constant 0 : i32
    return %arg0, %arg2 : i32, i32
  }
  func.func @transform_1(%arg0: i32, %arg1: i32, %arg2: i32) -> (i32, i32) {
    %c0_i32 = arith.constant 0 : i32
    return %arg2, %arg1 : i32, i32
  }
  func.func @transform_2(%arg0: i32, %arg1: i32, %arg2: i32) -> (i32, i32) {
    %c0_i32 = arith.constant 0 : i32
    %c0_i32_0 = arith.constant 0 : i32
    return %c0_i32, %arg1 : i32, i32
  }
  func.func @transform_3(%arg0: i32, %arg1: i32, %arg2: i32) -> (i32, i32) {
    %c0_i32 = arith.constant 0 : i32
    return %arg0, %arg1 : i32, i32
  }
}

module attributes {stable_mosaic.version = 11 : i64} {
  func.func @_bn_add_act_kernel(%arg0: i32, %arg1: memref<8x128xf32, #tpu.memory_space<vmem>>, %arg2: memref<8x128xf32, #tpu.memory_space<vmem>>, %arg3: memref<1x128xf32, #tpu.memory_space<vmem>>, %arg4: memref<1x128xf32, #tpu.memory_space<vmem>>, %arg5: memref<1x128xf32, #tpu.memory_space<vmem>>, %arg6: memref<1x128xf32, #tpu.memory_space<vmem>>, %arg7: memref<8x128xf32, #tpu.memory_space<vmem>>) attributes {dimension_semantics = [#tpu.dimension_semantics<parallel>], iteration_bounds = array<i64: 1>, scalar_prefetch = 0 : i64, scratch_operands = 0 : i64, tpu.core_type = #tpu.core_type<tc>, window_params = [{transform_indices = @transform_0, window_bounds = array<i64: 8, 128>}, {transform_indices = @transform_1, window_bounds = array<i64: 8, 128>}, {pipeline_mode = #tpu.pipeline_mode<synchronous>, transform_indices = @transform_2, window_bounds = array<i64: 1, 128>}, {pipeline_mode = #tpu.pipeline_mode<synchronous>, transform_indices = @transform_3, window_bounds = array<i64: 1, 128>}, {pipeline_mode = #tpu.pipeline_mode<synchronous>, transform_indices = @transform_4, window_bounds = array<i64: 1, 128>}, {pipeline_mode = #tpu.pipeline_mode<synchronous>, transform_indices = @transform_5, window_bounds = array<i64: 1, 128>}, {transform_indices = @transform_6, window_bounds = array<i64: 8, 128>}]} {
    %c0 = arith.constant 0 : index
    %c0_0 = arith.constant 0 : index
    %0 = vector.load %arg1[%c0, %c0_0] : memref<8x128xf32, #tpu.memory_space<vmem>>, vector<8x128xf32>
    %c0_1 = arith.constant 0 : index
    %c0_2 = arith.constant 0 : index
    %1 = vector.load %arg5[%c0_1, %c0_2] : memref<1x128xf32, #tpu.memory_space<vmem>>, vector<1x128xf32>
    %2 = vector.broadcast %1 : vector<1x128xf32> to vector<8x128xf32>
    %3 = arith.subf %0, %2 : vector<8x128xf32>
    %c0_3 = arith.constant 0 : index
    %c0_4 = arith.constant 0 : index
    %4 = vector.load %arg6[%c0_3, %c0_4] : memref<1x128xf32, #tpu.memory_space<vmem>>, vector<1x128xf32>
    %cst = arith.constant 9.99999974E-6 : f32
    %5 = vector.broadcast %cst : f32 to vector<1x128xf32>
    %6 = arith.addf %4, %5 : vector<1x128xf32>
    %7 = math.rsqrt %6 : vector<1x128xf32>
    %8 = vector.broadcast %7 : vector<1x128xf32> to vector<8x128xf32>
    %9 = arith.mulf %3, %8 : vector<8x128xf32>
    %c0_5 = arith.constant 0 : index
    %c0_6 = arith.constant 0 : index
    %10 = vector.load %arg3[%c0_5, %c0_6] : memref<1x128xf32, #tpu.memory_space<vmem>>, vector<1x128xf32>
    %11 = vector.broadcast %10 : vector<1x128xf32> to vector<8x128xf32>
    %12 = arith.mulf %9, %11 : vector<8x128xf32>
    %c0_7 = arith.constant 0 : index
    %c0_8 = arith.constant 0 : index
    %13 = vector.load %arg4[%c0_7, %c0_8] : memref<1x128xf32, #tpu.memory_space<vmem>>, vector<1x128xf32>
    %14 = vector.broadcast %13 : vector<1x128xf32> to vector<8x128xf32>
    %15 = arith.addf %12, %14 : vector<8x128xf32>
    %c0_9 = arith.constant 0 : index
    %c0_10 = arith.constant 0 : index
    %16 = vector.load %arg2[%c0_9, %c0_10] : memref<8x128xf32, #tpu.memory_space<vmem>>, vector<8x128xf32>
    %17 = arith.addf %15, %16 : vector<8x128xf32>
    %cst_11 = arith.constant 0.000000e+00 : f32
    %18 = vector.broadcast %cst_11 : f32 to vector<8x128xf32>
    %19 = arith.maximumf %17, %18 : vector<8x128xf32>
    %c0_12 = arith.constant 0 : index
    %c0_13 = arith.constant 0 : index
    %20 = vector.load %arg7[%c0_12, %c0_13] : memref<8x128xf32, #tpu.memory_space<vmem>>, vector<8x128xf32>
    tpu.vector_store %arg7[%c0_12, %c0_13], %19 {strides = array<i32>} : memref<8x128xf32, #tpu.memory_space<vmem>>, vector<8x128xf32>,
    return
  }
  func.func @transform_0(%arg0: i32) -> (i32, i32) {
    %c0_i32 = arith.constant 0 : i32
    %c0_i32_0 = arith.constant 0 : i32
    return %arg0, %c0_i32 : i32, i32
  }
  func.func @transform_1(%arg0: i32) -> (i32, i32) {
    %c0_i32 = arith.constant 0 : i32
    %c0_i32_0 = arith.constant 0 : i32
    return %arg0, %c0_i32 : i32, i32
  }
  func.func @transform_2(%arg0: i32) -> (i32, i32) {
    %c0_i32 = arith.constant 0 : i32
    %c0_i32_0 = arith.constant 0 : i32
    %c0_i32_1 = arith.constant 0 : i32
    return %c0_i32, %c0_i32_0 : i32, i32
  }
  func.func @transform_3(%arg0: i32) -> (i32, i32) {
    %c0_i32 = arith.constant 0 : i32
    %c0_i32_0 = arith.constant 0 : i32
    %c0_i32_1 = arith.constant 0 : i32
    return %c0_i32, %c0_i32_0 : i32, i32
  }
  func.func @transform_4(%arg0: i32) -> (i32, i32) {
    %c0_i32 = arith.constant 0 : i32
    %c0_i32_0 = arith.constant 0 : i32
    %c0_i32_1 = arith.constant 0 : i32
    return %c0_i32, %c0_i32_0 : i32, i32
  }
  func.func @transform_5(%arg0: i32) -> (i32, i32) {
    %c0_i32 = arith.constant 0 : i32
    %c0_i32_0 = arith.constant 0 : i32
    %c0_i32_1 = arith.constant 0 : i32
    return %c0_i32, %c0_i32_0 : i32, i32
  }
  func.func @transform_6(%arg0: i32) -> (i32, i32) {
    %c0_i32 = arith.constant 0 : i32
    %c0_i32_0 = arith.constant 0 : i32
    return %arg0, %c0_i32 : i32, i32
  }
}

module attributes {stable_mosaic.version = 11 : i64} {
  func.func @_matmul_bias_kernel(%arg0: i32, %arg1: i32, %arg2: i32, %arg3: memref<256x112xbf16, #tpu.memory_space<vmem>>, %arg4: memref<112x128xbf16, #tpu.memory_space<vmem>>, %arg5: memref<1x128xf32, #tpu.memory_space<vmem>>, %arg6: memref<256x128xf32, #tpu.memory_space<vmem>>, %arg7: memref<256x128xf32, #tpu.memory_space<vmem>>) attributes {dimension_semantics = [#tpu.dimension_semantics<parallel>, #tpu.dimension_semantics<parallel>, #tpu.dimension_semantics<arbitrary>], iteration_bounds = array<i64: 8, 1, 1>, scalar_prefetch = 0 : i64, scratch_operands = 1 : i64, tpu.core_type = #tpu.core_type<tc>, window_params = [{transform_indices = @transform_0, window_bounds = array<i64: 256, 112>}, {transform_indices = @transform_1, window_bounds = array<i64: 112, 128>}, {transform_indices = @transform_2, window_bounds = array<i64: 1, 128>}, {transform_indices = @transform_3, window_bounds = array<i64: 256, 128>}]} {
    %c0_i32 = arith.constant 0 : i32
    %0 = arith.cmpi eq, %arg2, %c0_i32 : i32
    %1 = arith.extui %0 : i1 to i32
    %c0_i32_0 = arith.constant 0 : i32
    %2 = arith.cmpi ne, %1, %c0_i32_0 : i32
    scf.if %2 {
      %cst_10 = arith.constant 0.000000e+00 : f32
      %12 = vector.broadcast %cst_10 : f32 to vector<256x128xf32>
      %c0_11 = arith.constant 0 : index
      %c0_12 = arith.constant 0 : index
      %13 = vector.load %arg7[%c0_11, %c0_12] : memref<256x128xf32, #tpu.memory_space<vmem>>, vector<256x128xf32>
      tpu.vector_store %arg7[%c0_11, %c0_12], %12 {strides = array<i32>} : memref<256x128xf32, #tpu.memory_space<vmem>>, vector<256x128xf32>,
    } else {
    }
    %c0 = arith.constant 0 : index
    %c0_1 = arith.constant 0 : index
    %3 = vector.load %arg7[%c0, %c0_1] : memref<256x128xf32, #tpu.memory_space<vmem>>, vector<256x128xf32>
    %c0_2 = arith.constant 0 : index
    %c0_3 = arith.constant 0 : index
    %4 = vector.load %arg3[%c0_2, %c0_3] : memref<256x112xbf16, #tpu.memory_space<vmem>>, vector<256x112xbf16>
    %c0_4 = arith.constant 0 : index
    %c0_5 = arith.constant 0 : index
    %5 = vector.load %arg4[%c0_4, %c0_5] : memref<112x128xbf16, #tpu.memory_space<vmem>>, vector<112x128xbf16>
    %cst = arith.constant dense<0.000000e+00> : vector<256x128xf32>
    %6 = tpu.matmul %4, %5, %cst {dimension_numbers = #tpu.dot_dimension_numbers<[1], [0], [0], [1], [0, 0, 1, 1], [], []>} : vector<256x112xbf16>, vector<112x128xbf16>, vector<256x128xf32> -> vector<256x128xf32>
    %7 = arith.addf %3, %6 : vector<256x128xf32>
    %c0_6 = arith.constant 0 : index
    %c0_7 = arith.constant 0 : index
    %8 = vector.load %arg7[%c0_6, %c0_7] : memref<256x128xf32, #tpu.memory_space<vmem>>, vector<256x128xf32>
    tpu.vector_store %arg7[%c0_6, %c0_7], %7 {strides = array<i32>} : memref<256x128xf32, #tpu.memory_space<vmem>>, vector<256x128xf32>,
    %c0_i32_8 = arith.constant 0 : i32
    %9 = arith.cmpi eq, %arg2, %c0_i32_8 : i32
    %10 = arith.extui %9 : i1 to i32
    %c0_i32_9 = arith.constant 0 : i32
    %11 = arith.cmpi ne, %10, %c0_i32_9 : i32
    scf.if %11 {
      %c0_10 = arith.constant 0 : index
      %c0_11 = arith.constant 0 : index
      %12 = vector.load %arg7[%c0_10, %c0_11] : memref<256x128xf32, #tpu.memory_space<vmem>>, vector<256x128xf32>
      %c0_12 = arith.constant 0 : index
      %c0_13 = arith.constant 0 : index
      %13 = vector.load %arg5[%c0_12, %c0_13] : memref<1x128xf32, #tpu.memory_space<vmem>>, vector<1x128xf32>
      %14 = vector.broadcast %13 : vector<1x128xf32> to vector<256x128xf32>
      %15 = arith.addf %12, %14 : vector<256x128xf32>
      %c0_14 = arith.constant 0 : index
      %c0_15 = arith.constant 0 : index
      %16 = vector.load %arg6[%c0_14, %c0_15] : memref<256x128xf32, #tpu.memory_space<vmem>>, vector<256x128xf32>
      tpu.vector_store %arg6[%c0_14, %c0_15], %15 {strides = array<i32>} : memref<256x128xf32, #tpu.memory_space<vmem>>, vector<256x128xf32>,
    } else {
    }
    return
  }
  func.func @transform_0(%arg0: i32, %arg1: i32, %arg2: i32) -> (i32, i32) {
    %c0_i32 = arith.constant 0 : i32
    return %arg0, %arg2 : i32, i32
  }
  func.func @transform_1(%arg0: i32, %arg1: i32, %arg2: i32) -> (i32, i32) {
    %c0_i32 = arith.constant 0 : i32
    return %arg2, %arg1 : i32, i32
  }
  func.func @transform_2(%arg0: i32, %arg1: i32, %arg2: i32) -> (i32, i32) {
    %c0_i32 = arith.constant 0 : i32
    %c0_i32_0 = arith.constant 0 : i32
    return %c0_i32, %arg1 : i32, i32
  }
  func.func @transform_3(%arg0: i32, %arg1: i32, %arg2: i32) -> (i32, i32) {
    %c0_i32 = arith.constant 0 : i32
    return %arg0, %arg1 : i32, i32
  }
}

module attributes {stable_mosaic.version = 11 : i64} {
  func.func @_matmul_bias_kernel(%arg0: i32, %arg1: i32, %arg2: i32, %arg3: memref<128x32xbf16, #tpu.memory_space<vmem>>, %arg4: memref<32x128xbf16, #tpu.memory_space<vmem>>, %arg5: memref<1x128xf32, #tpu.memory_space<vmem>>, %arg6: memref<128x128xf32, #tpu.memory_space<vmem>>, %arg7: memref<128x128xf32, #tpu.memory_space<vmem>>) attributes {dimension_semantics = [#tpu.dimension_semantics<parallel>, #tpu.dimension_semantics<parallel>, #tpu.dimension_semantics<arbitrary>], iteration_bounds = array<i64: 1, 1, 1>, scalar_prefetch = 0 : i64, scratch_operands = 1 : i64, tpu.core_type = #tpu.core_type<tc>, window_params = [{transform_indices = @transform_0, window_bounds = array<i64: 128, 32>}, {transform_indices = @transform_1, window_bounds = array<i64: 32, 128>}, {transform_indices = @transform_2, window_bounds = array<i64: 1, 128>}, {transform_indices = @transform_3, window_bounds = array<i64: 128, 128>}]} {
    %c0_i32 = arith.constant 0 : i32
    %0 = arith.cmpi eq, %arg2, %c0_i32 : i32
    %1 = arith.extui %0 : i1 to i32
    %c0_i32_0 = arith.constant 0 : i32
    %2 = arith.cmpi ne, %1, %c0_i32_0 : i32
    scf.if %2 {
      %cst_10 = arith.constant 0.000000e+00 : f32
      %12 = vector.broadcast %cst_10 : f32 to vector<128x128xf32>
      %c0_11 = arith.constant 0 : index
      %c0_12 = arith.constant 0 : index
      %13 = vector.load %arg7[%c0_11, %c0_12] : memref<128x128xf32, #tpu.memory_space<vmem>>, vector<128x128xf32>
      tpu.vector_store %arg7[%c0_11, %c0_12], %12 {strides = array<i32>} : memref<128x128xf32, #tpu.memory_space<vmem>>, vector<128x128xf32>,
    } else {
    }
    %c0 = arith.constant 0 : index
    %c0_1 = arith.constant 0 : index
    %3 = vector.load %arg7[%c0, %c0_1] : memref<128x128xf32, #tpu.memory_space<vmem>>, vector<128x128xf32>
    %c0_2 = arith.constant 0 : index
    %c0_3 = arith.constant 0 : index
    %4 = vector.load %arg3[%c0_2, %c0_3] : memref<128x32xbf16, #tpu.memory_space<vmem>>, vector<128x32xbf16>
    %c0_4 = arith.constant 0 : index
    %c0_5 = arith.constant 0 : index
    %5 = vector.load %arg4[%c0_4, %c0_5] : memref<32x128xbf16, #tpu.memory_space<vmem>>, vector<32x128xbf16>
    %cst = arith.constant dense<0.000000e+00> : vector<128x128xf32>
    %6 = tpu.matmul %4, %5, %cst {dimension_numbers = #tpu.dot_dimension_numbers<[1], [0], [0], [1], [0, 0, 1, 1], [], []>} : vector<128x32xbf16>, vector<32x128xbf16>, vector<128x128xf32> -> vector<128x128xf32>
    %7 = arith.addf %3, %6 : vector<128x128xf32>
    %c0_6 = arith.constant 0 : index
    %c0_7 = arith.constant 0 : index
    %8 = vector.load %arg7[%c0_6, %c0_7] : memref<128x128xf32, #tpu.memory_space<vmem>>, vector<128x128xf32>
    tpu.vector_store %arg7[%c0_6, %c0_7], %7 {strides = array<i32>} : memref<128x128xf32, #tpu.memory_space<vmem>>, vector<128x128xf32>,
    %c0_i32_8 = arith.constant 0 : i32
    %9 = arith.cmpi eq, %arg2, %c0_i32_8 : i32
    %10 = arith.extui %9 : i1 to i32
    %c0_i32_9 = arith.constant 0 : i32
    %11 = arith.cmpi ne, %10, %c0_i32_9 : i32
    scf.if %11 {
      %c0_10 = arith.constant 0 : index
      %c0_11 = arith.constant 0 : index
      %12 = vector.load %arg7[%c0_10, %c0_11] : memref<128x128xf32, #tpu.memory_space<vmem>>, vector<128x128xf32>
      %c0_12 = arith.constant 0 : index
      %c0_13 = arith.constant 0 : index
      %13 = vector.load %arg5[%c0_12, %c0_13] : memref<1x128xf32, #tpu.memory_space<vmem>>, vector<1x128xf32>
      %14 = vector.broadcast %13 : vector<1x128xf32> to vector<128x128xf32>
      %15 = arith.addf %12, %14 : vector<128x128xf32>
      %c0_14 = arith.constant 0 : index
      %c0_15 = arith.constant 0 : index
      %16 = vector.load %arg6[%c0_14, %c0_15] : memref<128x128xf32, #tpu.memory_space<vmem>>, vector<128x128xf32>
      tpu.vector_store %arg6[%c0_14, %c0_15], %15 {strides = array<i32>} : memref<128x128xf32, #tpu.memory_space<vmem>>, vector<128x128xf32>,
    } else {
    }
    return
  }
  func.func @transform_0(%arg0: i32, %arg1: i32, %arg2: i32) -> (i32, i32) {
    %c0_i32 = arith.constant 0 : i32
    return %arg0, %arg2 : i32, i32
  }
  func.func @transform_1(%arg0: i32, %arg1: i32, %arg2: i32) -> (i32, i32) {
    %c0_i32 = arith.constant 0 : i32
    return %arg2, %arg1 : i32, i32
  }
  func.func @transform_2(%arg0: i32, %arg1: i32, %arg2: i32) -> (i32, i32) {
    %c0_i32 = arith.constant 0 : i32
    %c0_i32_0 = arith.constant 0 : i32
    return %c0_i32, %arg1 : i32, i32
  }
  func.func @transform_3(%arg0: i32, %arg1: i32, %arg2: i32) -> (i32, i32) {
    %c0_i32 = arith.constant 0 : i32
    return %arg0, %arg1 : i32, i32
  }
}

module attributes {stable_mosaic.version = 11 : i64} {
  func.func @_matmul_bias_kernel(%arg0: i32, %arg1: i32, %arg2: i32, %arg3: memref<32x384xbf16, #tpu.memory_space<vmem>>, %arg4: memref<384x128xbf16, #tpu.memory_space<vmem>>, %arg5: memref<1x128xf32, #tpu.memory_space<vmem>>, %arg6: memref<32x128xf32, #tpu.memory_space<vmem>>, %arg7: memref<32x128xf32, #tpu.memory_space<vmem>>) attributes {dimension_semantics = [#tpu.dimension_semantics<parallel>, #tpu.dimension_semantics<parallel>, #tpu.dimension_semantics<arbitrary>], iteration_bounds = array<i64: 1, 1, 1>, scalar_prefetch = 0 : i64, scratch_operands = 1 : i64, tpu.core_type = #tpu.core_type<tc>, window_params = [{transform_indices = @transform_0, window_bounds = array<i64: 32, 384>}, {transform_indices = @transform_1, window_bounds = array<i64: 384, 128>}, {transform_indices = @transform_2, window_bounds = array<i64: 1, 128>}, {transform_indices = @transform_3, window_bounds = array<i64: 32, 128>}]} {
    %c0_i32 = arith.constant 0 : i32
    %0 = arith.cmpi eq, %arg2, %c0_i32 : i32
    %1 = arith.extui %0 : i1 to i32
    %c0_i32_0 = arith.constant 0 : i32
    %2 = arith.cmpi ne, %1, %c0_i32_0 : i32
    scf.if %2 {
      %cst_10 = arith.constant 0.000000e+00 : f32
      %12 = vector.broadcast %cst_10 : f32 to vector<32x128xf32>
      %c0_11 = arith.constant 0 : index
      %c0_12 = arith.constant 0 : index
      %13 = vector.load %arg7[%c0_11, %c0_12] : memref<32x128xf32, #tpu.memory_space<vmem>>, vector<32x128xf32>
      tpu.vector_store %arg7[%c0_11, %c0_12], %12 {strides = array<i32>} : memref<32x128xf32, #tpu.memory_space<vmem>>, vector<32x128xf32>,
    } else {
    }
    %c0 = arith.constant 0 : index
    %c0_1 = arith.constant 0 : index
    %3 = vector.load %arg7[%c0, %c0_1] : memref<32x128xf32, #tpu.memory_space<vmem>>, vector<32x128xf32>
    %c0_2 = arith.constant 0 : index
    %c0_3 = arith.constant 0 : index
    %4 = vector.load %arg3[%c0_2, %c0_3] : memref<32x384xbf16, #tpu.memory_space<vmem>>, vector<32x384xbf16>
    %c0_4 = arith.constant 0 : index
    %c0_5 = arith.constant 0 : index
    %5 = vector.load %arg4[%c0_4, %c0_5] : memref<384x128xbf16, #tpu.memory_space<vmem>>, vector<384x128xbf16>
    %cst = arith.constant dense<0.000000e+00> : vector<32x128xf32>
    %6 = tpu.matmul %4, %5, %cst {dimension_numbers = #tpu.dot_dimension_numbers<[1], [0], [0], [1], [0, 0, 1, 1], [], []>} : vector<32x384xbf16>, vector<384x128xbf16>, vector<32x128xf32> -> vector<32x128xf32>
    %7 = arith.addf %3, %6 : vector<32x128xf32>
    %c0_6 = arith.constant 0 : index
    %c0_7 = arith.constant 0 : index
    %8 = vector.load %arg7[%c0_6, %c0_7] : memref<32x128xf32, #tpu.memory_space<vmem>>, vector<32x128xf32>
    tpu.vector_store %arg7[%c0_6, %c0_7], %7 {strides = array<i32>} : memref<32x128xf32, #tpu.memory_space<vmem>>, vector<32x128xf32>,
    %c0_i32_8 = arith.constant 0 : i32
    %9 = arith.cmpi eq, %arg2, %c0_i32_8 : i32
    %10 = arith.extui %9 : i1 to i32
    %c0_i32_9 = arith.constant 0 : i32
    %11 = arith.cmpi ne, %10, %c0_i32_9 : i32
    scf.if %11 {
      %c0_10 = arith.constant 0 : index
      %c0_11 = arith.constant 0 : index
      %12 = vector.load %arg7[%c0_10, %c0_11] : memref<32x128xf32, #tpu.memory_space<vmem>>, vector<32x128xf32>
      %c0_12 = arith.constant 0 : index
      %c0_13 = arith.constant 0 : index
      %13 = vector.load %arg5[%c0_12, %c0_13] : memref<1x128xf32, #tpu.memory_space<vmem>>, vector<1x128xf32>
      %14 = vector.broadcast %13 : vector<1x128xf32> to vector<32x128xf32>
      %15 = arith.addf %12, %14 : vector<32x128xf32>
      %c0_14 = arith.constant 0 : index
      %c0_15 = arith.constant 0 : index
      %16 = vector.load %arg6[%c0_14, %c0_15] : memref<32x128xf32, #tpu.memory_space<vmem>>, vector<32x128xf32>
      tpu.vector_store %arg6[%c0_14, %c0_15], %15 {strides = array<i32>} : memref<32x128xf32, #tpu.memory_space<vmem>>, vector<32x128xf32>,
    } else {
    }
    return
  }
  func.func @transform_0(%arg0: i32, %arg1: i32, %arg2: i32) -> (i32, i32) {
    %c0_i32 = arith.constant 0 : i32
    return %arg0, %arg2 : i32, i32
  }
  func.func @transform_1(%arg0: i32, %arg1: i32, %arg2: i32) -> (i32, i32) {
    %c0_i32 = arith.constant 0 : i32
    return %arg2, %arg1 : i32, i32
  }
  func.func @transform_2(%arg0: i32, %arg1: i32, %arg2: i32) -> (i32, i32) {
    %c0_i32 = arith.constant 0 : i32
    %c0_i32_0 = arith.constant 0 : i32
    return %c0_i32, %arg1 : i32, i32
  }
  func.func @transform_3(%arg0: i32, %arg1: i32, %arg2: i32) -> (i32, i32) {
    %c0_i32 = arith.constant 0 : i32
    return %arg0, %arg1 : i32, i32
  }
}

module attributes {stable_mosaic.version = 11 : i64} {
  func.func @_matmul_bias_kernel(%arg0: i32, %arg1: i32, %arg2: i32, %arg3: memref<16x16xbf16, #tpu.memory_space<vmem>>, %arg4: memref<16x128xbf16, #tpu.memory_space<vmem>>, %arg5: memref<1x128xf32, #tpu.memory_space<vmem>>, %arg6: memref<16x128xf32, #tpu.memory_space<vmem>>, %arg7: memref<16x128xf32, #tpu.memory_space<vmem>>) attributes {dimension_semantics = [#tpu.dimension_semantics<parallel>, #tpu.dimension_semantics<parallel>, #tpu.dimension_semantics<arbitrary>], iteration_bounds = array<i64: 1, 1, 1>, scalar_prefetch = 0 : i64, scratch_operands = 1 : i64, tpu.core_type = #tpu.core_type<tc>, window_params = [{transform_indices = @transform_0, window_bounds = array<i64: 16, 16>}, {transform_indices = @transform_1, window_bounds = array<i64: 16, 128>}, {transform_indices = @transform_2, window_bounds = array<i64: 1, 128>}, {transform_indices = @transform_3, window_bounds = array<i64: 16, 128>}]} {
    %c0_i32 = arith.constant 0 : i32
    %0 = arith.cmpi eq, %arg2, %c0_i32 : i32
    %1 = arith.extui %0 : i1 to i32
    %c0_i32_0 = arith.constant 0 : i32
    %2 = arith.cmpi ne, %1, %c0_i32_0 : i32
    scf.if %2 {
      %cst_10 = arith.constant 0.000000e+00 : f32
      %12 = vector.broadcast %cst_10 : f32 to vector<16x128xf32>
      %c0_11 = arith.constant 0 : index
      %c0_12 = arith.constant 0 : index
      %13 = vector.load %arg7[%c0_11, %c0_12] : memref<16x128xf32, #tpu.memory_space<vmem>>, vector<16x128xf32>
      tpu.vector_store %arg7[%c0_11, %c0_12], %12 {strides = array<i32>} : memref<16x128xf32, #tpu.memory_space<vmem>>, vector<16x128xf32>,
    } else {
    }
    %c0 = arith.constant 0 : index
    %c0_1 = arith.constant 0 : index
    %3 = vector.load %arg7[%c0, %c0_1] : memref<16x128xf32, #tpu.memory_space<vmem>>, vector<16x128xf32>
    %c0_2 = arith.constant 0 : index
    %c0_3 = arith.constant 0 : index
    %4 = vector.load %arg3[%c0_2, %c0_3] : memref<16x16xbf16, #tpu.memory_space<vmem>>, vector<16x16xbf16>
    %c0_4 = arith.constant 0 : index
    %c0_5 = arith.constant 0 : index
    %5 = vector.load %arg4[%c0_4, %c0_5] : memref<16x128xbf16, #tpu.memory_space<vmem>>, vector<16x128xbf16>
    %cst = arith.constant dense<0.000000e+00> : vector<16x128xf32>
    %6 = tpu.matmul %4, %5, %cst {dimension_numbers = #tpu.dot_dimension_numbers<[1], [0], [0], [1], [0, 0, 1, 1], [], []>} : vector<16x16xbf16>, vector<16x128xbf16>, vector<16x128xf32> -> vector<16x128xf32>
    %7 = arith.addf %3, %6 : vector<16x128xf32>
    %c0_6 = arith.constant 0 : index
    %c0_7 = arith.constant 0 : index
    %8 = vector.load %arg7[%c0_6, %c0_7] : memref<16x128xf32, #tpu.memory_space<vmem>>, vector<16x128xf32>
    tpu.vector_store %arg7[%c0_6, %c0_7], %7 {strides = array<i32>} : memref<16x128xf32, #tpu.memory_space<vmem>>, vector<16x128xf32>,
    %c0_i32_8 = arith.constant 0 : i32
    %9 = arith.cmpi eq, %arg2, %c0_i32_8 : i32
    %10 = arith.extui %9 : i1 to i32
    %c0_i32_9 = arith.constant 0 : i32
    %11 = arith.cmpi ne, %10, %c0_i32_9 : i32
    scf.if %11 {
      %c0_10 = arith.constant 0 : index
      %c0_11 = arith.constant 0 : index
      %12 = vector.load %arg7[%c0_10, %c0_11] : memref<16x128xf32, #tpu.memory_space<vmem>>, vector<16x128xf32>
      %c0_12 = arith.constant 0 : index
      %c0_13 = arith.constant 0 : index
      %13 = vector.load %arg5[%c0_12, %c0_13] : memref<1x128xf32, #tpu.memory_space<vmem>>, vector<1x128xf32>
      %14 = vector.broadcast %13 : vector<1x128xf32> to vector<16x128xf32>
      %15 = arith.addf %12, %14 : vector<16x128xf32>
      %c0_14 = arith.constant 0 : index
      %c0_15 = arith.constant 0 : index
      %16 = vector.load %arg6[%c0_14, %c0_15] : memref<16x128xf32, #tpu.memory_space<vmem>>, vector<16x128xf32>
      tpu.vector_store %arg6[%c0_14, %c0_15], %15 {strides = array<i32>} : memref<16x128xf32, #tpu.memory_space<vmem>>, vector<16x128xf32>,
    } else {
    }
    return
  }
  func.func @transform_0(%arg0: i32, %arg1: i32, %arg2: i32) -> (i32, i32) {
    %c0_i32 = arith.constant 0 : i32
    return %arg0, %arg2 : i32, i32
  }
  func.func @transform_1(%arg0: i32, %arg1: i32, %arg2: i32) -> (i32, i32) {
    %c0_i32 = arith.constant 0 : i32
    return %arg2, %arg1 : i32, i32
  }
  func.func @transform_2(%arg0: i32, %arg1: i32, %arg2: i32) -> (i32, i32) {
    %c0_i32 = arith.constant 0 : i32
    %c0_i32_0 = arith.constant 0 : i32
    return %c0_i32, %arg1 : i32, i32
  }
  func.func @transform_3(%arg0: i32, %arg1: i32, %arg2: i32) -> (i32, i32) {
    %c0_i32 = arith.constant 0 : i32
    return %arg0, %arg1 : i32, i32
  }
}

module attributes {stable_mosaic.version = 11 : i64} {
  func.func @_attention_kernel(%arg0: i32, %arg1: memref<1x4x8x4xf32, #tpu.memory_space<vmem>>, %arg2: memref<1x4x8x4xf32, #tpu.memory_space<vmem>>, %arg3: memref<1x4x8x4xf32, #tpu.memory_space<vmem>>, %arg4: memref<1x4x8x4xf32, #tpu.memory_space<vmem>>) attributes {dimension_semantics = [#tpu.dimension_semantics<parallel>], iteration_bounds = array<i64: 2>, scalar_prefetch = 0 : i64, scratch_operands = 0 : i64, tpu.core_type = #tpu.core_type<tc>, window_params = [{transform_indices = @transform_0, window_bounds = array<i64: 1, 4, 8, 4>}, {transform_indices = @transform_1, window_bounds = array<i64: 1, 4, 8, 4>}, {transform_indices = @transform_2, window_bounds = array<i64: 1, 4, 8, 4>}, {transform_indices = @transform_3, window_bounds = array<i64: 1, 4, 8, 4>}]} {
    %c0 = arith.constant 0 : index
    %c0_0 = arith.constant 0 : index
    %c0_1 = arith.constant 0 : index
    %c0_2 = arith.constant 0 : index
    %0 = vector.load %arg1[%c0, %c0_0, %c0_1, %c0_2] : memref<1x4x8x4xf32, #tpu.memory_space<vmem>>, vector<1x4x8x4xf32>
    %1 = vector.shape_cast %0 : vector<1x4x8x4xf32> to vector<4x8x4xf32>
    %c0_3 = arith.constant 0 : index
    %c0_4 = arith.constant 0 : index
    %c0_5 = arith.constant 0 : index
    %c0_6 = arith.constant 0 : index
    %2 = vector.load %arg2[%c0_3, %c0_4, %c0_5, %c0_6] : memref<1x4x8x4xf32, #tpu.memory_space<vmem>>, vector<1x4x8x4xf32>
    %3 = vector.shape_cast %2 : vector<1x4x8x4xf32> to vector<4x8x4xf32>
    %c0_7 = arith.constant 0 : index
    %c0_8 = arith.constant 0 : index
    %c0_9 = arith.constant 0 : index
    %c0_10 = arith.constant 0 : index
    %4 = vector.load %arg3[%c0_7, %c0_8, %c0_9, %c0_10] : memref<1x4x8x4xf32, #tpu.memory_space<vmem>>, vector<1x4x8x4xf32>
    %5 = vector.shape_cast %4 : vector<1x4x8x4xf32> to vector<4x8x4xf32>
    "tpu.trace_start"() <{level = 10 : i32, message = "hqd,hkd->hqk"}> : () -> ()
    %cst = arith.constant dense<0.000000e+00> : vector<4x8x8xf32>
    %6 = tpu.matmul %1, %3, %cst {dimension_numbers = #tpu.dot_dimension_numbers<[2], [2], [1], [1], [0, 0, 0, 1, 1, 1], [0], [0]>} : vector<4x8x4xf32>, vector<4x8x4xf32>, vector<4x8x8xf32> -> vector<4x8x8xf32>
    "tpu.trace_stop"() : () -> ()
    %cst_11 = arith.constant 5.000000e-01 : f32
    %7 = vector.broadcast %cst_11 : f32 to vector<4x8x8xf32>
    %8 = arith.mulf %6, %7 : vector<4x8x8xf32>
    %9 = tpu.iota {dimensions = array<i32: 0>} : vector<8x8xi32>
    %10 = tpu.iota {dimensions = array<i32: 1>} : vector<8x8xi32>
    %11 = arith.cmpi sgt, %10, %9 : vector<8x8xi32>
    %12 = vector.shape_cast %11 : vector<8x8xi1> to vector<1x8x8xi1>
    %cst_12 = arith.constant -1.000000e+30 : f32
    %13 = vector.shape_cast %12 : vector<1x8x8xi1> to vector<1x8x8xi1>
    %14 = vector.broadcast %13 : vector<1x8x8xi1> to vector<4x8x8xi1>
    %15 = vector.broadcast %cst_12 : f32 to vector<4x8x8xf32>
    %16 = arith.select %14, %15, %8 : vector<4x8x8xi1>, vector<4x8x8xf32>
    %cst_13 = arith.constant dense<0xFF800000> : vector<4x8xf32>
    %17 = vector.multi_reduction <maximumf>, %16, %cst_13 [2] : vector<4x8x8xf32> to vector<4x8xf32>
    %18 = vector.shape_cast %17 : vector<4x8xf32> to vector<4x8x1xf32>
    %19 = vector.broadcast %18 : vector<4x8x1xf32> to vector<4x8x8xf32>
    %20 = arith.subf %16, %19 : vector<4x8x8xf32>
    %21 = math.exp %20 : vector<4x8x8xf32>
    %cst_14 = arith.constant dense<0.000000e+00> : vector<4x8xf32>
    %22 = vector.multi_reduction <add>, %21, %cst_14 [2] : vector<4x8x8xf32> to vector<4x8xf32>
    %23 = vector.shape_cast %22 : vector<4x8xf32> to vector<4x8x1xf32>
    %24 = tpu.reciprocal %23 {approx = true} : vector<4x8x1xf32> -> vector<4x8x1xf32>
    %25 = vector.broadcast %24 : vector<4x8x1xf32> to vector<4x8x8xf32>
    %26 = arith.mulf %21, %25 : vector<4x8x8xf32>
    "tpu.trace_start"() <{level = 10 : i32, message = "hqk,hkd->hqd"}> : () -> ()
    %cst_15 = arith.constant dense<0.000000e+00> : vector<4x8x4xf32>
    %27 = tpu.matmul %26, %5, %cst_15 {dimension_numbers = #tpu.dot_dimension_numbers<[2], [1], [1], [2], [0, 0, 0, 1, 1, 2], [0], [0]>} : vector<4x8x8xf32>, vector<4x8x4xf32>, vector<4x8x4xf32> -> vector<4x8x4xf32>
    "tpu.trace_stop"() : () -> ()
    %c0_16 = arith.constant 0 : index
    %c0_17 = arith.constant 0 : index
    %c0_18 = arith.constant 0 : index
    %c0_19 = arith.constant 0 : index
    %28 = vector.load %arg4[%c0_16, %c0_17, %c0_18, %c0_19] : memref<1x4x8x4xf32, #tpu.memory_space<vmem>>, vector<1x4x8x4xf32>
    %29 = vector.shape_cast %28 : vector<1x4x8x4xf32> to vector<4x8x4xf32>
    %30 = vector.shape_cast %27 : vector<4x8x4xf32> to vector<1x4x8x4xf32>
    tpu.vector_store %arg4[%c0_16, %c0_17, %c0_18, %c0_19], %30 {strides = array<i32>} : memref<1x4x8x4xf32, #tpu.memory_space<vmem>>, vector<1x4x8x4xf32>,
    return
  }
  func.func @transform_0(%arg0: i32) -> (i32, i32, i32, i32) {
    %c0_i32 = arith.constant 0 : i32
    %c0_i32_0 = arith.constant 0 : i32
    %c0_i32_1 = arith.constant 0 : i32
    %c0_i32_2 = arith.constant 0 : i32
    return %arg0, %c0_i32, %c0_i32_0, %c0_i32_1 : i32, i32, i32, i32
  }
  func.func @transform_1(%arg0: i32) -> (i32, i32, i32, i32) {
    %c0_i32 = arith.constant 0 : i32
    %c0_i32_0 = arith.constant 0 : i32
    %c0_i32_1 = arith.constant 0 : i32
    %c0_i32_2 = arith.constant 0 : i32
    return %arg0, %c0_i32, %c0_i32_0, %c0_i32_1 : i32, i32, i32, i32
  }
  func.func @transform_2(%arg0: i32) -> (i32, i32, i32, i32) {
    %c0_i32 = arith.constant 0 : i32
    %c0_i32_0 = arith.constant 0 : i32
    %c0_i32_1 = arith.constant 0 : i32
    %c0_i32_2 = arith.constant 0 : i32
    return %arg0, %c0_i32, %c0_i32_0, %c0_i32_1 : i32, i32, i32, i32
  }
  func.func @transform_3(%arg0: i32) -> (i32, i32, i32, i32) {
    %c0_i32 = arith.constant 0 : i32
    %c0_i32_0 = arith.constant 0 : i32
    %c0_i32_1 = arith.constant 0 : i32
    %c0_i32_2 = arith.constant 0 : i32
    return %arg0, %c0_i32, %c0_i32_0, %c0_i32_1 : i32, i32, i32, i32
  }
}

module attributes {stable_mosaic.version = 11 : i64} {
  func.func @_add_ln_kernel(%arg0: i32, %arg1: memref<16x16xf32, #tpu.memory_space<vmem>>, %arg2: memref<16x16xf32, #tpu.memory_space<vmem>>, %arg3: memref<1x16xf32, #tpu.memory_space<vmem>>, %arg4: memref<1x16xf32, #tpu.memory_space<vmem>>, %arg5: memref<16x16xf32, #tpu.memory_space<vmem>>) attributes {dimension_semantics = [#tpu.dimension_semantics<parallel>], iteration_bounds = array<i64: 1>, scalar_prefetch = 0 : i64, scratch_operands = 0 : i64, tpu.core_type = #tpu.core_type<tc>, window_params = [{transform_indices = @transform_0, window_bounds = array<i64: 16, 16>}, {transform_indices = @transform_1, window_bounds = array<i64: 16, 16>}, {pipeline_mode = #tpu.pipeline_mode<synchronous>, transform_indices = @transform_2, window_bounds = array<i64: 1, 16>}, {pipeline_mode = #tpu.pipeline_mode<synchronous>, transform_indices = @transform_3, window_bounds = array<i64: 1, 16>}, {transform_indices = @transform_4, window_bounds = array<i64: 16, 16>}]} {
    %c0 = arith.constant 0 : index
    %c0_0 = arith.constant 0 : index
    %0 = vector.load %arg1[%c0, %c0_0] : memref<16x16xf32, #tpu.memory_space<vmem>>, vector<16x16xf32>
    %c0_1 = arith.constant 0 : index
    %c0_2 = arith.constant 0 : index
    %1 = vector.load %arg2[%c0_1, %c0_2] : memref<16x16xf32, #tpu.memory_space<vmem>>, vector<16x16xf32>
    %2 = arith.addf %0, %1 : vector<16x16xf32>
    %cst = arith.constant dense<0.000000e+00> : vector<16xf32>
    %3 = vector.multi_reduction <add>, %2, %cst [1] : vector<16x16xf32> to vector<16xf32>
    %4 = vector.shape_cast %3 : vector<16xf32> to vector<16x1xf32>
    %cst_3 = arith.constant 1.600000e+01 : f32
    %5 = vector.broadcast %cst_3 : f32 to vector<16x1xf32>
    %6 = arith.divf %4, %5 : vector<16x1xf32>
    %7 = vector.broadcast %6 : vector<16x1xf32> to vector<16x16xf32>
    %8 = arith.subf %2, %7 : vector<16x16xf32>
    %9 = arith.mulf %8, %8 : vector<16x16xf32>
    %cst_4 = arith.constant dense<0.000000e+00> : vector<16xf32>
    %10 = vector.multi_reduction <add>, %9, %cst_4 [1] : vector<16x16xf32> to vector<16xf32>
    %11 = vector.shape_cast %10 : vector<16xf32> to vector<16x1xf32>
    %cst_5 = arith.constant 1.600000e+01 : f32
    %12 = vector.broadcast %cst_5 : f32 to vector<16x1xf32>
    %13 = arith.divf %11, %12 : vector<16x1xf32>
    %14 = vector.broadcast %6 : vector<16x1xf32> to vector<16x16xf32>
    %15 = arith.subf %2, %14 : vector<16x16xf32>
    %cst_6 = arith.constant 9.99999974E-6 : f32
    %16 = vector.broadcast %cst_6 : f32 to vector<16x1xf32>
    %17 = arith.addf %13, %16 : vector<16x1xf32>
    %18 = math.rsqrt %17 : vector<16x1xf32>
    %19 = vector.broadcast %18 : vector<16x1xf32> to vector<16x16xf32>
    %20 = arith.mulf %15, %19 : vector<16x16xf32>
    %c0_7 = arith.constant 0 : index
    %c0_8 = arith.constant 0 : index
    %21 = vector.load %arg3[%c0_7, %c0_8] : memref<1x16xf32, #tpu.memory_space<vmem>>, vector<1x16xf32>
    %22 = vector.broadcast %21 : vector<1x16xf32> to vector<16x16xf32>
    %23 = arith.mulf %20, %22 : vector<16x16xf32>
    %c0_9 = arith.constant 0 : index
    %c0_10 = arith.constant 0 : index
    %24 = vector.load %arg4[%c0_9, %c0_10] : memref<1x16xf32, #tpu.memory_space<vmem>>, vector<1x16xf32>
    %25 = vector.broadcast %24 : vector<1x16xf32> to vector<16x16xf32>
    %26 = arith.addf %23, %25 : vector<16x16xf32>
    %c0_11 = arith.constant 0 : index
    %c0_12 = arith.constant 0 : index
    %27 = vector.load %arg5[%c0_11, %c0_12] : memref<16x16xf32, #tpu.memory_space<vmem>>, vector<16x16xf32>
    tpu.vector_store %arg5[%c0_11, %c0_12], %26 {strides = array<i32>} : memref<16x16xf32, #tpu.memory_space<vmem>>, vector<16x16xf32>,
    return
  }
  func.func @transform_0(%arg0: i32) -> (i32, i32) {
    %c0_i32 = arith.constant 0 : i32
    %c0_i32_0 = arith.constant 0 : i32
    return %arg0, %c0_i32 : i32, i32
  }
  func.func @transform_1(%arg0: i32) -> (i32, i32) {
    %c0_i32 = arith.constant 0 : i32
    %c0_i32_0 = arith.constant 0 : i32
    return %arg0, %c0_i32 : i32, i32
  }
  func.func @transform_2(%arg0: i32) -> (i32, i32) {
    %c0_i32 = arith.constant 0 : i32
    %c0_i32_0 = arith.constant 0 : i32
    %c0_i32_1 = arith.constant 0 : i32
    return %c0_i32, %c0_i32_0 : i32, i32
  }
  func.func @transform_3(%arg0: i32) -> (i32, i32) {
    %c0_i32 = arith.constant 0 : i32
    %c0_i32_0 = arith.constant 0 : i32
    %c0_i32_1 = arith.constant 0 : i32
    return %c0_i32, %c0_i32_0 : i32, i32
  }
  func.func @transform_4(%arg0: i32) -> (i32, i32) {
    %c0_i32 = arith.constant 0 : i32
    %c0_i32_0 = arith.constant 0 : i32
    return %arg0, %c0_i32 : i32, i32
  }
}

module attributes {stable_mosaic.version = 11 : i64} {
  func.func @_matmul_bias_kernel(%arg0: i32, %arg1: i32, %arg2: i32, %arg3: memref<16x16xbf16, #tpu.memory_space<vmem>>, %arg4: memref<16x128xbf16, #tpu.memory_space<vmem>>, %arg5: memref<1x128xf32, #tpu.memory_space<vmem>>, %arg6: memref<16x128xf32, #tpu.memory_space<vmem>>, %arg7: memref<16x128xf32, #tpu.memory_space<vmem>>) attributes {dimension_semantics = [#tpu.dimension_semantics<parallel>, #tpu.dimension_semantics<parallel>, #tpu.dimension_semantics<arbitrary>], iteration_bounds = array<i64: 1, 1, 1>, scalar_prefetch = 0 : i64, scratch_operands = 1 : i64, tpu.core_type = #tpu.core_type<tc>, window_params = [{transform_indices = @transform_0, window_bounds = array<i64: 16, 16>}, {transform_indices = @transform_1, window_bounds = array<i64: 16, 128>}, {transform_indices = @transform_2, window_bounds = array<i64: 1, 128>}, {transform_indices = @transform_3, window_bounds = array<i64: 16, 128>}]} {
    %c0_i32 = arith.constant 0 : i32
    %0 = arith.cmpi eq, %arg2, %c0_i32 : i32
    %1 = arith.extui %0 : i1 to i32
    %c0_i32_0 = arith.constant 0 : i32
    %2 = arith.cmpi ne, %1, %c0_i32_0 : i32
    scf.if %2 {
      %cst_10 = arith.constant 0.000000e+00 : f32
      %12 = vector.broadcast %cst_10 : f32 to vector<16x128xf32>
      %c0_11 = arith.constant 0 : index
      %c0_12 = arith.constant 0 : index
      %13 = vector.load %arg7[%c0_11, %c0_12] : memref<16x128xf32, #tpu.memory_space<vmem>>, vector<16x128xf32>
      tpu.vector_store %arg7[%c0_11, %c0_12], %12 {strides = array<i32>} : memref<16x128xf32, #tpu.memory_space<vmem>>, vector<16x128xf32>,
    } else {
    }
    %c0 = arith.constant 0 : index
    %c0_1 = arith.constant 0 : index
    %3 = vector.load %arg7[%c0, %c0_1] : memref<16x128xf32, #tpu.memory_space<vmem>>, vector<16x128xf32>
    %c0_2 = arith.constant 0 : index
    %c0_3 = arith.constant 0 : index
    %4 = vector.load %arg3[%c0_2, %c0_3] : memref<16x16xbf16, #tpu.memory_space<vmem>>, vector<16x16xbf16>
    %c0_4 = arith.constant 0 : index
    %c0_5 = arith.constant 0 : index
    %5 = vector.load %arg4[%c0_4, %c0_5] : memref<16x128xbf16, #tpu.memory_space<vmem>>, vector<16x128xbf16>
    %cst = arith.constant dense<0.000000e+00> : vector<16x128xf32>
    %6 = tpu.matmul %4, %5, %cst {dimension_numbers = #tpu.dot_dimension_numbers<[1], [0], [0], [1], [0, 0, 1, 1], [], []>} : vector<16x16xbf16>, vector<16x128xbf16>, vector<16x128xf32> -> vector<16x128xf32>
    %7 = arith.addf %3, %6 : vector<16x128xf32>
    %c0_6 = arith.constant 0 : index
    %c0_7 = arith.constant 0 : index
    %8 = vector.load %arg7[%c0_6, %c0_7] : memref<16x128xf32, #tpu.memory_space<vmem>>, vector<16x128xf32>
    tpu.vector_store %arg7[%c0_6, %c0_7], %7 {strides = array<i32>} : memref<16x128xf32, #tpu.memory_space<vmem>>, vector<16x128xf32>,
    %c0_i32_8 = arith.constant 0 : i32
    %9 = arith.cmpi eq, %arg2, %c0_i32_8 : i32
    %10 = arith.extui %9 : i1 to i32
    %c0_i32_9 = arith.constant 0 : i32
    %11 = arith.cmpi ne, %10, %c0_i32_9 : i32
    scf.if %11 {
      %c0_10 = arith.constant 0 : index
      %c0_11 = arith.constant 0 : index
      %12 = vector.load %arg7[%c0_10, %c0_11] : memref<16x128xf32, #tpu.memory_space<vmem>>, vector<16x128xf32>
      %c0_12 = arith.constant 0 : index
      %c0_13 = arith.constant 0 : index
      %13 = vector.load %arg5[%c0_12, %c0_13] : memref<1x128xf32, #tpu.memory_space<vmem>>, vector<1x128xf32>
      %14 = vector.broadcast %13 : vector<1x128xf32> to vector<16x128xf32>
      %15 = arith.addf %12, %14 : vector<16x128xf32>
      %cst_14 = arith.constant 0.000000e+00 : f32
      %16 = vector.broadcast %cst_14 : f32 to vector<16x128xf32>
      %17 = arith.maximumf %15, %16 : vector<16x128xf32>
      %c0_15 = arith.constant 0 : index
      %c0_16 = arith.constant 0 : index
      %18 = vector.load %arg6[%c0_15, %c0_16] : memref<16x128xf32, #tpu.memory_space<vmem>>, vector<16x128xf32>
      tpu.vector_store %arg6[%c0_15, %c0_16], %17 {strides = array<i32>} : memref<16x128xf32, #tpu.memory_space<vmem>>, vector<16x128xf32>,
    } else {
    }
    return
  }
  func.func @transform_0(%arg0: i32, %arg1: i32, %arg2: i32) -> (i32, i32) {
    %c0_i32 = arith.constant 0 : i32
    return %arg0, %arg2 : i32, i32
  }
  func.func @transform_1(%arg0: i32, %arg1: i32, %arg2: i32) -> (i32, i32) {
    %c0_i32 = arith.constant 0 : i32
    return %arg2, %arg1 : i32, i32
  }
  func.func @transform_2(%arg0: i32, %arg1: i32, %arg2: i32) -> (i32, i32) {
    %c0_i32 = arith.constant 0 : i32
    %c0_i32_0 = arith.constant 0 : i32
    return %c0_i32, %arg1 : i32, i32
  }
  func.func @transform_3(%arg0: i32, %arg1: i32, %arg2: i32) -> (i32, i32) {
    %c0_i32 = arith.constant 0 : i32
    return %arg0, %arg1 : i32, i32
  }
}

module attributes {stable_mosaic.version = 11 : i64} {
  func.func @_attention_kernel(%arg0: i32, %arg1: memref<1x4x8x4xf32, #tpu.memory_space<vmem>>, %arg2: memref<1x4x6x4xf32, #tpu.memory_space<vmem>>, %arg3: memref<1x4x6x4xf32, #tpu.memory_space<vmem>>, %arg4: memref<1x4x8x4xf32, #tpu.memory_space<vmem>>) attributes {dimension_semantics = [#tpu.dimension_semantics<parallel>], iteration_bounds = array<i64: 2>, scalar_prefetch = 0 : i64, scratch_operands = 0 : i64, tpu.core_type = #tpu.core_type<tc>, window_params = [{transform_indices = @transform_0, window_bounds = array<i64: 1, 4, 8, 4>}, {transform_indices = @transform_1, window_bounds = array<i64: 1, 4, 6, 4>}, {transform_indices = @transform_2, window_bounds = array<i64: 1, 4, 6, 4>}, {transform_indices = @transform_3, window_bounds = array<i64: 1, 4, 8, 4>}]} {
    %c0 = arith.constant 0 : index
    %c0_0 = arith.constant 0 : index
    %c0_1 = arith.constant 0 : index
    %c0_2 = arith.constant 0 : index
    %0 = vector.load %arg1[%c0, %c0_0, %c0_1, %c0_2] : memref<1x4x8x4xf32, #tpu.memory_space<vmem>>, vector<1x4x8x4xf32>
    %1 = vector.shape_cast %0 : vector<1x4x8x4xf32> to vector<4x8x4xf32>
    %c0_3 = arith.constant 0 : index
    %c0_4 = arith.constant 0 : index
    %c0_5 = arith.constant 0 : index
    %c0_6 = arith.constant 0 : index
    %2 = vector.load %arg2[%c0_3, %c0_4, %c0_5, %c0_6] : memref<1x4x6x4xf32, #tpu.memory_space<vmem>>, vector<1x4x6x4xf32>
    %3 = vector.shape_cast %2 : vector<1x4x6x4xf32> to vector<4x6x4xf32>
    %c0_7 = arith.constant 0 : index
    %c0_8 = arith.constant 0 : index
    %c0_9 = arith.constant 0 : index
    %c0_10 = arith.constant 0 : index
    %4 = vector.load %arg3[%c0_7, %c0_8, %c0_9, %c0_10] : memref<1x4x6x4xf32, #tpu.memory_space<vmem>>, vector<1x4x6x4xf32>
    %5 = vector.shape_cast %4 : vector<1x4x6x4xf32> to vector<4x6x4xf32>
    "tpu.trace_start"() <{level = 10 : i32, message = "hqd,hkd->hqk"}> : () -> ()
    %cst = arith.constant dense<0.000000e+00> : vector<4x8x6xf32>
    %6 = tpu.matmul %1, %3, %cst {dimension_numbers = #tpu.dot_dimension_numbers<[2], [2], [1], [1], [0, 0, 0, 1, 1, 1], [0], [0]>} : vector<4x8x4xf32>, vector<4x6x4xf32>, vector<4x8x6xf32> -> vector<4x8x6xf32>
    "tpu.trace_stop"() : () -> ()
    %cst_11 = arith.constant 5.000000e-01 : f32
    %7 = vector.broadcast %cst_11 : f32 to vector<4x8x6xf32>
    %8 = arith.mulf %6, %7 : vector<4x8x6xf32>
    %cst_12 = arith.constant dense<0xFF800000> : vector<4x8xf32>
    %9 = vector.multi_reduction <maximumf>, %8, %cst_12 [2] : vector<4x8x6xf32> to vector<4x8xf32>
    %10 = vector.shape_cast %9 : vector<4x8xf32> to vector<4x8x1xf32>
    %11 = vector.broadcast %10 : vector<4x8x1xf32> to vector<4x8x6xf32>
    %12 = arith.subf %8, %11 : vector<4x8x6xf32>
    %13 = math.exp %12 : vector<4x8x6xf32>
    %cst_13 = arith.constant dense<0.000000e+00> : vector<4x8xf32>
    %14 = vector.multi_reduction <add>, %13, %cst_13 [2] : vector<4x8x6xf32> to vector<4x8xf32>
    %15 = vector.shape_cast %14 : vector<4x8xf32> to vector<4x8x1xf32>
    %16 = tpu.reciprocal %15 {approx = true} : vector<4x8x1xf32> -> vector<4x8x1xf32>
    %17 = vector.broadcast %16 : vector<4x8x1xf32> to vector<4x8x6xf32>
    %18 = arith.mulf %13, %17 : vector<4x8x6xf32>
    "tpu.trace_start"() <{level = 10 : i32, message = "hqk,hkd->hqd"}> : () -> ()
    %cst_14 = arith.constant dense<0.000000e+00> : vector<4x8x4xf32>
    %19 = tpu.matmul %18, %5, %cst_14 {dimension_numbers = #tpu.dot_dimension_numbers<[2], [1], [1], [2], [0, 0, 0, 1, 1, 2], [0], [0]>} : vector<4x8x6xf32>, vector<4x6x4xf32>, vector<4x8x4xf32> -> vector<4x8x4xf32>
    "tpu.trace_stop"() : () -> ()
    %c0_15 = arith.constant 0 : index
    %c0_16 = arith.constant 0 : index
    %c0_17 = arith.constant 0 : index
    %c0_18 = arith.constant 0 : index
    %20 = vector.load %arg4[%c0_15, %c0_16, %c0_17, %c0_18] : memref<1x4x8x4xf32, #tpu.memory_space<vmem>>, vector<1x4x8x4xf32>
    %21 = vector.shape_cast %20 : vector<1x4x8x4xf32> to vector<4x8x4xf32>
    %22 = vector.shape_cast %19 : vector<4x8x4xf32> to vector<1x4x8x4xf32>
    tpu.vector_store %arg4[%c0_15, %c0_16, %c0_17, %c0_18], %22 {strides = array<i32>} : memref<1x4x8x4xf32, #tpu.memory_space<vmem>>, vector<1x4x8x4xf32>,
    return
  }
  func.func @transform_0(%arg0: i32) -> (i32, i32, i32, i32) {
    %c0_i32 = arith.constant 0 : i32
    %c0_i32_0 = arith.constant 0 : i32
    %c0_i32_1 = arith.constant 0 : i32
    %c0_i32_2 = arith.constant 0 : i32
    return %arg0, %c0_i32, %c0_i32_0, %c0_i32_1 : i32, i32, i32, i32
  }
  func.func @transform_1(%arg0: i32) -> (i32, i32, i32, i32) {
    %c0_i32 = arith.constant 0 : i32
    %c0_i32_0 = arith.constant 0 : i32
    %c0_i32_1 = arith.constant 0 : i32
    %c0_i32_2 = arith.constant 0 : i32
    return %arg0, %c0_i32, %c0_i32_0, %c0_i32_1 : i32, i32, i32, i32
  }
  func.func @transform_2(%arg0: i32) -> (i32, i32, i32, i32) {
    %c0_i32 = arith.constant 0 : i32
    %c0_i32_0 = arith.constant 0 : i32
    %c0_i32_1 = arith.constant 0 : i32
    %c0_i32_2 = arith.constant 0 : i32
    return %arg0, %c0_i32, %c0_i32_0, %c0_i32_1 : i32, i32, i32, i32
  }
  func.func @transform_3(%arg0: i32) -> (i32, i32, i32, i32) {
    %c0_i32 = arith.constant 0 : i32
    %c0_i32_0 = arith.constant 0 : i32
    %c0_i32_1 = arith.constant 0 : i32
    %c0_i32_2 = arith.constant 0 : i32
    return %arg0, %c0_i32, %c0_i32_0, %c0_i32_1 : i32, i32, i32, i32
  }
}

module attributes {stable_mosaic.version = 11 : i64} {
  func.func @_matmul_bias_kernel(%arg0: i32, %arg1: i32, %arg2: i32, %arg3: memref<16x32xbf16, #tpu.memory_space<vmem>>, %arg4: memref<32x128xbf16, #tpu.memory_space<vmem>>, %arg5: memref<1x128xf32, #tpu.memory_space<vmem>>, %arg6: memref<16x128xf32, #tpu.memory_space<vmem>>, %arg7: memref<16x128xf32, #tpu.memory_space<vmem>>) attributes {dimension_semantics = [#tpu.dimension_semantics<parallel>, #tpu.dimension_semantics<parallel>, #tpu.dimension_semantics<arbitrary>], iteration_bounds = array<i64: 1, 1, 1>, scalar_prefetch = 0 : i64, scratch_operands = 1 : i64, tpu.core_type = #tpu.core_type<tc>, window_params = [{transform_indices = @transform_0, window_bounds = array<i64: 16, 32>}, {transform_indices = @transform_1, window_bounds = array<i64: 32, 128>}, {transform_indices = @transform_2, window_bounds = array<i64: 1, 128>}, {transform_indices = @transform_3, window_bounds = array<i64: 16, 128>}]} {
    %c0_i32 = arith.constant 0 : i32
    %0 = arith.cmpi eq, %arg2, %c0_i32 : i32
    %1 = arith.extui %0 : i1 to i32
    %c0_i32_0 = arith.constant 0 : i32
    %2 = arith.cmpi ne, %1, %c0_i32_0 : i32
    scf.if %2 {
      %cst_10 = arith.constant 0.000000e+00 : f32
      %12 = vector.broadcast %cst_10 : f32 to vector<16x128xf32>
      %c0_11 = arith.constant 0 : index
      %c0_12 = arith.constant 0 : index
      %13 = vector.load %arg7[%c0_11, %c0_12] : memref<16x128xf32, #tpu.memory_space<vmem>>, vector<16x128xf32>
      tpu.vector_store %arg7[%c0_11, %c0_12], %12 {strides = array<i32>} : memref<16x128xf32, #tpu.memory_space<vmem>>, vector<16x128xf32>,
    } else {
    }
    %c0 = arith.constant 0 : index
    %c0_1 = arith.constant 0 : index
    %3 = vector.load %arg7[%c0, %c0_1] : memref<16x128xf32, #tpu.memory_space<vmem>>, vector<16x128xf32>
    %c0_2 = arith.constant 0 : index
    %c0_3 = arith.constant 0 : index
    %4 = vector.load %arg3[%c0_2, %c0_3] : memref<16x32xbf16, #tpu.memory_space<vmem>>, vector<16x32xbf16>
    %c0_4 = arith.constant 0 : index
    %c0_5 = arith.constant 0 : index
    %5 = vector.load %arg4[%c0_4, %c0_5] : memref<32x128xbf16, #tpu.memory_space<vmem>>, vector<32x128xbf16>
    %cst = arith.constant dense<0.000000e+00> : vector<16x128xf32>
    %6 = tpu.matmul %4, %5, %cst {dimension_numbers = #tpu.dot_dimension_numbers<[1], [0], [0], [1], [0, 0, 1, 1], [], []>} : vector<16x32xbf16>, vector<32x128xbf16>, vector<16x128xf32> -> vector<16x128xf32>
    %7 = arith.addf %3, %6 : vector<16x128xf32>
    %c0_6 = arith.constant 0 : index
    %c0_7 = arith.constant 0 : index
    %8 = vector.load %arg7[%c0_6, %c0_7] : memref<16x128xf32, #tpu.memory_space<vmem>>, vector<16x128xf32>
    tpu.vector_store %arg7[%c0_6, %c0_7], %7 {strides = array<i32>} : memref<16x128xf32, #tpu.memory_space<vmem>>, vector<16x128xf32>,
    %c0_i32_8 = arith.constant 0 : i32
    %9 = arith.cmpi eq, %arg2, %c0_i32_8 : i32
    %10 = arith.extui %9 : i1 to i32
    %c0_i32_9 = arith.constant 0 : i32
    %11 = arith.cmpi ne, %10, %c0_i32_9 : i32
    scf.if %11 {
      %c0_10 = arith.constant 0 : index
      %c0_11 = arith.constant 0 : index
      %12 = vector.load %arg7[%c0_10, %c0_11] : memref<16x128xf32, #tpu.memory_space<vmem>>, vector<16x128xf32>
      %c0_12 = arith.constant 0 : index
      %c0_13 = arith.constant 0 : index
      %13 = vector.load %arg5[%c0_12, %c0_13] : memref<1x128xf32, #tpu.memory_space<vmem>>, vector<1x128xf32>
      %14 = vector.broadcast %13 : vector<1x128xf32> to vector<16x128xf32>
      %15 = arith.addf %12, %14 : vector<16x128xf32>
      %c0_14 = arith.constant 0 : index
      %c0_15 = arith.constant 0 : index
      %16 = vector.load %arg6[%c0_14, %c0_15] : memref<16x128xf32, #tpu.memory_space<vmem>>, vector<16x128xf32>
      tpu.vector_store %arg6[%c0_14, %c0_15], %15 {strides = array<i32>} : memref<16x128xf32, #tpu.memory_space<vmem>>, vector<16x128xf32>,
    } else {
    }
    return
  }
  func.func @transform_0(%arg0: i32, %arg1: i32, %arg2: i32) -> (i32, i32) {
    %c0_i32 = arith.constant 0 : i32
    return %arg0, %arg2 : i32, i32
  }
  func.func @transform_1(%arg0: i32, %arg1: i32, %arg2: i32) -> (i32, i32) {
    %c0_i32 = arith.constant 0 : i32
    return %arg2, %arg1 : i32, i32
  }
  func.func @transform_2(%arg0: i32, %arg1: i32, %arg2: i32) -> (i32, i32) {
    %c0_i32 = arith.constant 0 : i32
    %c0_i32_0 = arith.constant 0 : i32
    return %c0_i32, %arg1 : i32, i32
  }
  func.func @transform_3(%arg0: i32, %arg1: i32, %arg2: i32) -> (i32, i32) {
    %c0_i32 = arith.constant 0 : i32
    return %arg0, %arg1 : i32, i32
  }
}

</mosaic_0001>

<bundles_post_ra>
// kernel: conv_embedding_to_seq_fwd.51
= control target key start
LH: loop header
LB: loop body
LE: loop exit
PB: predicated region body
PF: predicated region fallthrough
CT: control target
= control target key end

     0   :  { %s1250_s12 = smov 0   ;;  %s1252_s13 = smov 0   ;;  %s1401_s0 = inlined_call_operand.vmem [shape: bf16[2048,48], index: 0, kind: input, shape index: {}]   ;;  %s1402_s1 = inlined_call_operand.vmem [shape: bf16[48,128], index: 1, kind: input, shape index: {}]   ;;  %s1403_s2 = inlined_call_operand.vmem [shape: f32[1,128], index: 2, kind: input, shape index: {}]   ;;  %s1404_s3 = inlined_call_operand.vmem [shape: f32[2048,128], index: 3, kind: output, shape index: {}]  }
   0x1   :  { %s1254_s14 = smov 0  }
   0x2 LB: > { %s32_s15 = sadd.s32 1, %s1224_s13  ;;  %p1057_p0 = scmp.ge.s32.totalorder %s1228_s14, 1  ;;  %s1228_s14 = sphi %s1254_s14, %s13_s14   ;;  %s1224_s13 = sphi %s1252_s13, %s1406_s13   ;;  %s1220_s12 = sphi %s1250_s12, %s1405_s12  }
   0x3   : > { %p34_p1 = scmp.ge.s32.totalorder %s32_s15, 8  ;;  %p188_p2 = scmp.lt.s32.totalorder %s1228_s14, 9 }
   0x5   : > { %s1408_s15 = smov (%p34_p1, %s32_s15), 0  ;;  %p189_p3 = pnand %p1057_p0, %p188_p2 }
   0x6   : > { %v1187_v0 = vld [vmem:[%s1402_s1] sm:$0xff] (!%p189_p3)   ;;  %s1058_s18 = sshll.u32 (!%p189_p3), %s1220_s12, 5  ;;  %v1188_v1 = vld [vmem:[%s1402_s1 + $0x8] sm:$0xff] (!%p189_p3)   ;;  %v1189_v2 = vld [vmem:[%s1402_s1 + $0x10] sm:$0xff] (!%p189_p3)   ;;  %vm464_vm0 = vcmask (!%p189_p3), 392192  }
   0x7   : > { %192 = sbr.rel (%p189_p3) target bundleno = 269 (0x10d), region = 32  ;;  %p230_p4 = scmp.lt.s32.totalorder (!%p189_p3), %s1058_s18, 255  ;;  %1119 = vmatprep.subr.bf16.mxu0 (!%p189_p3), %v1187_v0  ;;  %1157 = vmatprep.subr.bf16.mxu1 (!%p189_p3), %v1187_v0  ;;  %v1320_v19 = vld [vmem:[%s1403_s2] ss:$0 sm:$0xff] (!%p189_p3) }
   0x8   : > { %1120 = vmatpush3.bf16.msra.mxu0 (!%p189_p3), %v1187_v0  ;;  %1160 = vmatpush3.bf16.msra.mxu1 (!%p189_p3), %v1187_v0 }
   0x9   : > { %1121 = vmatprep.subr.bf16.mxu0 (!%p189_p3), %v1188_v1  ;;  %1158 = vmatprep.subr.bf16.mxu1 (!%p189_p3), %v1188_v1 }
   0xc   : > { %1122 = vmatpush3.bf16.msra.mxu0 (!%p189_p3), %v1188_v1  ;;  %1161 = vmatpush3.bf16.msra.mxu1 (!%p189_p3), %v1188_v1 }
   0xd   : > { %1123 = vmatprep.subr.bf16.mxu0 (!%p189_p3), %v1189_v2  ;;  %1159 = vmatprep.subr.bf16.mxu1 (!%p189_p3), %v1189_v2 }
   0xe   : > { %s1410_s18 = smov (!%p230_p4, %s1058_s18), 255 }
   0xf   : > { %s1059_s23 = sshll.u32 %s1410_s18, 2  ;;  %s1061_s29 = sshll.u32 %s1410_s18, 3 }
  0x10   : > { %s1283_s26 = scalar_lea.vmem %s1401_s0, %s1059_s23  ;;  %1124 = vmatpush3.bf16.msra.mxu0 %v1189_v2  ;;  %1162 = vmatpush3.bf16.msra.mxu1 %v1189_v2  ;;  %s1330_s5 = scalar_lea.vmem %s1404_s3, %s1061_s29 }
  0x11   : > { %v1190_v3 = vld [vmem:[%s1283_s26] sm:$0xff]   ;;  %v1192_v5 = vld [vmem:[%s1283_s26 + $0x8] sm:$0xff]   ;;  %v1194_v7 = vld [vmem:[%s1283_s26 + $0x10] sm:$0xff]  }
  0x12   : > { %v1191_v4 = vld [vmem:[%s1283_s26 + $0x40] sm:$0xff]   ;;  %1125 = vmatprep.mubr.msk.bf16.mxu0 %vm464_vm0, %v1190_v3  ;;  %v1193_v6 = vld [vmem:[%s1283_s26 + $0x48] sm:$0xff]   ;;  %v1195_v8 = vld [vmem:[%s1283_s26 + $0x50] sm:$0xff]  }
  0x13   : > { %1141 = vmatprep.mubr.msk.bf16.mxu1 %vm464_vm0, %v1191_v4  ;;  %1126 = vmatmul.mubr.msk.bf16.vlgmr.msra.gmra.mrb[0].mxu0 %vm464_vm0, %v1192_v5  ;;  %v1196_v9 = vld [vmem:[%s1283_s26 + $0x18] sm:$0xff]   ;;  %v1198_v11 = vld [vmem:[%s1283_s26 + $0x20] sm:$0xff]   ;;  %v1200_v13 = vld [vmem:[%s1283_s26 + $0x28] sm:$0xff]  }
  0x14   : > { %1142 = vmatmul.mubr.msk.bf16.vlgmr.msra.gmra.mrb[0].mxu1 %vm464_vm0, %v1193_v6  ;;  %1129 = vmatprep.mubr.msk.bf16.mxu0 %vm464_vm0, %v1194_v7  ;;  %v1197_v10 = vld [vmem:[%s1283_s26 + $0x58] sm:$0xff]   ;;  %v1199_v12 = vld [vmem:[%s1283_s26 + $0x60] sm:$0xff]   ;;  %v1201_v14 = vld [vmem:[%s1283_s26 + $0x68] sm:$0xff]  }
  0x15   : > { %1145 = vmatprep.mubr.msk.bf16.mxu1 %vm464_vm0, %v1195_v8  ;;  %v1202_v15 = vld [vmem:[%s1283_s26 + $0x30] sm:$0xff]   ;;  %v1204_v17 = vld [vmem:[%s1283_s26 + $0x38] sm:$0xff]  }
  0x16   : > { %v1203_v16 = vld [vmem:[%s1283_s26 + $0x70] sm:$0xff]   ;;  %v1205_v18 = vld [vmem:[%s1283_s26 + $0x78] sm:$0xff]  }
  0x1b   : > { %1130 = vmatmul.mubr.msk.bf16.gmra.mrb[4].mxu0 %vm464_vm0, %v1196_v9 }
  0x1c   : > { %1146 = vmatmul.mubr.msk.bf16.gmra.mrb[4].mxu1 %vm464_vm0, %v1197_v10  ;;  %1133 = vmatprep.mubr.msk.bf16.mxu0 %vm464_vm0, %v1198_v11 }
  0x1d   : > { %1149 = vmatprep.mubr.msk.bf16.mxu1 %vm464_vm0, %v1199_v12 }
  0x23   : > { %1134 = vmatmul.mubr.msk.bf16.gmra.mrb[8].mxu0 %vm464_vm0, %v1200_v13 }
  0x24   : > { %1150 = vmatmul.mubr.msk.bf16.gmra.mrb[8].mxu1 %vm464_vm0, %v1201_v14  ;;  %1137 = vmatprep.mubr.msk.bf16.mxu0 %vm464_vm0, %v1202_v15 }
  0x25   : > { %1153 = vmatprep.mubr.msk.bf16.mxu1 %vm464_vm0, %v1203_v16 }
  0x2b   : > { %1138 = vmatmul.mubr.msk.bf16.gmra.mrb[12].mxu0 %vm464_vm0, %v1204_v17 }
  0x2c   : > { %1154 = vmatmul.mubr.msk.bf16.gmra.mrb[12].mxu1 %vm464_vm0, %v1205_v18 }
  0xe6   : > { %v1127_v20 = vpop.f32.mrb[0].mxu0 }
  0xe7   : > { %v1143_v21 = vpop.f32.mrb[0].mxu1  ;;  %v782_v22 = vadd.f32 %v1127_v20, %v1320_v19  ;;  %v547_v24 = vpop.f32.mrb[1].mxu0 }
  0xe8   : > { %v798_v23 = vadd.f32 %v1143_v21, %v1320_v19  ;;  %v611_v25 = vpop.f32.mrb[1].mxu1  ;;  %v780_v26 = vadd.f32 %v1320_v19, %v547_v24  ;;  %v1128_v28 = vpop.f32.mrb[2].mxu0 }
  0xe9   : > { %v796_v27 = vadd.f32 %v1320_v19, %v611_v25  ;;  %v1144_v29 = vpop.f32.mrb[2].mxu1  ;;  %vm814_vm1 = vcmp.ge.f32.partialorder %v782_v22, 0.0  ;;  %v846_v30 = vmul.f32 0.01, %v782_v22  ;;  %v783_v36 = vadd.f32 %v1128_v28, %v1320_v19  ;;  %v550_v38 = vpop.f32.mrb[3].mxu0 }
  0xea   : > { %vm830_vm2 = vcmp.ge.f32.partialorder %v798_v23, 0.0  ;;  %v862_v31 = vmul.f32 0.01, %v798_v23  ;;  %vm812_vm3 = vcmp.ge.f32.partialorder %v780_v26, 0.0  ;;  %v844_v32 = vmul.f32 0.01, %v780_v26 }
  0xeb   : > { %vm828_vm4 = vcmp.ge.f32.partialorder %v796_v27, 0.0  ;;  %v860_v33 = vmul.f32 0.01, %v796_v27  ;;  %v878_v34 = vsel %vm814_vm1, %v782_v22, %v846_v30  ;;  %v799_v37 = vadd.f32 %v1144_v29, %v1320_v19  ;;  %v614_v39 = vpop.f32.mrb[3].mxu1 }
  0xec   : > { %v894_v35 = vsel %vm830_vm2, %v798_v23, %v862_v31  ;;  %910 = vst [vmem:[%s1330_s5 + $0x10] sm:$0xff] %v878_v34  ;;  %v876_v40 = vsel %vm812_vm3, %v780_v26, %v844_v32  ;;  %v781_v42 = vadd.f32 %v1320_v19, %v550_v38  ;;  %v797_v43 = vadd.f32 %v1320_v19, %v614_v39 }
  0xed   : > { %926 = vst [vmem:[%s1330_s5 + $0x90] sm:$0xff] %v894_v35  ;;  %v892_v41 = vsel %vm828_vm4, %v796_v27, %v860_v33  ;;  %908 = vst [vmem:[%s1330_s5] sm:$0xff] %v876_v40  ;;  %vm815_vm5 = vcmp.ge.f32.partialorder %v783_v36, 0.0  ;;  %v847_v44 = vmul.f32 0.01, %v783_v36  ;;  %vm831_vm6 = vcmp.ge.f32.partialorder %v799_v37, 0.0 }
  0xee   : > { %924 = vst [vmem:[%s1330_s5 + $0x80] sm:$0xff] %v892_v41  ;;  %v863_v45 = vmul.f32 0.01, %v799_v37  ;;  %vm813_vm7 = vcmp.ge.f32.partialorder %v781_v42, 0.0  ;;  %v845_v46 = vmul.f32 0.01, %v781_v42 }
  0xef   : > { %vm829_vm8 = vcmp.ge.f32.partialorder %v797_v43, 0.0  ;;  %v861_v47 = vmul.f32 0.01, %v797_v43  ;;  %v879_v48 = vsel %vm815_vm5, %v783_v36, %v847_v44  ;;  %v1131_v50 = vpop.f32.mrb[4].mxu0  ;;  %v1147_v51 = vpop.f32.mrb[4].mxu1 }
  0xf0   : > { %v895_v49 = vsel %vm831_vm6, %v799_v37, %v863_v45  ;;  %911 = vst [vmem:[%s1330_s5 + $0x18] sm:$0xff] %v879_v48  ;;  %v877_v52 = vsel %vm813_vm7, %v781_v42, %v845_v46  ;;  %v786_v54 = vadd.f32 %v1131_v50, %v1320_v19  ;;  %v802_v55 = vadd.f32 %v1147_v51, %v1320_v19  ;;  %v563_v56 = vpop.f32.mrb[5].mxu0  ;;  %v627_v57 = vpop.f32.mrb[5].mxu1 }
  0xf1   : > { %927 = vst [vmem:[%s1330_s5 + $0x98] sm:$0xff] %v895_v49  ;;  %v893_v53 = vsel %vm829_vm8, %v797_v43, %v861_v47  ;;  %909 = vst [vmem:[%s1330_s5 + $0x8] sm:$0xff] %v877_v52  ;;  %v784_v58 = vadd.f32 %v1320_v19, %v563_v56  ;;  %v800_v59 = vadd.f32 %v1320_v19, %v627_v57  ;;  %v1132_v60 = vpop.f32.mrb[6].mxu0  ;;  %v1148_v61 = vpop.f32.mrb[6].mxu1 }
  0xf2   : > { %925 = vst [vmem:[%s1330_s5 + $0x88] sm:$0xff] %v893_v53  ;;  %vm818_vm9 = vcmp.ge.f32.partialorder %v786_v54, 0.0  ;;  %v850_v62 = vmul.f32 0.01, %v786_v54  ;;  %vm834_vm10 = vcmp.ge.f32.partialorder %v802_v55, 0.0  ;;  %v787_v4 = vadd.f32 %v1132_v60, %v1320_v19  ;;  %v566_v6 = vpop.f32.mrb[7].mxu0 }
  0xf3   : > { %v866_v63 = vmul.f32 0.01, %v802_v55  ;;  %vm816_vm11 = vcmp.ge.f32.partialorder %v784_v58, 0.0  ;;  %v848_v0 = vmul.f32 0.01, %v784_v58  ;;  %vm832_vm12 = vcmp.ge.f32.partialorder %v800_v59, 0.0 }
  0xf4   : > { %v864_v1 = vmul.f32 0.01, %v800_v59  ;;  %v882_v2 = vsel %vm818_vm9, %v786_v54, %v850_v62  ;;  %v803_v5 = vadd.f32 %v1148_v61, %v1320_v19  ;;  %v630_v7 = vpop.f32.mrb[7].mxu1  ;;  %v785_v10 = vadd.f32 %v1320_v19, %v566_v6 }
  0xf5   : > { %v898_v3 = vsel %vm834_vm10, %v802_v55, %v866_v63  ;;  %914 = vst [vmem:[%s1330_s5 + $0x30] sm:$0xff] %v882_v2  ;;  %v880_v8 = vsel %vm816_vm11, %v784_v58, %v848_v0  ;;  %v801_v11 = vadd.f32 %v1320_v19, %v630_v7  ;;  %vm819_vm13 = vcmp.ge.f32.partialorder %v787_v4, 0.0 }
  0xf6   : > { %930 = vst [vmem:[%s1330_s5 + $0xb0] sm:$0xff] %v898_v3  ;;  %v896_v9 = vsel %vm832_vm12, %v800_v59, %v864_v1  ;;  %912 = vst [vmem:[%s1330_s5 + $0x20] sm:$0xff] %v880_v8  ;;  %v851_v12 = vmul.f32 0.01, %v787_v4  ;;  %vm835_vm14 = vcmp.ge.f32.partialorder %v803_v5, 0.0  ;;  %vm817_vm15 = vcmp.ge.f32.partialorder %v785_v10, 0.0 }
  0xf7   : > { %928 = vst [vmem:[%s1330_s5 + $0xa0] sm:$0xff] %v896_v9  ;;  %v867_v13 = vmul.f32 0.01, %v803_v5  ;;  %v849_v14 = vmul.f32 0.01, %v785_v10  ;;  %vm833_vm0 = vcmp.ge.f32.partialorder %v801_v11, 0.0 }
  0xf8   : > { %v865_v15 = vmul.f32 0.01, %v801_v11  ;;  %v883_v16 = vsel %vm819_vm13, %v787_v4, %v851_v12  ;;  %v1135_v18 = vpop.f32.mrb[8].mxu0  ;;  %v1151_v20 = vpop.f32.mrb[8].mxu1 }
  0xf9   : > { %v899_v17 = vsel %vm835_vm14, %v803_v5, %v867_v13  ;;  %915 = vst [vmem:[%s1330_s5 + $0x38] sm:$0xff] %v883_v16  ;;  %v881_v21 = vsel %vm817_vm15, %v785_v10, %v849_v14  ;;  %v790_v23 = vadd.f32 %v1135_v18, %v1320_v19  ;;  %v806_v24 = vadd.f32 %v1151_v20, %v1320_v19  ;;  %v579_v25 = vpop.f32.mrb[9].mxu0  ;;  %v643_v26 = vpop.f32.mrb[9].mxu1 }
  0xfa   : > { %931 = vst [vmem:[%s1330_s5 + $0xb8] sm:$0xff] %v899_v17  ;;  %v897_v22 = vsel %vm833_vm0, %v801_v11, %v865_v15  ;;  %913 = vst [vmem:[%s1330_s5 + $0x28] sm:$0xff] %v881_v21  ;;  %v788_v27 = vadd.f32 %v1320_v19, %v579_v25  ;;  %v804_v28 = vadd.f32 %v1320_v19, %v643_v26  ;;  %v1136_v29 = vpop.f32.mrb[10].mxu0  ;;  %v1152_v30 = vpop.f32.mrb[10].mxu1 }
  0xfb   : > { %929 = vst [vmem:[%s1330_s5 + $0xa8] sm:$0xff] %v897_v22  ;;  %vm822_vm1 = vcmp.ge.f32.partialorder %v790_v23, 0.0  ;;  %v854_v31 = vmul.f32 0.01, %v790_v23  ;;  %vm838_vm2 = vcmp.ge.f32.partialorder %v806_v24, 0.0  ;;  %v791_v37 = vadd.f32 %v1136_v29, %v1320_v19  ;;  %v582_v39 = vpop.f32.mrb[11].mxu0 }
  0xfc   : > { %v870_v32 = vmul.f32 0.01, %v806_v24  ;;  %vm820_vm3 = vcmp.ge.f32.partialorder %v788_v27, 0.0  ;;  %v852_v33 = vmul.f32 0.01, %v788_v27  ;;  %vm836_vm4 = vcmp.ge.f32.partialorder %v804_v28, 0.0 }
  0xfd   : > { %v868_v34 = vmul.f32 0.01, %v804_v28  ;;  %v886_v35 = vsel %vm822_vm1, %v790_v23, %v854_v31  ;;  %v807_v38 = vadd.f32 %v1152_v30, %v1320_v19  ;;  %v646_v40 = vpop.f32.mrb[11].mxu1  ;;  %v789_v43 = vadd.f32 %v1320_v19, %v582_v39 }
  0xfe   : > { %v902_v36 = vsel %vm838_vm2, %v806_v24, %v870_v32  ;;  %918 = vst [vmem:[%s1330_s5 + $0x50] sm:$0xff] %v886_v35  ;;  %v884_v41 = vsel %vm820_vm3, %v788_v27, %v852_v33  ;;  %v805_v44 = vadd.f32 %v1320_v19, %v646_v40  ;;  %v1139_v45 = vpop.f32.mrb[12].mxu0  ;;  %vm823_vm5 = vcmp.ge.f32.partialorder %v791_v37, 0.0 }
  0xff   : > { %934 = vst [vmem:[%s1330_s5 + $0xd0] sm:$0xff] %v902_v36  ;;  %v900_v42 = vsel %vm836_vm4, %v804_v28, %v868_v34  ;;  %v1155_v46 = vpop.f32.mrb[12].mxu1  ;;  %916 = vst [vmem:[%s1330_s5 + $0x40] sm:$0xff] %v884_v41  ;;  %v855_v47 = vmul.f32 0.01, %v791_v37  ;;  %vm839_vm6 = vcmp.ge.f32.partialorder %v807_v38, 0.0  ;;  %v794_v53 = vadd.f32 %v1139_v45, %v1320_v19 }
 0x100   : > { %932 = vst [vmem:[%s1330_s5 + $0xc0] sm:$0xff] %v900_v42  ;;  %v871_v48 = vmul.f32 0.01, %v807_v38  ;;  %vm821_vm7 = vcmp.ge.f32.partialorder %v789_v43, 0.0  ;;  %v853_v49 = vmul.f32 0.01, %v789_v43  ;;  %v810_v54 = vadd.f32 %v1155_v46, %v1320_v19 }
 0x101   : > { %vm837_vm8 = vcmp.ge.f32.partialorder %v805_v44, 0.0  ;;  %v869_v50 = vmul.f32 0.01, %v805_v44  ;;  %v887_v51 = vsel %vm823_vm5, %v791_v37, %v855_v47  ;;  %v595_v55 = vpop.f32.mrb[13].mxu0  ;;  %v659_v56 = vpop.f32.mrb[13].mxu1  ;;  %vm826_vm9 = vcmp.ge.f32.partialorder %v794_v53, 0.0 }
 0x102   : > { %v903_v52 = vsel %vm839_vm6, %v807_v38, %v871_v48  ;;  %919 = vst [vmem:[%s1330_s5 + $0x58] sm:$0xff] %v887_v51  ;;  %v885_v57 = vsel %vm821_vm7, %v789_v43, %v853_v49  ;;  %v792_v59 = vadd.f32 %v1320_v19, %v595_v55  ;;  %v808_v60 = vadd.f32 %v1320_v19, %v659_v56  ;;  %v1140_v61 = vpop.f32.mrb[14].mxu0  ;;  %v1156_v62 = vpop.f32.mrb[14].mxu1 }
 0x103   : > { %935 = vst [vmem:[%s1330_s5 + $0xd8] sm:$0xff] %v903_v52  ;;  %v901_v58 = vsel %vm837_vm8, %v805_v44, %v869_v50  ;;  %917 = vst [vmem:[%s1330_s5 + $0x48] sm:$0xff] %v885_v57  ;;  %v858_v63 = vmul.f32 0.01, %v794_v53  ;;  %vm842_vm10 = vcmp.ge.f32.partialorder %v810_v54, 0.0  ;;  %v795_v5 = vadd.f32 %v1140_v61, %v1320_v19  ;;  %v598_v7 = vpop.f32.mrb[15].mxu0 }
 0x104   : > { %933 = vst [vmem:[%s1330_s5 + $0xc8] sm:$0xff] %v901_v58  ;;  %v874_v0 = vmul.f32 0.01, %v810_v54  ;;  %vm824_vm11 = vcmp.ge.f32.partialorder %v792_v59, 0.0  ;;  %v856_v1 = vmul.f32 0.01, %v792_v59  ;;  %v811_v6 = vadd.f32 %v1156_v62, %v1320_v19 }
 0x105   : > { %vm840_vm12 = vcmp.ge.f32.partialorder %v808_v60, 0.0  ;;  %v872_v2 = vmul.f32 0.01, %v808_v60  ;;  %v890_v3 = vsel %vm826_vm9, %v794_v53, %v858_v63  ;;  %v662_v8 = vpop.f32.mrb[15].mxu1  ;;  %v793_v11 = vadd.f32 %v1320_v19, %v598_v7 }
 0x106   : > { %v906_v4 = vsel %vm842_vm10, %v810_v54, %v874_v0  ;;  %922 = vst [vmem:[%s1330_s5 + $0x70] sm:$0xff] %v890_v3  ;;  %v888_v9 = vsel %vm824_vm11, %v792_v59, %v856_v1  ;;  %v809_v12 = vadd.f32 %v1320_v19, %v662_v8  ;;  %vm827_vm13 = vcmp.ge.f32.partialorder %v795_v5, 0.0 }
 0x107   : > { %938 = vst [vmem:[%s1330_s5 + $0xf0] sm:$0xff] %v906_v4  ;;  %v904_v10 = vsel %vm840_vm12, %v808_v60, %v872_v2  ;;  %920 = vst [vmem:[%s1330_s5 + $0x60] sm:$0xff] %v888_v9  ;;  %v859_v13 = vmul.f32 0.01, %v795_v5  ;;  %vm843_vm14 = vcmp.ge.f32.partialorder %v811_v6, 0.0  ;;  %vm825_vm15 = vcmp.ge.f32.partialorder %v793_v11, 0.0 }
 0x108   : > { %936 = vst [vmem:[%s1330_s5 + $0xe0] sm:$0xff] %v904_v10  ;;  %v875_v14 = vmul.f32 0.01, %v811_v6  ;;  %v857_v15 = vmul.f32 0.01, %v793_v11  ;;  %vm841_vm0 = vcmp.ge.f32.partialorder %v809_v12, 0.0 }
 0x109   : > { %v873_v16 = vmul.f32 0.01, %v809_v12  ;;  %v891_v17 = vsel %vm827_vm13, %v795_v5, %v859_v13 }
 0x10a   : > { %v907_v18 = vsel %vm843_vm14, %v811_v6, %v875_v14  ;;  %923 = vst [vmem:[%s1330_s5 + $0x78] sm:$0xff] %v891_v17  ;;  %v889_v20 = vsel %vm825_vm15, %v793_v11, %v857_v15 }
 0x10b   : > { %939 = vst [vmem:[%s1330_s5 + $0xf8] sm:$0xff] %v907_v18  ;;  %v905_v21 = vsel %vm841_vm0, %v809_v12, %v873_v16  ;;  %921 = vst [vmem:[%s1330_s5 + $0x68] sm:$0xff] %v889_v20 }
 0x10c   : > { %937 = vst [vmem:[%s1330_s5 + $0xe8] sm:$0xff] %v905_v21 }
 0x10d PF: > { %s13_s14 = sadd.s32 1, %s1228_s14   ;;  %s1405_s12 = smov %s1224_s13 }
 0x10e   : > { %p10_p5 = scmp.ge.s32.totalorder %s13_s14, 10   ;;  %s1406_s13 = smov %s1408_s15 }
 0x110   :  { %12 = sbr.rel (!%p10_p5) target bundleno = 2 (0x2), region = 76 }

// kernel: conv_embedding_to_seq_fwd.52
= control target key start
LH: loop header
LB: loop body
LE: loop exit
PB: predicated region body
PF: predicated region fallthrough
CT: control target
= control target key end

     0   :  { %s1344_s12 = smov 0   ;;  %s1346_s13 = smov 0   ;;  %s1570_s0 = inlined_call_operand.vmem [shape: bf16[512,208], index: 0, kind: input, shape index: {}]   ;;  %s1571_s1 = inlined_call_operand.vmem [shape: bf16[208,128], index: 1, kind: input, shape index: {}]   ;;  %s1572_s2 = inlined_call_operand.vmem [shape: f32[1,128], index: 2, kind: input, shape index: {}]   ;;  %s1573_s3 = inlined_call_operand.vmem [shape: f32[512,128], index: 3, kind: output, shape index: {}]  }
   0x1   :  { %s1348_s14 = smov 0  }
   0x2 LB: > { %s32_s15 = sadd.s32 1, %s1317_s13  ;;  %p1116_p0 = scmp.ge.s32.totalorder %s1321_s14, 1  ;;  %s1321_s14 = sphi %s1348_s14, %s13_s14   ;;  %s1317_s13 = sphi %s1346_s13, %s1575_s13   ;;  %s1313_s12 = sphi %s1344_s12, %s1574_s12  }
   0x3   : > { %p34_p1 = scmp.ge.s32.totalorder %s32_s15, 2  ;;  %p191_p2 = scmp.lt.s32.totalorder %s1321_s14, 3 }
   0x5   : > { %s1577_s15 = smov (%p34_p1, %s32_s15), 0  ;;  %p192_p3 = pnand %p1116_p0, %p191_p2 }
   0x6   : > { %v1238_v0 = vld [vmem:[%s1571_s1] sm:$0xff] (!%p192_p3)   ;;  %v1323_v1 = vmov (!%p192_p3), 0   ;;  %s1117_s18 = sshll.u32 (!%p192_p3), %s1313_s12, 5  ;;  %v1239_v2 = vld [vmem:[%s1571_s1 + $0x8] sm:$0xff] (!%p192_p3)   ;;  %v1240_v3 = vld [vmem:[%s1571_s1 + $0x10] sm:$0xff] (!%p192_p3)   ;;  %vm616_vm0 = vcmask (!%p192_p3), 654336  }
   0x7   : > { %195 = sbr.rel (%p192_p3) target bundleno = 332 (0x14c), region = 32  ;;  %665 = vmatprep.subr.bf16.mxu0 (!%p192_p3), %v1323_v1  ;;  %1187 = vmatprep.subr.bf16.mxu1 (!%p192_p3), %v1323_v1  ;;  %p236_p4 = scmp.lt.s32.totalorder (!%p192_p3), %s1117_s18, 63  ;;  %v1241_v4 = vld [vmem:[%s1571_s1 + $0x18] sm:$0xff] (!%p192_p3)   ;;  %v1242_v5 = vld [vmem:[%s1571_s1 + $0x20] sm:$0xff] (!%p192_p3)   ;;  %v1243_v8 = vld [vmem:[%s1571_s1 + $0x28] sm:$0xff] (!%p192_p3)  }
   0x8   : > { %666 = vmatpush1.bf16.msra.mxu0 (!%p192_p3), %v1238_v0  ;;  %1200 = vmatpush1.bf16.msra.mxu1 (!%p192_p3), %v1238_v0  ;;  %v1244_v9 = vld [vmem:[%s1571_s1 + $0x30] sm:$0xff] (!%p192_p3)   ;;  %v1245_v10 = vld [vmem:[%s1571_s1 + $0x38] sm:$0xff] (!%p192_p3)   ;;  %v1246_v11 = vld [vmem:[%s1571_s1 + $0x40] sm:$0xff] (!%p192_p3)  }
   0x9   : > { %667 = vmatprep.subr.bf16.mxu0 (!%p192_p3), %v1323_v1  ;;  %1188 = vmatprep.subr.bf16.mxu1 (!%p192_p3), %v1323_v1  ;;  %v1247_v12 = vld [vmem:[%s1571_s1 + $0x48] sm:$0xff] (!%p192_p3)   ;;  %v1248_v13 = vld [vmem:[%s1571_s1 + $0x50] sm:$0xff] (!%p192_p3)   ;;  %v1249_v14 = vld [vmem:[%s1571_s1 + $0x58] sm:$0xff] (!%p192_p3)  }
   0xa   : > { %v1250_v15 = vld [vmem:[%s1571_s1 + $0x60] sm:$0xff] (!%p192_p3)  }
   0xb   : > { %v1488_v46 = vld [vmem:[%s1572_s2] ss:$0 sm:$0xff] (!%p192_p3) }
   0xc   : > { %668 = vmatpush1.bf16.msra.mxu0 (!%p192_p3), %v1239_v2  ;;  %1201 = vmatpush1.bf16.msra.mxu1 (!%p192_p3), %v1239_v2 }
   0xd   : > { %669 = vmatprep.subr.bf16.mxu0 (!%p192_p3), %v1323_v1  ;;  %1189 = vmatprep.subr.bf16.mxu1 (!%p192_p3), %v1323_v1 }
   0xe   : > { %s1579_s18 = smov (!%p236_p4, %s1117_s18), 63 }
   0xf   : > { %s1186_s23 = sshll.u32 %s1579_s18, 3 }
  0x10   : > { %670 = vmatpush1.bf16.msra.mxu0 %v1240_v3  ;;  %1202 = vmatpush1.bf16.msra.mxu1 %v1240_v3  ;;  %s1390_s28 = scalar_lea.vmem %s1570_s0, %s1186_s23  ;;  %s1495_s30 = scalar_lea.vmem %s1573_s3, %s1186_s23 }
  0x11   : > { %671 = vmatprep.subr.bf16.mxu0 %v1323_v1  ;;  %1190 = vmatprep.subr.bf16.mxu1 %v1323_v1  ;;  %v1253_v6 = vld [vmem:[%s1390_s28 + $0x4] ss:$8 sps:$4 sm:$0xff]   ;;  %v1251_v16 = vld [vmem:[%s1390_s28] ss:$8 sps:$4 sm:$0xff]   ;;  %v1257_v18 = vld [vmem:[%s1390_s28 + $0x14] ss:$8 sps:$4 sm:$0xff]  }
  0x12   : > { %v1256_v7 = vld [vmem:[%s1390_s28 + $0x84] ss:$8 sps:$4 sm:$0xff]   ;;  %1167 = vmatprep.mubr.msk.bf16.mxu0 %vm616_vm0, %v1253_v6  ;;  %v1254_v17 = vld [vmem:[%s1390_s28 + $0x80] ss:$8 sps:$4 sm:$0xff]   ;;  %v1259_v19 = vld [vmem:[%s1390_s28 + $0x94] ss:$8 sps:$4 sm:$0xff]  }
  0x13   : > { %1175 = vmatprep.mubr.msk.bf16.mxu1 %vm616_vm0, %v1256_v7  ;;  %v1261_v20 = vld [vmem:[%s1390_s28 + $0x10] ss:$8 sps:$4 sm:$0xff]   ;;  %v1263_v22 = vld [vmem:[%s1390_s28 + $0x24] ss:$8 sps:$4 sm:$0xff]   ;;  %v1267_v24 = vld [vmem:[%s1390_s28 + $0x20] ss:$8 sps:$4 sm:$0xff]  }
  0x14   : > { %672 = vmatpush1.bf16.msra.mxu0 %v1241_v4  ;;  %1203 = vmatpush1.bf16.msra.mxu1 %v1241_v4  ;;  %v1262_v21 = vld [vmem:[%s1390_s28 + $0x90] ss:$8 sps:$4 sm:$0xff]   ;;  %v1265_v23 = vld [vmem:[%s1390_s28 + $0xa4] ss:$8 sps:$4 sm:$0xff]   ;;  %v1268_v25 = vld [vmem:[%s1390_s28 + $0xa0] ss:$8 sps:$4 sm:$0xff]  }
  0x15   : > { %673 = vmatprep.subr.bf16.mxu0 %v1323_v1  ;;  %1191 = vmatprep.subr.bf16.mxu1 %v1323_v1  ;;  %v1269_v26 = vld [vmem:[%s1390_s28 + $0x34] ss:$8 sps:$4 sm:$0xff]   ;;  %v1273_v28 = vld [vmem:[%s1390_s28 + $0x30] ss:$8 sps:$4 sm:$0xff]   ;;  %v1275_v30 = vld [vmem:[%s1390_s28 + $0x44] ss:$8 sps:$4 sm:$0xff]  }
  0x16   : > { %v1271_v27 = vld [vmem:[%s1390_s28 + $0xb4] ss:$8 sps:$4 sm:$0xff]   ;;  %v1274_v29 = vld [vmem:[%s1390_s28 + $0xb0] ss:$8 sps:$4 sm:$0xff]   ;;  %v1277_v31 = vld [vmem:[%s1390_s28 + $0xc4] ss:$8 sps:$4 sm:$0xff]  }
  0x17   : > { %v1279_v32 = vld [vmem:[%s1390_s28 + $0x40] ss:$8 sps:$4 sm:$0xff]   ;;  %v1281_v34 = vld [vmem:[%s1390_s28 + $0x54] ss:$8 sps:$4 sm:$0xff]   ;;  %v1285_v36 = vld [vmem:[%s1390_s28 + $0x50] ss:$8 sps:$4 sm:$0xff]  }
  0x18   : > { %674 = vmatpush1.bf16.msra.mxu0 %v1242_v5  ;;  %1204 = vmatpush1.bf16.msra.mxu1 %v1242_v5  ;;  %v1280_v33 = vld [vmem:[%s1390_s28 + $0xc0] ss:$8 sps:$4 sm:$0xff]   ;;  %v1283_v35 = vld [vmem:[%s1390_s28 + $0xd4] ss:$8 sps:$4 sm:$0xff]   ;;  %v1286_v37 = vld [vmem:[%s1390_s28 + $0xd0] ss:$8 sps:$4 sm:$0xff]  }
  0x19   : > { %675 = vmatprep.subr.bf16.mxu0 %v1323_v1  ;;  %1192 = vmatprep.subr.bf16.mxu1 %v1323_v1  ;;  %v1287_v38 = vld [vmem:[%s1390_s28 + $0x64] ss:$8 sps:$4 sm:$0xff]   ;;  %v1291_v40 = vld [vmem:[%s1390_s28 + $0x60] ss:$8 sps:$4 sm:$0xff]   ;;  %v1293_v42 = vld [vmem:[%s1390_s28 + $0x74] ss:$8 sps:$4 sm:$0xff]  }
  0x1a   : > { %v1289_v39 = vld [vmem:[%s1390_s28 + $0xe4] ss:$8 sps:$4 sm:$0xff]   ;;  %v1292_v41 = vld [vmem:[%s1390_s28 + $0xe0] ss:$8 sps:$4 sm:$0xff]   ;;  %v1295_v43 = vld [vmem:[%s1390_s28 + $0xf4] ss:$8 sps:$4 sm:$0xff]  }
  0x1b   : > { %v1297_v44 = vld [vmem:[%s1390_s28 + $0x70] ss:$8 sps:$4 sm:$0xff]  }
  0x1c   : > { %676 = vmatpush1.bf16.msra.mxu0 %v1243_v8  ;;  %1205 = vmatpush1.bf16.msra.mxu1 %v1243_v8  ;;  %v1298_v45 = vld [vmem:[%s1390_s28 + $0xf0] ss:$8 sps:$4 sm:$0xff]  }
  0x1d   : > { %677 = vmatprep.subr.bf16.mxu0 %v1323_v1  ;;  %1193 = vmatprep.subr.bf16.mxu1 %v1323_v1 }
  0x20   : > { %678 = vmatpush1.bf16.msra.mxu0 %v1244_v9  ;;  %1206 = vmatpush1.bf16.msra.mxu1 %v1244_v9 }
  0x21   : > { %679 = vmatprep.subr.bf16.mxu0 %v1323_v1  ;;  %1194 = vmatprep.subr.bf16.mxu1 %v1323_v1 }
  0x24   : > { %680 = vmatpush1.bf16.msra.mxu0 %v1245_v10  ;;  %1207 = vmatpush1.bf16.msra.mxu1 %v1245_v10 }
  0x25   : > { %681 = vmatprep.subr.bf16.mxu0 %v1323_v1  ;;  %1195 = vmatprep.subr.bf16.mxu1 %v1323_v1 }
  0x28   : > { %682 = vmatpush1.bf16.msra.mxu0 %v1246_v11  ;;  %1208 = vmatpush1.bf16.msra.mxu1 %v1246_v11 }
  0x29   : > { %683 = vmatprep.subr.bf16.mxu0 %v1323_v1  ;;  %1196 = vmatprep.subr.bf16.mxu1 %v1323_v1 }
  0x2c   : > { %684 = vmatpush1.bf16.msra.mxu0 %v1247_v12  ;;  %1209 = vmatpush1.bf16.msra.mxu1 %v1247_v12 }
  0x2d   : > { %685 = vmatprep.subr.bf16.mxu0 %v1323_v1  ;;  %1197 = vmatprep.subr.bf16.mxu1 %v1323_v1 }
  0x30   : > { %686 = vmatpush1.bf16.msra.mxu0 %v1248_v13  ;;  %1210 = vmatpush1.bf16.msra.mxu1 %v1248_v13 }
  0x31   : > { %687 = vmatprep.subr.bf16.mxu0 %v1323_v1  ;;  %1198 = vmatprep.subr.bf16.mxu1 %v1323_v1 }
  0x34   : > { %688 = vmatpush1.bf16.msra.mxu0 %v1249_v14  ;;  %1211 = vmatpush1.bf16.msra.mxu1 %v1249_v14 }
  0x35   : > { %689 = vmatprep.subr.bf16.mxu0 %v1323_v1  ;;  %1199 = vmatprep.subr.bf16.mxu1 %v1323_v1 }
  0x38   : > { %690 = vmatpush1.bf16.msra.mxu0 %v1250_v15  ;;  %1212 = vmatpush1.bf16.msra.mxu1 %v1250_v15 }
  0x3b   : > { %698 = vmatmul.mubr.bf16.vlgmr.msra.gmra.mrb[0].mxu0 %v1251_v16  ;;  %762 = vmatmul.mubr.bf16.vlgmr.msra.gmra.mrb[0].mxu1 %v1254_v17 }
  0x3c   : > { %1168 = vmatprep.mubr.msk.bf16.mxu0 %vm616_vm0, %v1257_v18  ;;  %1176 = vmatprep.mubr.msk.bf16.mxu1 %vm616_vm0, %v1259_v19 }
  0x43   : > { %706 = vmatmul.mubr.bf16.gmra.mrb[4].mxu0 %v1261_v20  ;;  %770 = vmatmul.mubr.bf16.gmra.mrb[4].mxu1 %v1262_v21 }
  0x44   : > { %1169 = vmatprep.mubr.msk.bf16.mxu0 %vm616_vm0, %v1263_v22  ;;  %1177 = vmatprep.mubr.msk.bf16.mxu1 %vm616_vm0, %v1265_v23 }
  0x4b   : > { %714 = vmatmul.mubr.bf16.gmra.mrb[8].mxu0 %v1267_v24  ;;  %778 = vmatmul.mubr.bf16.gmra.mrb[8].mxu1 %v1268_v25 }
  0x4c   : > { %1170 = vmatprep.mubr.msk.bf16.mxu0 %vm616_vm0, %v1269_v26  ;;  %1178 = vmatprep.mubr.msk.bf16.mxu1 %vm616_vm0, %v1271_v27 }
  0x53   : > { %722 = vmatmul.mubr.bf16.gmra.mrb[12].mxu0 %v1273_v28  ;;  %786 = vmatmul.mubr.bf16.gmra.mrb[12].mxu1 %v1274_v29 }
  0x54   : > { %1171 = vmatprep.mubr.msk.bf16.mxu0 %vm616_vm0, %v1275_v30  ;;  %1179 = vmatprep.mubr.msk.bf16.mxu1 %vm616_vm0, %v1277_v31 }
  0x5b   : > { %730 = vmatmul.mubr.bf16.gmra.mrb[16].mxu0 %v1279_v32  ;;  %794 = vmatmul.mubr.bf16.gmra.mrb[16].mxu1 %v1280_v33 }
  0x5c   : > { %1172 = vmatprep.mubr.msk.bf16.mxu0 %vm616_vm0, %v1281_v34  ;;  %1180 = vmatprep.mubr.msk.bf16.mxu1 %vm616_vm0, %v1283_v35 }
  0x63   : > { %738 = vmatmul.mubr.bf16.gmra.mrb[20].mxu0 %v1285_v36  ;;  %802 = vmatmul.mubr.bf16.gmra.mrb[20].mxu1 %v1286_v37 }
  0x64   : > { %1173 = vmatprep.mubr.msk.bf16.mxu0 %vm616_vm0, %v1287_v38  ;;  %1181 = vmatprep.mubr.msk.bf16.mxu1 %vm616_vm0, %v1289_v39 }
  0x6b   : > { %746 = vmatmul.mubr.bf16.gmra.mrb[24].mxu0 %v1291_v40  ;;  %810 = vmatmul.mubr.bf16.gmra.mrb[24].mxu1 %v1292_v41 }
  0x6c   : > { %1174 = vmatprep.mubr.msk.bf16.mxu0 %vm616_vm0, %v1293_v42  ;;  %1182 = vmatprep.mubr.msk.bf16.mxu1 %vm616_vm0, %v1295_v43 }
  0x73   : > { %754 = vmatmul.mubr.bf16.gmra.mrb[28].mxu0 %v1297_v44  ;;  %818 = vmatmul.mubr.bf16.gmra.mrb[28].mxu1 %v1298_v45 }
 0x10e   : > { %v699_v47 = vpop.f32.mrb[0].mxu0  ;;  %v763_v48 = vpop.f32.mrb[0].mxu1 }
 0x10f   : > { %v932_v49 = vadd.f32 %v1488_v46, %v699_v47  ;;  %v948_v50 = vadd.f32 %v1488_v46, %v763_v48  ;;  %v701_v51 = vpop.f32.mrb[1].mxu0  ;;  %v765_v52 = vpop.f32.mrb[1].mxu1 }
 0x110   : > { %v702_v53 = vpop.f32.mrb[2].mxu0  ;;  %v766_v54 = vpop.f32.mrb[2].mxu1 }
 0x111   : > { %964 = vst [vmem:[%s1495_s30] sm:$0xff] %v932_v49  ;;  %980 = vst [vmem:[%s1495_s30 + $0x80] sm:$0xff] %v948_v50  ;;  %v933_v55 = vadd.f32 %v1488_v46, %v702_v53  ;;  %v949_v56 = vadd.f32 %v1488_v46, %v766_v54  ;;  %v704_v57 = vpop.f32.mrb[3].mxu0  ;;  %v768_v58 = vpop.f32.mrb[3].mxu1 }
 0x113   : > { %965 = vst [vmem:[%s1495_s30 + $0x8] sm:$0xff] %v933_v55  ;;  %981 = vst [vmem:[%s1495_s30 + $0x88] sm:$0xff] %v949_v56 }
 0x116   : > { %v707_v59 = vpop.f32.mrb[4].mxu0  ;;  %v771_v60 = vpop.f32.mrb[4].mxu1 }
 0x117   : > { %v934_v61 = vadd.f32 %v1488_v46, %v707_v59  ;;  %v950_v62 = vadd.f32 %v1488_v46, %v771_v60  ;;  %v709_v63 = vpop.f32.mrb[5].mxu0  ;;  %v773_v0 = vpop.f32.mrb[5].mxu1 }
 0x118   : > { %v710_v1 = vpop.f32.mrb[6].mxu0  ;;  %v774_v2 = vpop.f32.mrb[6].mxu1 }
 0x119   : > { %966 = vst [vmem:[%s1495_s30 + $0x10] sm:$0xff] %v934_v61  ;;  %982 = vst [vmem:[%s1495_s30 + $0x90] sm:$0xff] %v950_v62  ;;  %v935_v3 = vadd.f32 %v1488_v46, %v710_v1  ;;  %v951_v4 = vadd.f32 %v1488_v46, %v774_v2  ;;  %v712_v5 = vpop.f32.mrb[7].mxu0  ;;  %v776_v6 = vpop.f32.mrb[7].mxu1 }
 0x11b   : > { %967 = vst [vmem:[%s1495_s30 + $0x18] sm:$0xff] %v935_v3  ;;  %983 = vst [vmem:[%s1495_s30 + $0x98] sm:$0xff] %v951_v4 }
 0x11e   : > { %v715_v7 = vpop.f32.mrb[8].mxu0  ;;  %v779_v8 = vpop.f32.mrb[8].mxu1 }
 0x11f   : > { %v936_v9 = vadd.f32 %v1488_v46, %v715_v7  ;;  %v952_v10 = vadd.f32 %v1488_v46, %v779_v8  ;;  %v717_v11 = vpop.f32.mrb[9].mxu0  ;;  %v781_v12 = vpop.f32.mrb[9].mxu1 }
 0x120   : > { %v718_v13 = vpop.f32.mrb[10].mxu0  ;;  %v782_v14 = vpop.f32.mrb[10].mxu1 }
 0x121   : > { %968 = vst [vmem:[%s1495_s30 + $0x20] sm:$0xff] %v936_v9  ;;  %984 = vst [vmem:[%s1495_s30 + $0xa0] sm:$0xff] %v952_v10  ;;  %v937_v15 = vadd.f32 %v1488_v46, %v718_v13  ;;  %v953_v16 = vadd.f32 %v1488_v46, %v782_v14  ;;  %v720_v17 = vpop.f32.mrb[11].mxu0  ;;  %v784_v18 = vpop.f32.mrb[11].mxu1 }
 0x123   : > { %969 = vst [vmem:[%s1495_s30 + $0x28] sm:$0xff] %v937_v15  ;;  %985 = vst [vmem:[%s1495_s30 + $0xa8] sm:$0xff] %v953_v16 }
 0x126   : > { %v723_v19 = vpop.f32.mrb[12].mxu0  ;;  %v787_v20 = vpop.f32.mrb[12].mxu1 }
 0x127   : > { %v938_v21 = vadd.f32 %v1488_v46, %v723_v19  ;;  %v954_v22 = vadd.f32 %v1488_v46, %v787_v20  ;;  %v725_v23 = vpop.f32.mrb[13].mxu0  ;;  %v789_v24 = vpop.f32.mrb[13].mxu1 }
 0x128   : > { %v726_v25 = vpop.f32.mrb[14].mxu0  ;;  %v790_v26 = vpop.f32.mrb[14].mxu1 }
 0x129   : > { %970 = vst [vmem:[%s1495_s30 + $0x30] sm:$0xff] %v938_v21  ;;  %986 = vst [vmem:[%s1495_s30 + $0xb0] sm:$0xff] %v954_v22  ;;  %v939_v27 = vadd.f32 %v1488_v46, %v726_v25  ;;  %v955_v28 = vadd.f32 %v1488_v46, %v790_v26  ;;  %v728_v29 = vpop.f32.mrb[15].mxu0  ;;  %v792_v30 = vpop.f32.mrb[15].mxu1 }
 0x12b   : > { %971 = vst [vmem:[%s1495_s30 + $0x38] sm:$0xff] %v939_v27  ;;  %987 = vst [vmem:[%s1495_s30 + $0xb8] sm:$0xff] %v955_v28 }
 0x12e   : > { %v731_v31 = vpop.f32.mrb[16].mxu0  ;;  %v795_v32 = vpop.f32.mrb[16].mxu1 }
 0x12f   : > { %v940_v33 = vadd.f32 %v1488_v46, %v731_v31  ;;  %v956_v34 = vadd.f32 %v1488_v46, %v795_v32  ;;  %v733_v35 = vpop.f32.mrb[17].mxu0  ;;  %v797_v36 = vpop.f32.mrb[17].mxu1 }
 0x130   : > { %v734_v37 = vpop.f32.mrb[18].mxu0  ;;  %v798_v38 = vpop.f32.mrb[18].mxu1 }
 0x131   : > { %972 = vst [vmem:[%s1495_s30 + $0x40] sm:$0xff] %v940_v33  ;;  %988 = vst [vmem:[%s1495_s30 + $0xc0] sm:$0xff] %v956_v34  ;;  %v941_v39 = vadd.f32 %v1488_v46, %v734_v37  ;;  %v957_v40 = vadd.f32 %v1488_v46, %v798_v38  ;;  %v736_v41 = vpop.f32.mrb[19].mxu0  ;;  %v800_v42 = vpop.f32.mrb[19].mxu1 }
 0x133   : > { %973 = vst [vmem:[%s1495_s30 + $0x48] sm:$0xff] %v941_v39  ;;  %989 = vst [vmem:[%s1495_s30 + $0xc8] sm:$0xff] %v957_v40 }
 0x136   : > { %v739_v43 = vpop.f32.mrb[20].mxu0  ;;  %v803_v44 = vpop.f32.mrb[20].mxu1 }
 0x137   : > { %v942_v45 = vadd.f32 %v1488_v46, %v739_v43  ;;  %v958_v47 = vadd.f32 %v1488_v46, %v803_v44  ;;  %v741_v48 = vpop.f32.mrb[21].mxu0  ;;  %v805_v49 = vpop.f32.mrb[21].mxu1 }
 0x138   : > { %v742_v50 = vpop.f32.mrb[22].mxu0  ;;  %v806_v51 = vpop.f32.mrb[22].mxu1 }
 0x139   : > { %974 = vst [vmem:[%s1495_s30 + $0x50] sm:$0xff] %v942_v45  ;;  %990 = vst [vmem:[%s1495_s30 + $0xd0] sm:$0xff] %v958_v47  ;;  %v943_v52 = vadd.f32 %v1488_v46, %v742_v50  ;;  %v959_v53 = vadd.f32 %v1488_v46, %v806_v51  ;;  %v744_v54 = vpop.f32.mrb[23].mxu0  ;;  %v808_v55 = vpop.f32.mrb[23].mxu1 }
 0x13b   : > { %975 = vst [vmem:[%s1495_s30 + $0x58] sm:$0xff] %v943_v52  ;;  %991 = vst [vmem:[%s1495_s30 + $0xd8] sm:$0xff] %v959_v53 }
 0x13e   : > { %v747_v56 = vpop.f32.mrb[24].mxu0  ;;  %v811_v57 = vpop.f32.mrb[24].mxu1 }
 0x13f   : > { %v944_v58 = vadd.f32 %v1488_v46, %v747_v56  ;;  %v960_v59 = vadd.f32 %v1488_v46, %v811_v57  ;;  %v749_v60 = vpop.f32.mrb[25].mxu0  ;;  %v813_v61 = vpop.f32.mrb[25].mxu1 }
 0x140   : > { %v750_v62 = vpop.f32.mrb[26].mxu0  ;;  %v814_v63 = vpop.f32.mrb[26].mxu1 }
 0x141   : > { %976 = vst [vmem:[%s1495_s30 + $0x60] sm:$0xff] %v944_v58  ;;  %992 = vst [vmem:[%s1495_s30 + $0xe0] sm:$0xff] %v960_v59  ;;  %v945_v0 = vadd.f32 %v1488_v46, %v750_v62  ;;  %v961_v1 = vadd.f32 %v1488_v46, %v814_v63  ;;  %v752_v2 = vpop.f32.mrb[27].mxu0  ;;  %v816_v3 = vpop.f32.mrb[27].mxu1 }
 0x143   : > { %977 = vst [vmem:[%s1495_s30 + $0x68] sm:$0xff] %v945_v0  ;;  %993 = vst [vmem:[%s1495_s30 + $0xe8] sm:$0xff] %v961_v1 }
 0x146   : > { %v755_v4 = vpop.f32.mrb[28].mxu0  ;;  %v819_v5 = vpop.f32.mrb[28].mxu1 }
 0x147   : > { %v946_v6 = vadd.f32 %v1488_v46, %v755_v4  ;;  %v962_v7 = vadd.f32 %v1488_v46, %v819_v5  ;;  %v757_v8 = vpop.f32.mrb[29].mxu0  ;;  %v821_v9 = vpop.f32.mrb[29].mxu1 }
 0x148   : > { %v758_v10 = vpop.f32.mrb[30].mxu0  ;;  %v822_v11 = vpop.f32.mrb[30].mxu1 }
 0x149   : > { %978 = vst [vmem:[%s1495_s30 + $0x70] sm:$0xff] %v946_v6  ;;  %994 = vst [vmem:[%s1495_s30 + $0xf0] sm:$0xff] %v962_v7  ;;  %v947_v12 = vadd.f32 %v1488_v46, %v758_v10  ;;  %v963_v13 = vadd.f32 %v1488_v46, %v822_v11  ;;  %v760_v14 = vpop.f32.mrb[31].mxu0  ;;  %v824_v15 = vpop.f32.mrb[31].mxu1 }
 0x14b   : > { %979 = vst [vmem:[%s1495_s30 + $0x78] sm:$0xff] %v947_v12  ;;  %995 = vst [vmem:[%s1495_s30 + $0xf8] sm:$0xff] %v963_v13 }
 0x14c PF: > { %s13_s14 = sadd.s32 1, %s1321_s14   ;;  %s1574_s12 = smov %s1317_s13 }
 0x14d   : > { %p10_p5 = scmp.ge.s32.totalorder %s13_s14, 4   ;;  %s1575_s13 = smov %s1577_s15 }
 0x14f   :  { %12 = sbr.rel (!%p10_p5) target bundleno = 2 (0x2), region = 76 }

// kernel: tile.103
= control target key start
LH: loop header
LB: loop body
LE: loop exit
PB: predicated region body
PF: predicated region fallthrough
CT: control target
= control target key end

     0   :  { %s28_s0 = inlined_call_operand.vmem [shape: f32[8], index: 0, kind: input, shape index: {}]   ;;  %s29_s1 = inlined_call_operand.vmem [shape: f32[16,8], index: 1, kind: output, shape index: {}]  }
   0x1   :  { %v4_v0 = vld [vmem:[%s28_s0] ss:$0 sm:$0xff] }
   0x2   :  { %5 = vst [vmem:[%s29_s1] sm:$0xff] %v4_v0  ;;  %8 = vst [vmem:[%s29_s1 + $0x8] sm:$0xff] %v4_v0 }

// kernel: tile.104
= control target key start
LH: loop header
LB: loop body
LE: loop exit
PB: predicated region body
PF: predicated region fallthrough
CT: control target
= control target key end

     0   :  { %s131_s10 = smov 120   ;;  %s132_s11 = smov 104   ;;  %vm3_vm0 = vcmask 64512   ;;  %vm9_vm1 = vcmask 1048512   ;;  %vm15_vm2 = vcmask 982912   ;;  %vm21_vm3 = vcmask 917312   ;;  %s207_s0 = inlined_call_operand.vmem [shape: f32[16,8], index: 0, kind: input, shape index: {}]   ;;  %s208_s1 = inlined_call_operand.vmem [shape: f32[1,128], index: 1, kind: output, shape index: {}]  }
   0x1   :  { %v101_v0 = vld [vmem:[%s207_s0 + $0xf] sm:$0x1]   ;;  %v103_v1 = vld [vmem:[%s207_s0 + $0xd] sm:$0x1]   ;;  %v102_v2 = vld [vmem:[%s207_s0 + $0xe] sm:$0x1]  }
   0x2   :  { %7 = vrot.lane.b32.xlu0 %v101_v0, %s131_s10  ;;  %19 = vrot.lane.b32.xlu1 %v103_v1, %s132_s11  ;;  %v104_v3 = vld [vmem:[%s207_s0 + $0xc] sm:$0x1]   ;;  %s133_s16 = smov 112   ;;  %s134_s17 = smov 96   ;;  %v105_v4 = vld [vmem:[%s207_s0 + $0xb] sm:$0x1]  }
   0x3   :  { %v106_v5 = vld [vmem:[%s207_s0 + $0xa] sm:$0x1]   ;;  %v2_v6 = vld [vmem:[%s207_s0] sm:$0x1]   ;;  %s135_s24 = smov 88   ;;  %s136_s25 = smov 80  }
   0x4   :  { %4 = vst.msk [vmem:[#allocation0] sm:$0x1] %vm3_vm0, %v2_v6   ;;  %v107_v7 = vld [vmem:[%s207_s0 + $0x9] sm:$0x1]   ;;  %v108_v8 = vld [vmem:[%s207_s0 + $0x8] sm:$0x1]  }
   0x5   :  { %s137_s30 = smov 72   ;;  %s138_s2 = smov 64   ;;  %v109_v9 = vld [vmem:[%s207_s0 + $0x7] sm:$0x1]   ;;  %v110_v10 = vld [vmem:[%s207_s0 + $0x6] sm:$0x1]  }
   0x6   :  { %13 = vrot.lane.b32.xlu0 %v102_v2, %s133_s16  ;;  %25 = vrot.lane.b32.xlu1 %v104_v3, %s134_s17  ;;  %s139_s7 = smov 56   ;;  %s140_s8 = smov 48   ;;  %v111_v11 = vld [vmem:[%s207_s0 + $0x5] sm:$0x1]   ;;  %v112_v12 = vld [vmem:[%s207_s0 + $0x4] sm:$0x1]  }
   0x7   :  { %s141_s13 = smov 40   ;;  %s142_s14 = smov 32   ;;  %v113_v13 = vld [vmem:[%s207_s0 + $0x3] sm:$0x1]   ;;  %v114_v14 = vld [vmem:[%s207_s0 + $0x2] sm:$0x1]  }
   0x8   :  { %s143_s19 = smov 24   ;;  %s144_s20 = smov 16   ;;  %v115_v15 = vld [vmem:[%s207_s0 + $0x1] sm:$0x1]   ;;  %vm27_vm4 = vcmask 851712   ;;  %vm33_vm5 = vcmask 786112  }
   0x9   :  { %s145_s0 = smov 8   ;;  %vm39_vm6 = vcmask 720512   ;;  %vm45_vm7 = vcmask 654912   ;;  %vm51_vm8 = vcmask 589312   ;;  %vm57_vm9 = vcmask 523712  }
   0xa   :  { %31 = vrot.lane.b32.xlu0 %v105_v4, %s135_s24  ;;  %37 = vrot.lane.b32.xlu1 %v106_v5, %s136_s25  ;;  %vm63_vm10 = vcmask 458112   ;;  %vm69_vm11 = vcmask 392512   ;;  %vm75_vm12 = vcmask 326912   ;;  %vm81_vm13 = vcmask 261312  }
   0xb   :  { %vm87_vm14 = vcmask 195712   ;;  %vm93_vm15 = vcmask 130112  }
   0xe   :  { %43 = vrot.lane.b32.xlu0 %v107_v7, %s137_s30  ;;  %49 = vrot.lane.b32.xlu1 %v108_v8, %s138_s2 }
  0x12   :  { %55 = vrot.lane.b32.xlu0 %v109_v9, %s139_s7  ;;  %61 = vrot.lane.b32.xlu1 %v110_v10, %s140_s8 }
  0x16   :  { %67 = vrot.lane.b32.xlu0 %v111_v11, %s141_s13  ;;  %73 = vrot.lane.b32.xlu1 %v112_v12, %s142_s14 }
  0x1a   :  { %79 = vrot.lane.b32.xlu0 %v113_v13, %s143_s19  ;;  %85 = vrot.lane.b32.xlu1 %v114_v14, %s144_s20 }
  0x1e   :  { %91 = vrot.lane.b32.xlu0 %v115_v15, %s145_s0 }
  0x74   :  { %v8_v16 = vpop.permute.xlu0 %7   ;;  %v20_v17 = vpop.permute.xlu1 %19  }
  0x75   :  { %10 = vst.msk [vmem:[#allocation0] sm:$0x1] %vm9_vm1, %v8_v16  }
  0x78   :  { %v14_v18 = vpop.permute.xlu0 %13   ;;  %v26_v19 = vpop.permute.xlu1 %25  }
  0x79   :  { %16 = vst.msk [vmem:[#allocation0] sm:$0x1] %vm15_vm2, %v14_v18  }
  0x7a   :  { %22 = vst.msk [vmem:[#allocation0] sm:$0x1] %vm21_vm3, %v20_v17  }
  0x7b   :  { %28 = vst.msk [vmem:[#allocation0] sm:$0x1] %vm27_vm4, %v26_v19  }
  0x7c   :  { %v32_v20 = vpop.permute.xlu0 %31   ;;  %v38_v21 = vpop.permute.xlu1 %37  }
  0x7d   :  { %34 = vst.msk [vmem:[#allocation0] sm:$0x1] %vm33_vm5, %v32_v20  }
  0x7e   :  { %40 = vst.msk [vmem:[#allocation0] sm:$0x1] %vm39_vm6, %v38_v21  }
  0x80   :  { %v44_v22 = vpop.permute.xlu0 %43   ;;  %v50_v23 = vpop.permute.xlu1 %49  }
  0x81   :  { %46 = vst.msk [vmem:[#allocation0] sm:$0x1] %vm45_vm7, %v44_v22  }
  0x82   :  { %52 = vst.msk [vmem:[#allocation0] sm:$0x1] %vm51_vm8, %v50_v23  }
  0x84   :  { %v56_v24 = vpop.permute.xlu0 %55   ;;  %v62_v25 = vpop.permute.xlu1 %61  }
  0x85   :  { %58 = vst.msk [vmem:[#allocation0] sm:$0x1] %vm57_vm9, %v56_v24  }
  0x86   :  { %64 = vst.msk [vmem:[#allocation0] sm:$0x1] %vm63_vm10, %v62_v25  }
  0x88   :  { %v68_v26 = vpop.permute.xlu0 %67   ;;  %v74_v27 = vpop.permute.xlu1 %73  }
  0x89   :  { %70 = vst.msk [vmem:[#allocation0] sm:$0x1] %vm69_vm11, %v68_v26  }
  0x8a   :  { %76 = vst.msk [vmem:[#allocation0] sm:$0x1] %vm75_vm12, %v74_v27  }
  0x8c   :  { %v80_v28 = vpop.permute.xlu0 %79   ;;  %v86_v29 = vpop.permute.xlu1 %85  }
  0x8d   :  { %82 = vst.msk [vmem:[#allocation0] sm:$0x1] %vm81_vm13, %v80_v28  }
  0x8e   :  { %88 = vst.msk [vmem:[#allocation0] sm:$0x1] %vm87_vm14, %v86_v29  }
  0x90   :  { %v92_v30 = vpop.permute.xlu0 %91  }
  0x91   :  { %94 = vst.msk [vmem:[#allocation0] sm:$0x1] %vm93_vm15, %v92_v30  }
  0x98   :  { %v98_v31 = vld [vmem:[#allocation0] sm:$0x1] }
  0x99   :  { %100 = vst [vmem:[%s208_s1] sm:$0x1] %v98_v31 }

// kernel: conv_embedding_to_seq_fwd.53
= control target key start
LH: loop header
LB: loop body
LE: loop exit
PB: predicated region body
PF: predicated region fallthrough
CT: control target
= control target key end

     0   :  { %v42_v2 = vlaneseq  ;;  %s181_s5 = inlined_call_operand.vmem [shape: f32[1,128], index: 5, kind: input, shape index: {}]   ;;  %s182_s0 = inlined_call_operand.vmem [shape: f32[32,128], index: 0, kind: input, shape index: {}]   ;;  %s183_s4 = inlined_call_operand.vmem [shape: f32[1,128], index: 4, kind: input, shape index: {}]   ;;  %s184_s2 = inlined_call_operand.vmem [shape: f32[1,128], index: 2, kind: input, shape index: {}]   ;;  %s185_s3 = inlined_call_operand.vmem [shape: f32[1,128], index: 3, kind: input, shape index: {}]   ;;  %s186_s1 = inlined_call_operand.vmem [shape: f32[32,128], index: 1, kind: input, shape index: {}]   ;;  %s187_s6 = inlined_call_operand.vmem [shape: f32[32,128], index: 6, kind: output, shape index: {}]  }
   0x1   :  { %v38_v0 = vld [vmem:[%s181_s5] sm:$0x1]  ;;  %v24_v6 = vld [vmem:[%s182_s0 + $0x8] sm:$0xff]  ;;  %v25_v7 = vld [vmem:[%s182_s0 + $0x10] sm:$0xff] }
   0x2   :  { %v39_v1 = vadd.f32 1e-05, %v38_v0  ;;  %v43_v3 = vshrl.u32 %v42_v2, 7  ;;  %v23_v4 = vld [vmem:[%s182_s0] sm:$0xff]  ;;  %v26_v8 = vld [vmem:[%s182_s0 + $0x18] sm:$0xff]  ;;  %v74_v27 = vld [vmem:[%s186_s1 + $0x8] sm:$0xff] }
   0x3   :  { %v93_v5 = vld [vmem:[%s183_s4] ss:$0 sm:$0xff]  ;;  %v75_v28 = vld [vmem:[%s186_s1 + $0x10] sm:$0xff]  ;;  %v76_v29 = vld [vmem:[%s186_s1 + $0x18] sm:$0xff] }
   0x4   :  { %96 = vrsqrt.f32 %v39_v1  ;;  %v44_v9 = vsub.s32 0, %v43_v3  ;;  %v34_v10 = vsub.f32 %v23_v4, %v93_v5  ;;  %v35_v11 = vsub.f32 %v24_v6, %v93_v5  ;;  %v94_v16 = vld [vmem:[%s184_s2] ss:$0 sm:$0xff] }
   0x5   :  { %v36_v12 = vsub.f32 %v25_v7, %v93_v5  ;;  %v37_v13 = vsub.f32 %v26_v8, %v93_v5  ;;  %v95_v21 = vld [vmem:[%s185_s3] ss:$0 sm:$0xff] }
   0x6   :  { %v73_v23 = vld [vmem:[%s186_s1] sm:$0xff] }
   0xe   :  { %v97_v14 = vpop.eup %96 }
   0xf   :  { %v45_v15 = vrot.slane %v97_v14, %v44_v9 }
  0x11   :  { %v47_v17 = vmul.f32 %v45_v15, %v34_v10  ;;  %v48_v18 = vmul.f32 %v45_v15, %v35_v11  ;;  %v49_v19 = vmul.f32 %v45_v15, %v36_v12  ;;  %v50_v20 = vmul.f32 %v45_v15, %v37_v13 }
  0x13   :  { %v58_v22 = vmul.f32 %v94_v16, %v47_v17  ;;  %v59_v24 = vmul.f32 %v94_v16, %v48_v18  ;;  %v60_v25 = vmul.f32 %v94_v16, %v49_v19  ;;  %v61_v26 = vmul.f32 %v94_v16, %v50_v20 }
  0x15   :  { %v69_v30 = vadd.f32 %v95_v21, %v58_v22  ;;  %v70_v31 = vadd.f32 %v95_v21, %v59_v24  ;;  %v71_v32 = vadd.f32 %v95_v21, %v60_v25  ;;  %v72_v33 = vadd.f32 %v95_v21, %v61_v26 }
  0x17   :  { %v77_v34 = vadd.f32 %v73_v23, %v69_v30  ;;  %v78_v35 = vadd.f32 %v74_v27, %v70_v31  ;;  %v79_v36 = vadd.f32 %v75_v28, %v71_v32  ;;  %v80_v37 = vadd.f32 %v76_v29, %v72_v33 }
  0x19   :  { %v81_v38 = vmax.f32 %v77_v34, 0.0  ;;  %v82_v39 = vmax.f32 %v78_v35, 0.0  ;;  %v83_v40 = vmax.f32 %v79_v36, 0.0  ;;  %v84_v41 = vmax.f32 %v80_v37, 0.0 }
  0x1b   :  { %85 = vst [vmem:[%s187_s6] sm:$0xff] %v81_v38  ;;  %86 = vst [vmem:[%s187_s6 + $0x8] sm:$0xff] %v82_v39 }
  0x1c   :  { %87 = vst [vmem:[%s187_s6 + $0x10] sm:$0xff] %v83_v40  ;;  %88 = vst [vmem:[%s187_s6 + $0x18] sm:$0xff] %v84_v41 }

// kernel: conv_embedding_to_seq_fwd.50
= control target key start
LH: loop header
LB: loop body
LE: loop exit
PB: predicated region body
PF: predicated region fallthrough
CT: control target
= control target key end

     0   :  { %s1124_s12 = smov 0   ;;  %s1126_s13 = smov 0   ;;  %s1269_s0 = inlined_call_operand.vmem [shape: bf16[512,16], index: 0, kind: input, shape index: {}]   ;;  %s1270_s1 = inlined_call_operand.vmem [shape: bf16[16,128], index: 1, kind: input, shape index: {}]   ;;  %s1271_s2 = inlined_call_operand.vmem [shape: f32[1,128], index: 2, kind: input, shape index: {}]   ;;  %s1272_s3 = inlined_call_operand.vmem [shape: f32[512,128], index: 3, kind: output, shape index: {}]  }
   0x1   :  { %s1128_s14 = smov 0  }
   0x2 LB: > { %s32_s15 = sadd.s32 1, %s1098_s13  ;;  %p945_p0 = scmp.ge.s32.totalorder %s1102_s14, 1  ;;  %s1102_s14 = sphi %s1128_s14, %s13_s14   ;;  %s1098_s13 = sphi %s1126_s13, %s1274_s13   ;;  %s1094_s12 = sphi %s1124_s12, %s1273_s12  }
   0x3   : > { %p34_p1 = scmp.ge.s32.totalorder %s32_s15, 2  ;;  %p188_p2 = scmp.lt.s32.totalorder %s1102_s14, 3 }
   0x5   : > { %s1276_s15 = smov (%p34_p1, %s32_s15), 0  ;;  %p189_p3 = pnand %p945_p0, %p188_p2 }
   0x6   : > { %v1063_v0 = vld [vmem:[%s1270_s1] sm:$0xff] (!%p189_p3)   ;;  %s946_s18 = sshll.u32 (!%p189_p3), %s1094_s12, 5  ;;  %vm448_vm0 = vcmask (!%p189_p3), 130048  }
   0x7   : > { %192 = sbr.rel (%p189_p3) target bundleno = 262 (0x106), region = 32  ;;  %p230_p4 = scmp.lt.s32.totalorder (!%p189_p3), %s946_s18, 63  ;;  %1003 = vmatprep.subr.bf16.mxu0 (!%p189_p3), %v1063_v0  ;;  %1037 = vmatprep.subr.bf16.mxu1 (!%p189_p3), %v1063_v0  ;;  %v1189_v17 = vld [vmem:[%s1271_s2] ss:$0 sm:$0xff] (!%p189_p3) }
   0x8   : > { %1004 = vmatpush3.bf16.msra.mxu0 (!%p189_p3), %v1063_v0  ;;  %1038 = vmatpush3.bf16.msra.mxu1 (!%p189_p3), %v1063_v0 }
   0xe   : > { %s1278_s18 = smov (!%p230_p4, %s946_s18), 63 }
   0xf   : > { %s947_s19 = sshll.u32 %s1278_s18, 2  ;;  %s949_s23 = sshll.u32 %s1278_s18, 3 }
  0x10   : > { %s1151_s22 = scalar_lea.vmem %s1269_s0, %s947_s19  ;;  %s1194_s28 = scalar_lea.vmem %s1272_s3, %s949_s23 }
  0x11   : > { %v1064_v1 = vld [vmem:[%s1151_s22] sm:$0xff]   ;;  %v1066_v3 = vld [vmem:[%s1151_s22 + $0x8] sm:$0xff]   ;;  %v1068_v5 = vld [vmem:[%s1151_s22 + $0x10] sm:$0xff]  }
  0x12   : > { %v1065_v2 = vld [vmem:[%s1151_s22 + $0x40] sm:$0xff]   ;;  %1005 = vmatprep.mubr.msk.bf16.mxu0 %vm448_vm0, %v1064_v1  ;;  %v1067_v4 = vld [vmem:[%s1151_s22 + $0x48] sm:$0xff]   ;;  %v1069_v6 = vld [vmem:[%s1151_s22 + $0x50] sm:$0xff]  }
  0x13   : > { %1021 = vmatprep.mubr.msk.bf16.mxu1 %vm448_vm0, %v1065_v2  ;;  %1006 = vmatmul.mubr.msk.bf16.vlgmr.msra.gmra.mrb[0].mxu0 %vm448_vm0, %v1066_v3  ;;  %v1070_v7 = vld [vmem:[%s1151_s22 + $0x18] sm:$0xff]   ;;  %v1072_v9 = vld [vmem:[%s1151_s22 + $0x20] sm:$0xff]   ;;  %v1074_v11 = vld [vmem:[%s1151_s22 + $0x28] sm:$0xff]  }
  0x14   : > { %1022 = vmatmul.mubr.msk.bf16.vlgmr.msra.gmra.mrb[0].mxu1 %vm448_vm0, %v1067_v4  ;;  %1009 = vmatprep.mubr.msk.bf16.mxu0 %vm448_vm0, %v1068_v5  ;;  %v1071_v8 = vld [vmem:[%s1151_s22 + $0x58] sm:$0xff]   ;;  %v1073_v10 = vld [vmem:[%s1151_s22 + $0x60] sm:$0xff]   ;;  %v1075_v12 = vld [vmem:[%s1151_s22 + $0x68] sm:$0xff]  }
  0x15   : > { %1025 = vmatprep.mubr.msk.bf16.mxu1 %vm448_vm0, %v1069_v6  ;;  %v1076_v13 = vld [vmem:[%s1151_s22 + $0x30] sm:$0xff]   ;;  %v1078_v15 = vld [vmem:[%s1151_s22 + $0x38] sm:$0xff]  }
  0x16   : > { %v1077_v14 = vld [vmem:[%s1151_s22 + $0x70] sm:$0xff]   ;;  %v1079_v16 = vld [vmem:[%s1151_s22 + $0x78] sm:$0xff]  }
  0x1b   : > { %1010 = vmatmul.mubr.msk.bf16.gmra.mrb[4].mxu0 %vm448_vm0, %v1070_v7 }
  0x1c   : > { %1026 = vmatmul.mubr.msk.bf16.gmra.mrb[4].mxu1 %vm448_vm0, %v1071_v8  ;;  %1013 = vmatprep.mubr.msk.bf16.mxu0 %vm448_vm0, %v1072_v9 }
  0x1d   : > { %1029 = vmatprep.mubr.msk.bf16.mxu1 %vm448_vm0, %v1073_v10 }
  0x23   : > { %1014 = vmatmul.mubr.msk.bf16.gmra.mrb[8].mxu0 %vm448_vm0, %v1074_v11 }
  0x24   : > { %1030 = vmatmul.mubr.msk.bf16.gmra.mrb[8].mxu1 %vm448_vm0, %v1075_v12  ;;  %1017 = vmatprep.mubr.msk.bf16.mxu0 %vm448_vm0, %v1076_v13 }
  0x25   : > { %1033 = vmatprep.mubr.msk.bf16.mxu1 %vm448_vm0, %v1077_v14 }
  0x2b   : > { %1018 = vmatmul.mubr.msk.bf16.gmra.mrb[12].mxu0 %vm448_vm0, %v1078_v15 }
  0x2c   : > { %1034 = vmatmul.mubr.msk.bf16.gmra.mrb[12].mxu1 %vm448_vm0, %v1079_v16 }
  0xe6   : > { %v1007_v18 = vpop.f32.mrb[0].mxu0 }
  0xe7   : > { %v766_v19 = vadd.f32 %v1007_v18, %v1189_v17  ;;  %v1023_v20 = vpop.f32.mrb[0].mxu1  ;;  %v531_v21 = vpop.f32.mrb[1].mxu0 }
  0xe8   : > { %v782_v22 = vadd.f32 %v1023_v20, %v1189_v17  ;;  %v764_v23 = vadd.f32 %v1189_v17, %v531_v21  ;;  %v595_v24 = vpop.f32.mrb[1].mxu1  ;;  %v1008_v25 = vpop.f32.mrb[2].mxu0 }
  0xe9   : > { %798 = vst [vmem:[%s1194_s28 + $0x10] sm:$0xff] %v766_v19  ;;  %v780_v26 = vadd.f32 %v1189_v17, %v595_v24  ;;  %v767_v27 = vadd.f32 %v1008_v25, %v1189_v17  ;;  %v1024_v28 = vpop.f32.mrb[2].mxu1  ;;  %v534_v29 = vpop.f32.mrb[3].mxu0 }
  0xea   : > { %814 = vst [vmem:[%s1194_s28 + $0x90] sm:$0xff] %v782_v22  ;;  %796 = vst [vmem:[%s1194_s28] sm:$0xff] %v764_v23  ;;  %v783_v30 = vadd.f32 %v1024_v28, %v1189_v17  ;;  %v765_v31 = vadd.f32 %v1189_v17, %v534_v29  ;;  %v598_v32 = vpop.f32.mrb[3].mxu1 }
  0xeb   : > { %812 = vst [vmem:[%s1194_s28 + $0x80] sm:$0xff] %v780_v26  ;;  %799 = vst [vmem:[%s1194_s28 + $0x18] sm:$0xff] %v767_v27  ;;  %v781_v33 = vadd.f32 %v1189_v17, %v598_v32 }
  0xec   : > { %815 = vst [vmem:[%s1194_s28 + $0x98] sm:$0xff] %v783_v30  ;;  %797 = vst [vmem:[%s1194_s28 + $0x8] sm:$0xff] %v765_v31 }
  0xed   : > { %813 = vst [vmem:[%s1194_s28 + $0x88] sm:$0xff] %v781_v33 }
  0xee   : > { %v1011_v34 = vpop.f32.mrb[4].mxu0 }
  0xef   : > { %v770_v35 = vadd.f32 %v1011_v34, %v1189_v17  ;;  %v1027_v36 = vpop.f32.mrb[4].mxu1  ;;  %v547_v37 = vpop.f32.mrb[5].mxu0 }
  0xf0   : > { %v786_v38 = vadd.f32 %v1027_v36, %v1189_v17  ;;  %v768_v39 = vadd.f32 %v1189_v17, %v547_v37  ;;  %v611_v40 = vpop.f32.mrb[5].mxu1  ;;  %v1012_v41 = vpop.f32.mrb[6].mxu0 }
  0xf1   : > { %802 = vst [vmem:[%s1194_s28 + $0x30] sm:$0xff] %v770_v35  ;;  %v784_v42 = vadd.f32 %v1189_v17, %v611_v40  ;;  %v771_v43 = vadd.f32 %v1012_v41, %v1189_v17  ;;  %v1028_v44 = vpop.f32.mrb[6].mxu1  ;;  %v550_v45 = vpop.f32.mrb[7].mxu0 }
  0xf2   : > { %818 = vst [vmem:[%s1194_s28 + $0xb0] sm:$0xff] %v786_v38  ;;  %800 = vst [vmem:[%s1194_s28 + $0x20] sm:$0xff] %v768_v39  ;;  %v787_v46 = vadd.f32 %v1028_v44, %v1189_v17  ;;  %v769_v47 = vadd.f32 %v1189_v17, %v550_v45  ;;  %v614_v48 = vpop.f32.mrb[7].mxu1 }
  0xf3   : > { %816 = vst [vmem:[%s1194_s28 + $0xa0] sm:$0xff] %v784_v42  ;;  %803 = vst [vmem:[%s1194_s28 + $0x38] sm:$0xff] %v771_v43  ;;  %v785_v49 = vadd.f32 %v1189_v17, %v614_v48 }
  0xf4   : > { %819 = vst [vmem:[%s1194_s28 + $0xb8] sm:$0xff] %v787_v46  ;;  %801 = vst [vmem:[%s1194_s28 + $0x28] sm:$0xff] %v769_v47 }
  0xf5   : > { %817 = vst [vmem:[%s1194_s28 + $0xa8] sm:$0xff] %v785_v49 }
  0xf6   : > { %v1015_v50 = vpop.f32.mrb[8].mxu0 }
  0xf7   : > { %v774_v51 = vadd.f32 %v1015_v50, %v1189_v17  ;;  %v1031_v52 = vpop.f32.mrb[8].mxu1  ;;  %v563_v53 = vpop.f32.mrb[9].mxu0 }
  0xf8   : > { %v790_v54 = vadd.f32 %v1031_v52, %v1189_v17  ;;  %v772_v55 = vadd.f32 %v1189_v17, %v563_v53  ;;  %v627_v56 = vpop.f32.mrb[9].mxu1  ;;  %v1016_v57 = vpop.f32.mrb[10].mxu0 }
  0xf9   : > { %806 = vst [vmem:[%s1194_s28 + $0x50] sm:$0xff] %v774_v51  ;;  %v788_v58 = vadd.f32 %v1189_v17, %v627_v56  ;;  %v775_v59 = vadd.f32 %v1016_v57, %v1189_v17  ;;  %v1032_v60 = vpop.f32.mrb[10].mxu1  ;;  %v566_v61 = vpop.f32.mrb[11].mxu0 }
  0xfa   : > { %822 = vst [vmem:[%s1194_s28 + $0xd0] sm:$0xff] %v790_v54  ;;  %804 = vst [vmem:[%s1194_s28 + $0x40] sm:$0xff] %v772_v55  ;;  %v791_v62 = vadd.f32 %v1032_v60, %v1189_v17  ;;  %v773_v63 = vadd.f32 %v1189_v17, %v566_v61  ;;  %v630_v0 = vpop.f32.mrb[11].mxu1 }
  0xfb   : > { %820 = vst [vmem:[%s1194_s28 + $0xc0] sm:$0xff] %v788_v58  ;;  %807 = vst [vmem:[%s1194_s28 + $0x58] sm:$0xff] %v775_v59  ;;  %v789_v1 = vadd.f32 %v1189_v17, %v630_v0 }
  0xfc   : > { %823 = vst [vmem:[%s1194_s28 + $0xd8] sm:$0xff] %v791_v62  ;;  %805 = vst [vmem:[%s1194_s28 + $0x48] sm:$0xff] %v773_v63 }
  0xfd   : > { %821 = vst [vmem:[%s1194_s28 + $0xc8] sm:$0xff] %v789_v1 }
  0xfe   : > { %v1019_v2 = vpop.f32.mrb[12].mxu0 }
  0xff   : > { %v778_v3 = vadd.f32 %v1019_v2, %v1189_v17  ;;  %v1035_v4 = vpop.f32.mrb[12].mxu1  ;;  %v579_v5 = vpop.f32.mrb[13].mxu0 }
 0x100   : > { %v794_v6 = vadd.f32 %v1035_v4, %v1189_v17  ;;  %v776_v7 = vadd.f32 %v1189_v17, %v579_v5  ;;  %v643_v8 = vpop.f32.mrb[13].mxu1  ;;  %v1020_v9 = vpop.f32.mrb[14].mxu0 }
 0x101   : > { %810 = vst [vmem:[%s1194_s28 + $0x70] sm:$0xff] %v778_v3  ;;  %v792_v10 = vadd.f32 %v1189_v17, %v643_v8  ;;  %v779_v11 = vadd.f32 %v1020_v9, %v1189_v17  ;;  %v1036_v12 = vpop.f32.mrb[14].mxu1  ;;  %v582_v13 = vpop.f32.mrb[15].mxu0 }
 0x102   : > { %826 = vst [vmem:[%s1194_s28 + $0xf0] sm:$0xff] %v794_v6  ;;  %808 = vst [vmem:[%s1194_s28 + $0x60] sm:$0xff] %v776_v7  ;;  %v795_v14 = vadd.f32 %v1036_v12, %v1189_v17  ;;  %v777_v15 = vadd.f32 %v1189_v17, %v582_v13  ;;  %v646_v16 = vpop.f32.mrb[15].mxu1 }
 0x103   : > { %824 = vst [vmem:[%s1194_s28 + $0xe0] sm:$0xff] %v792_v10  ;;  %811 = vst [vmem:[%s1194_s28 + $0x78] sm:$0xff] %v779_v11  ;;  %v793_v18 = vadd.f32 %v1189_v17, %v646_v16 }
 0x104   : > { %827 = vst [vmem:[%s1194_s28 + $0xf8] sm:$0xff] %v795_v14  ;;  %809 = vst [vmem:[%s1194_s28 + $0x68] sm:$0xff] %v777_v15 }
 0x105   : > { %825 = vst [vmem:[%s1194_s28 + $0xe8] sm:$0xff] %v793_v18 }
 0x106 PF: > { %s13_s14 = sadd.s32 1, %s1102_s14   ;;  %s1273_s12 = smov %s1098_s13 }
 0x107   : > { %p10_p5 = scmp.ge.s32.totalorder %s13_s14, 4   ;;  %s1274_s13 = smov %s1276_s15 }
 0x109   :  { %12 = sbr.rel (!%p10_p5) target bundleno = 2 (0x2), region = 76 }

// kernel: conv_embedding_to_seq_fwd.55
= control target key start
LH: loop header
LB: loop body
LE: loop exit
PB: predicated region body
PF: predicated region fallthrough
CT: control target
= control target key end

     0   :  { %s1280_s12 = smov 0   ;;  %s1282_s13 = smov 0   ;;  %s1437_s0 = inlined_call_operand.vmem [shape: bf16[512,80], index: 0, kind: input, shape index: {}]   ;;  %s1438_s1 = inlined_call_operand.vmem [shape: bf16[80,128], index: 1, kind: input, shape index: {}]   ;;  %s1439_s2 = inlined_call_operand.vmem [shape: f32[1,128], index: 2, kind: input, shape index: {}]   ;;  %s1440_s3 = inlined_call_operand.vmem [shape: f32[512,128], index: 3, kind: output, shape index: {}]  }
   0x1   :  { %s1284_s14 = smov 0  }
   0x2 LB: > { %s32_s15 = sadd.s32 1, %s1254_s13  ;;  %p1073_p0 = scmp.ge.s32.totalorder %s1258_s14, 1  ;;  %s1258_s14 = sphi %s1284_s14, %s13_s14   ;;  %s1254_s13 = sphi %s1282_s13, %s1442_s13   ;;  %s1250_s12 = sphi %s1280_s12, %s1441_s12  }
   0x3   : > { %p34_p1 = scmp.ge.s32.totalorder %s32_s15, 2  ;;  %p188_p2 = scmp.lt.s32.totalorder %s1258_s14, 3 }
   0x5   : > { %s1444_s15 = smov (%p34_p1, %s32_s15), 0  ;;  %p189_p3 = pnand %p1073_p0, %p188_p2 }
   0x6   : > { %v1215_v0 = vld [vmem:[%s1438_s1] sm:$0xff] (!%p189_p3)   ;;  %s1074_s18 = sshll.u32 (!%p189_p3), %s1250_s12, 5  ;;  %v1216_v1 = vld [vmem:[%s1438_s1 + $0x8] sm:$0xff] (!%p189_p3)   ;;  %v1217_v2 = vld [vmem:[%s1438_s1 + $0x10] sm:$0xff] (!%p189_p3)   ;;  %vm480_vm0 = vcmask (!%p189_p3), 654336  }
   0x7   : > { %192 = sbr.rel (%p189_p3) target bundleno = 276 (0x114), region = 32  ;;  %p230_p4 = scmp.lt.s32.totalorder (!%p189_p3), %s1074_s18, 63  ;;  %1139 = vmatprep.subr.bf16.mxu0 (!%p189_p3), %v1215_v0  ;;  %1181 = vmatprep.subr.bf16.mxu1 (!%p189_p3), %v1215_v0  ;;  %v1218_v3 = vld [vmem:[%s1438_s1 + $0x18] sm:$0xff] (!%p189_p3)   ;;  %v1219_v6 = vld [vmem:[%s1438_s1 + $0x20] sm:$0xff] (!%p189_p3)  }
   0x8   : > { %1140 = vmatpush3.bf16.msra.mxu0 (!%p189_p3), %v1215_v0  ;;  %1186 = vmatpush3.bf16.msra.mxu1 (!%p189_p3), %v1215_v0  ;;  %v1356_v21 = vld [vmem:[%s1439_s2] ss:$0 sm:$0xff] (!%p189_p3) }
   0x9   : > { %1141 = vmatprep.subr.bf16.mxu0 (!%p189_p3), %v1216_v1  ;;  %1182 = vmatprep.subr.bf16.mxu1 (!%p189_p3), %v1216_v1 }
   0xc   : > { %1142 = vmatpush3.bf16.msra.mxu0 (!%p189_p3), %v1216_v1  ;;  %1187 = vmatpush3.bf16.msra.mxu1 (!%p189_p3), %v1216_v1 }
   0xd   : > { %1143 = vmatprep.subr.bf16.mxu0 (!%p189_p3), %v1217_v2  ;;  %1183 = vmatprep.subr.bf16.mxu1 (!%p189_p3), %v1217_v2 }
   0xe   : > { %s1446_s18 = smov (!%p230_p4, %s1074_s18), 63 }
   0xf   : > { %s1075_s23 = sshll.u32 %s1446_s18, 2  ;;  %s1077_s6 = sshll.u32 %s1446_s18, 3 }
  0x10   : > { %s1316_s28 = scalar_lea.vmem %s1437_s0, %s1075_s23  ;;  %1144 = vmatpush3.bf16.msra.mxu0 %v1217_v2  ;;  %1188 = vmatpush3.bf16.msra.mxu1 %v1217_v2  ;;  %s1366_s9 = scalar_lea.vmem %s1440_s3, %s1077_s6 }
  0x11   : > { %v1220_v4 = vld [vmem:[%s1316_s28] sm:$0xff]   ;;  %1145 = vmatprep.subr.bf16.mxu0 %v1218_v3  ;;  %1184 = vmatprep.subr.bf16.mxu1 %v1218_v3  ;;  %v1222_v7 = vld [vmem:[%s1316_s28 + $0x8] sm:$0xff]   ;;  %v1224_v9 = vld [vmem:[%s1316_s28 + $0x10] sm:$0xff]  }
  0x12   : > { %v1221_v5 = vld [vmem:[%s1316_s28 + $0x40] sm:$0xff]   ;;  %1149 = vmatprep.mubr.msk.bf16.mxu0 %vm480_vm0, %v1220_v4  ;;  %v1223_v8 = vld [vmem:[%s1316_s28 + $0x48] sm:$0xff]   ;;  %v1225_v10 = vld [vmem:[%s1316_s28 + $0x50] sm:$0xff]  }
  0x13   : > { %1165 = vmatprep.mubr.msk.bf16.mxu1 %vm480_vm0, %v1221_v5  ;;  %v1226_v11 = vld [vmem:[%s1316_s28 + $0x18] sm:$0xff]   ;;  %v1228_v13 = vld [vmem:[%s1316_s28 + $0x20] sm:$0xff]   ;;  %v1230_v15 = vld [vmem:[%s1316_s28 + $0x28] sm:$0xff]  }
  0x14   : > { %1146 = vmatpush3.bf16.msra.mxu0 %v1218_v3  ;;  %1189 = vmatpush3.bf16.msra.mxu1 %v1218_v3  ;;  %v1227_v12 = vld [vmem:[%s1316_s28 + $0x58] sm:$0xff]   ;;  %v1229_v14 = vld [vmem:[%s1316_s28 + $0x60] sm:$0xff]   ;;  %v1231_v16 = vld [vmem:[%s1316_s28 + $0x68] sm:$0xff]  }
  0x15   : > { %1147 = vmatprep.subr.bf16.mxu0 %v1219_v6  ;;  %1185 = vmatprep.subr.bf16.mxu1 %v1219_v6  ;;  %v1232_v17 = vld [vmem:[%s1316_s28 + $0x30] sm:$0xff]   ;;  %v1234_v19 = vld [vmem:[%s1316_s28 + $0x38] sm:$0xff]  }
  0x16   : > { %v1233_v18 = vld [vmem:[%s1316_s28 + $0x70] sm:$0xff]   ;;  %v1235_v20 = vld [vmem:[%s1316_s28 + $0x78] sm:$0xff]  }
  0x18   : > { %1148 = vmatpush3.bf16.msra.mxu0 %v1219_v6  ;;  %1190 = vmatpush3.bf16.msra.mxu1 %v1219_v6 }
  0x1b   : > { %1150 = vmatmul.mubr.msk.bf16.vlgmr.msra.gmra.mrb[0].mxu0 %vm480_vm0, %v1222_v7  ;;  %1166 = vmatmul.mubr.msk.bf16.vlgmr.msra.gmra.mrb[0].mxu1 %vm480_vm0, %v1223_v8 }
  0x1c   : > { %1153 = vmatprep.mubr.msk.bf16.mxu0 %vm480_vm0, %v1224_v9  ;;  %1169 = vmatprep.mubr.msk.bf16.mxu1 %vm480_vm0, %v1225_v10 }
  0x23   : > { %1154 = vmatmul.mubr.msk.bf16.gmra.mrb[4].mxu0 %vm480_vm0, %v1226_v11  ;;  %1170 = vmatmul.mubr.msk.bf16.gmra.mrb[4].mxu1 %vm480_vm0, %v1227_v12 }
  0x24   : > { %1157 = vmatprep.mubr.msk.bf16.mxu0 %vm480_vm0, %v1228_v13  ;;  %1173 = vmatprep.mubr.msk.bf16.mxu1 %vm480_vm0, %v1229_v14 }
  0x2b   : > { %1158 = vmatmul.mubr.msk.bf16.gmra.mrb[8].mxu0 %vm480_vm0, %v1230_v15  ;;  %1174 = vmatmul.mubr.msk.bf16.gmra.mrb[8].mxu1 %vm480_vm0, %v1231_v16 }
  0x2c   : > { %1161 = vmatprep.mubr.msk.bf16.mxu0 %vm480_vm0, %v1232_v17  ;;  %1177 = vmatprep.mubr.msk.bf16.mxu1 %vm480_vm0, %v1233_v18 }
  0x33   : > { %1162 = vmatmul.mubr.msk.bf16.gmra.mrb[12].mxu0 %vm480_vm0, %v1234_v19  ;;  %1178 = vmatmul.mubr.msk.bf16.gmra.mrb[12].mxu1 %vm480_vm0, %v1235_v20 }
  0xee   : > { %v1151_v22 = vpop.f32.mrb[0].mxu0  ;;  %v1167_v23 = vpop.f32.mrb[0].mxu1 }
  0xef   : > { %v798_v24 = vadd.f32 %v1151_v22, %v1356_v21  ;;  %v814_v25 = vadd.f32 %v1167_v23, %v1356_v21  ;;  %v563_v26 = vpop.f32.mrb[1].mxu0  ;;  %v627_v27 = vpop.f32.mrb[1].mxu1 }
  0xf0   : > { %v796_v28 = vadd.f32 %v1356_v21, %v563_v26  ;;  %v812_v29 = vadd.f32 %v1356_v21, %v627_v27  ;;  %v1152_v30 = vpop.f32.mrb[2].mxu0  ;;  %v1168_v31 = vpop.f32.mrb[2].mxu1 }
  0xf1   : > { %vm830_vm1 = vcmp.ge.f32.partialorder %v798_v24, 0.0  ;;  %v862_v32 = vmul.f32 0.01, %v798_v24  ;;  %vm846_vm2 = vcmp.ge.f32.partialorder %v814_v25, 0.0  ;;  %v878_v33 = vmul.f32 0.01, %v814_v25 }
  0xf2   : > { %vm828_vm3 = vcmp.ge.f32.partialorder %v796_v28, 0.0  ;;  %v860_v34 = vmul.f32 0.01, %v796_v28  ;;  %vm844_vm4 = vcmp.ge.f32.partialorder %v812_v29, 0.0  ;;  %v876_v35 = vmul.f32 0.01, %v812_v29 }
  0xf3   : > { %v894_v36 = vsel %vm830_vm1, %v798_v24, %v862_v32  ;;  %v910_v37 = vsel %vm846_vm2, %v814_v25, %v878_v33  ;;  %v799_v38 = vadd.f32 %v1152_v30, %v1356_v21  ;;  %v815_v39 = vadd.f32 %v1168_v31, %v1356_v21  ;;  %v566_v40 = vpop.f32.mrb[3].mxu0  ;;  %v630_v41 = vpop.f32.mrb[3].mxu1 }
  0xf4   : > { %926 = vst [vmem:[%s1366_s9 + $0x10] sm:$0xff] %v894_v36  ;;  %942 = vst [vmem:[%s1366_s9 + $0x90] sm:$0xff] %v910_v37  ;;  %v892_v42 = vsel %vm828_vm3, %v796_v28, %v860_v34  ;;  %v908_v43 = vsel %vm844_vm4, %v812_v29, %v876_v35  ;;  %v797_v44 = vadd.f32 %v1356_v21, %v566_v40 }
  0xf5   : > { %v813_v45 = vadd.f32 %v1356_v21, %v630_v41  ;;  %924 = vst [vmem:[%s1366_s9] sm:$0xff] %v892_v42  ;;  %940 = vst [vmem:[%s1366_s9 + $0x80] sm:$0xff] %v908_v43  ;;  %vm831_vm5 = vcmp.ge.f32.partialorder %v799_v38, 0.0  ;;  %v863_v46 = vmul.f32 0.01, %v799_v38  ;;  %vm847_vm6 = vcmp.ge.f32.partialorder %v815_v39, 0.0 }
  0xf6   : > { %v879_v47 = vmul.f32 0.01, %v815_v39  ;;  %vm829_vm7 = vcmp.ge.f32.partialorder %v797_v44, 0.0  ;;  %v861_v48 = vmul.f32 0.01, %v797_v44  ;;  %v1155_v52 = vpop.f32.mrb[4].mxu0 }
  0xf7   : > { %vm845_vm8 = vcmp.ge.f32.partialorder %v813_v45, 0.0  ;;  %v877_v49 = vmul.f32 0.01, %v813_v45  ;;  %v895_v50 = vsel %vm831_vm5, %v799_v38, %v863_v46  ;;  %v1171_v53 = vpop.f32.mrb[4].mxu1  ;;  %v802_v56 = vadd.f32 %v1155_v52, %v1356_v21  ;;  %v579_v58 = vpop.f32.mrb[5].mxu0 }
  0xf8   : > { %v911_v51 = vsel %vm847_vm6, %v815_v39, %v879_v47  ;;  %927 = vst [vmem:[%s1366_s9 + $0x18] sm:$0xff] %v895_v50  ;;  %v893_v54 = vsel %vm829_vm7, %v797_v44, %v861_v48  ;;  %v818_v57 = vadd.f32 %v1171_v53, %v1356_v21  ;;  %v643_v59 = vpop.f32.mrb[5].mxu1  ;;  %v800_v60 = vadd.f32 %v1356_v21, %v579_v58  ;;  %v1156_v62 = vpop.f32.mrb[6].mxu0 }
  0xf9   : > { %943 = vst [vmem:[%s1366_s9 + $0x98] sm:$0xff] %v911_v51  ;;  %v909_v55 = vsel %vm845_vm8, %v813_v45, %v877_v49  ;;  %925 = vst [vmem:[%s1366_s9 + $0x8] sm:$0xff] %v893_v54  ;;  %v816_v61 = vadd.f32 %v1356_v21, %v643_v59  ;;  %v1172_v63 = vpop.f32.mrb[6].mxu1  ;;  %vm834_vm9 = vcmp.ge.f32.partialorder %v802_v56, 0.0  ;;  %v866_v0 = vmul.f32 0.01, %v802_v56 }
  0xfa   : > { %941 = vst [vmem:[%s1366_s9 + $0x88] sm:$0xff] %v909_v55  ;;  %vm850_vm10 = vcmp.ge.f32.partialorder %v818_v57, 0.0  ;;  %v882_v1 = vmul.f32 0.01, %v818_v57  ;;  %vm832_vm11 = vcmp.ge.f32.partialorder %v800_v60, 0.0  ;;  %v803_v6 = vadd.f32 %v1156_v62, %v1356_v21  ;;  %v582_v8 = vpop.f32.mrb[7].mxu0 }
  0xfb   : > { %v864_v2 = vmul.f32 0.01, %v800_v60  ;;  %vm848_vm12 = vcmp.ge.f32.partialorder %v816_v61, 0.0  ;;  %v880_v3 = vmul.f32 0.01, %v816_v61  ;;  %v898_v4 = vsel %vm834_vm9, %v802_v56, %v866_v0  ;;  %v646_v9 = vpop.f32.mrb[7].mxu1 }
  0xfc   : > { %v914_v5 = vsel %vm850_vm10, %v818_v57, %v882_v1  ;;  %v819_v7 = vadd.f32 %v1172_v63, %v1356_v21  ;;  %930 = vst [vmem:[%s1366_s9 + $0x30] sm:$0xff] %v898_v4  ;;  %v801_v12 = vadd.f32 %v1356_v21, %v582_v8  ;;  %v817_v13 = vadd.f32 %v1356_v21, %v646_v9 }
  0xfd   : > { %946 = vst [vmem:[%s1366_s9 + $0xb0] sm:$0xff] %v914_v5  ;;  %v896_v10 = vsel %vm832_vm11, %v800_v60, %v864_v2  ;;  %v912_v11 = vsel %vm848_vm12, %v816_v61, %v880_v3  ;;  %vm835_vm13 = vcmp.ge.f32.partialorder %v803_v6, 0.0  ;;  %v867_v14 = vmul.f32 0.01, %v803_v6 }
  0xfe   : > { %928 = vst [vmem:[%s1366_s9 + $0x20] sm:$0xff] %v896_v10  ;;  %944 = vst [vmem:[%s1366_s9 + $0xa0] sm:$0xff] %v912_v11  ;;  %vm851_vm14 = vcmp.ge.f32.partialorder %v819_v7, 0.0  ;;  %v883_v15 = vmul.f32 0.01, %v819_v7  ;;  %vm833_vm15 = vcmp.ge.f32.partialorder %v801_v12, 0.0 }
  0xff   : > { %v865_v16 = vmul.f32 0.01, %v801_v12  ;;  %vm849_vm0 = vcmp.ge.f32.partialorder %v817_v13, 0.0  ;;  %v881_v17 = vmul.f32 0.01, %v817_v13  ;;  %v899_v18 = vsel %vm835_vm13, %v803_v6, %v867_v14  ;;  %v1159_v20 = vpop.f32.mrb[8].mxu0 }
 0x100   : > { %v915_v19 = vsel %vm851_vm14, %v819_v7, %v883_v15  ;;  %v1175_v22 = vpop.f32.mrb[8].mxu1  ;;  %931 = vst [vmem:[%s1366_s9 + $0x38] sm:$0xff] %v899_v18  ;;  %v806_v25 = vadd.f32 %v1159_v20, %v1356_v21  ;;  %v595_v27 = vpop.f32.mrb[9].mxu0 }
 0x101   : > { %947 = vst [vmem:[%s1366_s9 + $0xb8] sm:$0xff] %v915_v19  ;;  %v897_v23 = vsel %vm833_vm15, %v801_v12, %v865_v16  ;;  %v913_v24 = vsel %vm849_vm0, %v817_v13, %v881_v17  ;;  %v822_v26 = vadd.f32 %v1175_v22, %v1356_v21  ;;  %v659_v28 = vpop.f32.mrb[9].mxu1  ;;  %v804_v29 = vadd.f32 %v1356_v21, %v595_v27  ;;  %v1160_v31 = vpop.f32.mrb[10].mxu0 }
 0x102   : > { %929 = vst [vmem:[%s1366_s9 + $0x28] sm:$0xff] %v897_v23  ;;  %945 = vst [vmem:[%s1366_s9 + $0xa8] sm:$0xff] %v913_v24  ;;  %v820_v30 = vadd.f32 %v1356_v21, %v659_v28  ;;  %v1176_v32 = vpop.f32.mrb[10].mxu1  ;;  %vm838_vm1 = vcmp.ge.f32.partialorder %v806_v25, 0.0  ;;  %v870_v33 = vmul.f32 0.01, %v806_v25  ;;  %v807_v39 = vadd.f32 %v1160_v31, %v1356_v21 }
 0x103   : > { %vm854_vm2 = vcmp.ge.f32.partialorder %v822_v26, 0.0  ;;  %v886_v34 = vmul.f32 0.01, %v822_v26  ;;  %vm836_vm3 = vcmp.ge.f32.partialorder %v804_v29, 0.0  ;;  %v868_v35 = vmul.f32 0.01, %v804_v29 }
 0x104   : > { %vm852_vm4 = vcmp.ge.f32.partialorder %v820_v30, 0.0  ;;  %v884_v36 = vmul.f32 0.01, %v820_v30  ;;  %v902_v37 = vsel %vm838_vm1, %v806_v25, %v870_v33  ;;  %v823_v40 = vadd.f32 %v1176_v32, %v1356_v21  ;;  %v598_v41 = vpop.f32.mrb[11].mxu0  ;;  %v662_v42 = vpop.f32.mrb[11].mxu1 }
 0x105   : > { %v918_v38 = vsel %vm854_vm2, %v822_v26, %v886_v34  ;;  %934 = vst [vmem:[%s1366_s9 + $0x50] sm:$0xff] %v902_v37  ;;  %v900_v43 = vsel %vm836_vm3, %v804_v29, %v868_v35  ;;  %v805_v45 = vadd.f32 %v1356_v21, %v598_v41  ;;  %v821_v46 = vadd.f32 %v1356_v21, %v662_v42 }
 0x106   : > { %950 = vst [vmem:[%s1366_s9 + $0xd0] sm:$0xff] %v918_v38  ;;  %v916_v44 = vsel %vm852_vm4, %v820_v30, %v884_v36  ;;  %v1163_v47 = vpop.f32.mrb[12].mxu0  ;;  %v1179_v48 = vpop.f32.mrb[12].mxu1  ;;  %932 = vst [vmem:[%s1366_s9 + $0x40] sm:$0xff] %v900_v43  ;;  %vm839_vm5 = vcmp.ge.f32.partialorder %v807_v39, 0.0  ;;  %vm855_vm6 = vcmp.ge.f32.partialorder %v823_v40, 0.0 }
 0x107   : > { %948 = vst [vmem:[%s1366_s9 + $0xc0] sm:$0xff] %v916_v44  ;;  %v871_v49 = vmul.f32 0.01, %v807_v39  ;;  %v887_v50 = vmul.f32 0.01, %v823_v40  ;;  %vm837_vm7 = vcmp.ge.f32.partialorder %v805_v45, 0.0  ;;  %v810_v55 = vadd.f32 %v1163_v47, %v1356_v21 }
 0x108   : > { %v869_v51 = vmul.f32 0.01, %v805_v45  ;;  %vm853_vm8 = vcmp.ge.f32.partialorder %v821_v46, 0.0  ;;  %v885_v52 = vmul.f32 0.01, %v821_v46  ;;  %v826_v56 = vadd.f32 %v1179_v48, %v1356_v21  ;;  %v611_v57 = vpop.f32.mrb[13].mxu0 }
 0x109   : > { %v903_v53 = vsel %vm839_vm5, %v807_v39, %v871_v49  ;;  %v919_v54 = vsel %vm855_vm6, %v823_v40, %v887_v50  ;;  %v675_v58 = vpop.f32.mrb[13].mxu1  ;;  %v808_v61 = vadd.f32 %v1356_v21, %v611_v57  ;;  %v1164_v63 = vpop.f32.mrb[14].mxu0  ;;  %vm842_vm9 = vcmp.ge.f32.partialorder %v810_v55, 0.0 }
 0x10a   : > { %935 = vst [vmem:[%s1366_s9 + $0x58] sm:$0xff] %v903_v53  ;;  %951 = vst [vmem:[%s1366_s9 + $0xd8] sm:$0xff] %v919_v54  ;;  %v901_v59 = vsel %vm837_vm7, %v805_v45, %v869_v51  ;;  %v917_v60 = vsel %vm853_vm8, %v821_v46, %v885_v52  ;;  %v824_v62 = vadd.f32 %v1356_v21, %v675_v58  ;;  %v1180_v0 = vpop.f32.mrb[14].mxu1  ;;  %v874_v1 = vmul.f32 0.01, %v810_v55  ;;  %v614_v9 = vpop.f32.mrb[15].mxu0 }
 0x10b   : > { %933 = vst [vmem:[%s1366_s9 + $0x48] sm:$0xff] %v901_v59  ;;  %949 = vst [vmem:[%s1366_s9 + $0xc8] sm:$0xff] %v917_v60  ;;  %vm858_vm10 = vcmp.ge.f32.partialorder %v826_v56, 0.0  ;;  %v890_v2 = vmul.f32 0.01, %v826_v56  ;;  %vm840_vm11 = vcmp.ge.f32.partialorder %v808_v61, 0.0  ;;  %v811_v7 = vadd.f32 %v1164_v63, %v1356_v21 }
 0x10c   : > { %v872_v3 = vmul.f32 0.01, %v808_v61  ;;  %vm856_vm12 = vcmp.ge.f32.partialorder %v824_v62, 0.0  ;;  %v888_v4 = vmul.f32 0.01, %v824_v62  ;;  %v906_v5 = vsel %vm842_vm9, %v810_v55, %v874_v1  ;;  %v678_v10 = vpop.f32.mrb[15].mxu1 }
 0x10d   : > { %v922_v6 = vsel %vm858_vm10, %v826_v56, %v890_v2  ;;  %v827_v8 = vadd.f32 %v1180_v0, %v1356_v21  ;;  %938 = vst [vmem:[%s1366_s9 + $0x70] sm:$0xff] %v906_v5  ;;  %v809_v13 = vadd.f32 %v1356_v21, %v614_v9  ;;  %v825_v14 = vadd.f32 %v1356_v21, %v678_v10 }
 0x10e   : > { %954 = vst [vmem:[%s1366_s9 + $0xf0] sm:$0xff] %v922_v6  ;;  %v904_v11 = vsel %vm840_vm11, %v808_v61, %v872_v3  ;;  %v920_v12 = vsel %vm856_vm12, %v824_v62, %v888_v4  ;;  %vm843_vm13 = vcmp.ge.f32.partialorder %v811_v7, 0.0  ;;  %v875_v15 = vmul.f32 0.01, %v811_v7 }
 0x10f   : > { %936 = vst [vmem:[%s1366_s9 + $0x60] sm:$0xff] %v904_v11  ;;  %952 = vst [vmem:[%s1366_s9 + $0xe0] sm:$0xff] %v920_v12  ;;  %vm859_vm14 = vcmp.ge.f32.partialorder %v827_v8, 0.0  ;;  %v891_v16 = vmul.f32 0.01, %v827_v8  ;;  %vm841_vm15 = vcmp.ge.f32.partialorder %v809_v13, 0.0 }
 0x110   : > { %v873_v17 = vmul.f32 0.01, %v809_v13  ;;  %vm857_vm0 = vcmp.ge.f32.partialorder %v825_v14, 0.0  ;;  %v889_v18 = vmul.f32 0.01, %v825_v14  ;;  %v907_v19 = vsel %vm843_vm13, %v811_v7, %v875_v15 }
 0x111   : > { %v923_v20 = vsel %vm859_vm14, %v827_v8, %v891_v16  ;;  %939 = vst [vmem:[%s1366_s9 + $0x78] sm:$0xff] %v907_v19 }
 0x112   : > { %955 = vst [vmem:[%s1366_s9 + $0xf8] sm:$0xff] %v923_v20  ;;  %v905_v22 = vsel %vm841_vm15, %v809_v13, %v873_v17  ;;  %v921_v23 = vsel %vm857_vm0, %v825_v14, %v889_v18 }
 0x113   : > { %937 = vst [vmem:[%s1366_s9 + $0x68] sm:$0xff] %v905_v22  ;;  %953 = vst [vmem:[%s1366_s9 + $0xe8] sm:$0xff] %v921_v23 }
 0x114 PF: > { %s13_s14 = sadd.s32 1, %s1258_s14   ;;  %s1441_s12 = smov %s1254_s13 }
 0x115   : > { %p10_p5 = scmp.ge.s32.totalorder %s13_s14, 4   ;;  %s1442_s13 = smov %s1444_s15 }
 0x117   :  { %12 = sbr.rel (!%p10_p5) target bundleno = 2 (0x2), region = 76 }

// kernel: conv_embedding_to_seq_fwd.57
= control target key start
LH: loop header
LB: loop body
LE: loop exit
PB: predicated region body
PF: predicated region fallthrough
CT: control target
= control target key end

     0   :  { %vm115_vm0 = vcmask 130048   ;;  %s493_s1 = inlined_call_operand.vmem [shape: bf16[16,128], index: 1, kind: input, shape index: {}]   ;;  %s494_s0 = inlined_call_operand.vmem [shape: bf16[128,16], index: 0, kind: input, shape index: {}]   ;;  %s495_s2 = inlined_call_operand.vmem [shape: f32[1,128], index: 2, kind: input, shape index: {}]   ;;  %s496_s3 = inlined_call_operand.vmem [shape: f32[128,128], index: 3, kind: output, shape index: {}]  }
   0x1   :  { %v378_v0 = vld [vmem:[%s493_s1] sm:$0xff]   ;;  %v381_v3 = vld [vmem:[%s494_s0 + $0x8] sm:$0xff]   ;;  %v383_v5 = vld [vmem:[%s494_s0 + $0x10] sm:$0xff]  }
   0x2   :  { %v379_v1 = vld [vmem:[%s494_s0] sm:$0xff]   ;;  %358 = vmatprep.subr.bf16.mxu0 %v378_v0  ;;  %376 = vmatprep.subr.bf16.mxu1 %v378_v0  ;;  %v382_v4 = vld [vmem:[%s494_s0 + $0x28] sm:$0xff]   ;;  %v384_v6 = vld [vmem:[%s494_s0 + $0x30] sm:$0xff]  }
   0x3   :  { %v380_v2 = vld [vmem:[%s494_s0 + $0x20] sm:$0xff]   ;;  %359 = vmatpush3.bf16.msra.mxu0 %v378_v0  ;;  %377 = vmatpush3.bf16.msra.mxu1 %v378_v0  ;;  %v385_v7 = vld [vmem:[%s494_s0 + $0x18] sm:$0xff]  }
   0x4   :  { %360 = vmatprep.mubr.msk.bf16.mxu0 %vm115_vm0, %v379_v1  ;;  %368 = vmatprep.mubr.msk.bf16.mxu1 %vm115_vm0, %v380_v2  ;;  %v386_v8 = vld [vmem:[%s494_s0 + $0x38] sm:$0xff]   ;;  %v348_v9 = vld [vmem:[%s495_s2] ss:$0 sm:$0xff] }
   0x6   :  { %361 = vmatmul.mubr.msk.bf16.vlgmr.msra.gmra.mrb[0].mxu0 %vm115_vm0, %v381_v3  ;;  %369 = vmatmul.mubr.msk.bf16.vlgmr.msra.gmra.mrb[0].mxu1 %vm115_vm0, %v382_v4 }
   0x7   :  { %364 = vmatprep.mubr.msk.bf16.mxu0 %vm115_vm0, %v383_v5  ;;  %372 = vmatprep.mubr.msk.bf16.mxu1 %vm115_vm0, %v384_v6 }
   0xe   :  { %365 = vmatmul.mubr.msk.bf16.gmra.mrb[4].mxu0 %vm115_vm0, %v385_v7  ;;  %373 = vmatmul.mubr.msk.bf16.gmra.mrb[4].mxu1 %vm115_vm0, %v386_v8 }
  0xd9   :  { %v362_v10 = vpop.f32.mrb[0].mxu0  ;;  %v370_v11 = vpop.f32.mrb[0].mxu1 }
  0xda   :  { %v297_v12 = vadd.f32 %v362_v10, %v348_v9  ;;  %v305_v13 = vadd.f32 %v370_v11, %v348_v9  ;;  %v174_v14 = vpop.f32.mrb[1].mxu0  ;;  %v206_v15 = vpop.f32.mrb[1].mxu1 }
  0xdb   :  { %v295_v16 = vadd.f32 %v348_v9, %v174_v14  ;;  %v303_v17 = vadd.f32 %v348_v9, %v206_v15  ;;  %v363_v18 = vpop.f32.mrb[2].mxu0  ;;  %v371_v19 = vpop.f32.mrb[2].mxu1 }
  0xdc   :  { %313 = vst [vmem:[%s496_s3 + $0x10] sm:$0xff] %v297_v12  ;;  %321 = vst [vmem:[%s496_s3 + $0x50] sm:$0xff] %v305_v13  ;;  %v298_v20 = vadd.f32 %v363_v18, %v348_v9  ;;  %v306_v21 = vadd.f32 %v371_v19, %v348_v9  ;;  %v177_v22 = vpop.f32.mrb[3].mxu0  ;;  %v209_v23 = vpop.f32.mrb[3].mxu1 }
  0xdd   :  { %311 = vst [vmem:[%s496_s3] sm:$0xff] %v295_v16  ;;  %319 = vst [vmem:[%s496_s3 + $0x40] sm:$0xff] %v303_v17  ;;  %v296_v24 = vadd.f32 %v348_v9, %v177_v22  ;;  %v304_v25 = vadd.f32 %v348_v9, %v209_v23 }
  0xde   :  { %314 = vst [vmem:[%s496_s3 + $0x18] sm:$0xff] %v298_v20  ;;  %322 = vst [vmem:[%s496_s3 + $0x58] sm:$0xff] %v306_v21 }
  0xdf   :  { %312 = vst [vmem:[%s496_s3 + $0x8] sm:$0xff] %v296_v24  ;;  %320 = vst [vmem:[%s496_s3 + $0x48] sm:$0xff] %v304_v25 }
  0xe1   :  { %v366_v26 = vpop.f32.mrb[4].mxu0  ;;  %v374_v27 = vpop.f32.mrb[4].mxu1 }
  0xe2   :  { %v301_v28 = vadd.f32 %v366_v26, %v348_v9  ;;  %v309_v29 = vadd.f32 %v374_v27, %v348_v9  ;;  %v190_v30 = vpop.f32.mrb[5].mxu0  ;;  %v222_v31 = vpop.f32.mrb[5].mxu1 }
  0xe3   :  { %v299_v32 = vadd.f32 %v348_v9, %v190_v30  ;;  %v307_v33 = vadd.f32 %v348_v9, %v222_v31  ;;  %v367_v34 = vpop.f32.mrb[6].mxu0  ;;  %v375_v35 = vpop.f32.mrb[6].mxu1 }
  0xe4   :  { %317 = vst [vmem:[%s496_s3 + $0x30] sm:$0xff] %v301_v28  ;;  %325 = vst [vmem:[%s496_s3 + $0x70] sm:$0xff] %v309_v29  ;;  %v302_v36 = vadd.f32 %v367_v34, %v348_v9  ;;  %v310_v37 = vadd.f32 %v375_v35, %v348_v9  ;;  %v193_v38 = vpop.f32.mrb[7].mxu0  ;;  %v225_v39 = vpop.f32.mrb[7].mxu1 }
  0xe5   :  { %315 = vst [vmem:[%s496_s3 + $0x20] sm:$0xff] %v299_v32  ;;  %323 = vst [vmem:[%s496_s3 + $0x60] sm:$0xff] %v307_v33  ;;  %v300_v40 = vadd.f32 %v348_v9, %v193_v38  ;;  %v308_v41 = vadd.f32 %v348_v9, %v225_v39 }
  0xe6   :  { %318 = vst [vmem:[%s496_s3 + $0x38] sm:$0xff] %v302_v36  ;;  %326 = vst [vmem:[%s496_s3 + $0x78] sm:$0xff] %v310_v37 }
  0xe7   :  { %316 = vst [vmem:[%s496_s3 + $0x28] sm:$0xff] %v300_v40  ;;  %324 = vst [vmem:[%s496_s3 + $0x68] sm:$0xff] %v308_v41 }

// kernel: conv_embedding_to_seq_fwd.58
= control target key start
LH: loop header
LB: loop body
LE: loop exit
PB: predicated region body
PF: predicated region fallthrough
CT: control target
= control target key end

     0   :  { %v36_v2 = vlaneseq  ;;  %s129_s5 = inlined_call_operand.vmem [shape: f32[1,128], index: 5, kind: input, shape index: {}]   ;;  %s130_s0 = inlined_call_operand.vmem [shape: f32[8,128], index: 0, kind: input, shape index: {}]   ;;  %s131_s4 = inlined_call_operand.vmem [shape: f32[1,128], index: 4, kind: input, shape index: {}]   ;;  %s132_s2 = inlined_call_operand.vmem [shape: f32[1,128], index: 2, kind: input, shape index: {}]   ;;  %s133_s3 = inlined_call_operand.vmem [shape: f32[1,128], index: 3, kind: input, shape index: {}]   ;;  %s134_s1 = inlined_call_operand.vmem [shape: f32[8,128], index: 1, kind: input, shape index: {}]   ;;  %s135_s6 = inlined_call_operand.vmem [shape: f32[8,128], index: 6, kind: output, shape index: {}]  }
   0x1   :  { %v32_v0 = vld [vmem:[%s129_s5] sm:$0x1] }
   0x2   :  { %v33_v1 = vadd.f32 1e-05, %v32_v0  ;;  %v37_v3 = vshrl.u32 %v36_v2, 7  ;;  %v23_v4 = vld [vmem:[%s130_s0] sm:$0xff] }
   0x3   :  { %v68_v5 = vld [vmem:[%s131_s4] ss:$0 sm:$0xff] }
   0x4   :  { %71 = vrsqrt.f32 %v33_v1  ;;  %v38_v6 = vsub.s32 0, %v37_v3  ;;  %v31_v7 = vsub.f32 %v23_v4, %v68_v5  ;;  %v69_v10 = vld [vmem:[%s132_s2] ss:$0 sm:$0xff] }
   0x5   :  { %v70_v12 = vld [vmem:[%s133_s3] ss:$0 sm:$0xff] }
   0x6   :  { %v58_v14 = vld [vmem:[%s134_s1] sm:$0xff] }
   0xe   :  { %v72_v8 = vpop.eup %71 }
   0xf   :  { %v39_v9 = vrot.slane %v72_v8, %v38_v6 }
  0x11   :  { %v41_v11 = vmul.f32 %v39_v9, %v31_v7 }
  0x13   :  { %v49_v13 = vmul.f32 %v69_v10, %v41_v11 }
  0x15   :  { %v57_v15 = vadd.f32 %v70_v12, %v49_v13 }
  0x17   :  { %v59_v16 = vadd.f32 %v58_v14, %v57_v15 }
  0x19   :  { %vm60_vm0 = vcmp.ge.f32.partialorder %v59_v16, 0.0  ;;  %v61_v17 = vmul.f32 0.01, %v59_v16 }
  0x1b   :  { %v62_v18 = vsel %vm60_vm0, %v59_v16, %v61_v17 }
  0x1c   :  { %63 = vst [vmem:[%s135_s6] sm:$0xff] %v62_v18 }

// kernel: conv_embedding_to_seq_fwd.61
= control target key start
LH: loop header
LB: loop body
LE: loop exit
PB: predicated region body
PF: predicated region fallthrough
CT: control target
= control target key end

     0   :  { %v561_v0 = vmov 0   ;;  %vm243_vm0 = vcmask 654336   ;;  %s754_s1 = inlined_call_operand.vmem [shape: bf16[208,128], index: 1, kind: input, shape index: {}]   ;;  %s755_s0 = inlined_call_operand.vmem [shape: bf16[128,208], index: 0, kind: input, shape index: {}]   ;;  %s756_s2 = inlined_call_operand.vmem [shape: f32[1,128], index: 2, kind: input, shape index: {}]   ;;  %s757_s3 = inlined_call_operand.vmem [shape: f32[128,128], index: 3, kind: output, shape index: {}]  }
   0x1   :  { %268 = vmatprep.subr.bf16.mxu0 %v561_v0  ;;  %497 = vmatprep.subr.bf16.mxu1 %v561_v0  ;;  %v524_v1 = vld [vmem:[%s754_s1] sm:$0xff]   ;;  %v525_v2 = vld [vmem:[%s754_s1 + $0x8] sm:$0xff]   ;;  %v526_v3 = vld [vmem:[%s754_s1 + $0x10] sm:$0xff]  }
   0x2   :  { %269 = vmatpush1.bf16.msra.mxu0 %v524_v1  ;;  %510 = vmatpush1.bf16.msra.mxu1 %v524_v1  ;;  %v527_v4 = vld [vmem:[%s754_s1 + $0x18] sm:$0xff]   ;;  %v528_v5 = vld [vmem:[%s754_s1 + $0x20] sm:$0xff]   ;;  %v529_v8 = vld [vmem:[%s754_s1 + $0x28] sm:$0xff]  }
   0x3   :  { %270 = vmatprep.subr.bf16.mxu0 %v561_v0  ;;  %498 = vmatprep.subr.bf16.mxu1 %v561_v0  ;;  %v539_v6 = vld [vmem:[%s755_s0 + $0x4] ss:$8 sps:$4 sm:$0xff]   ;;  %v530_v9 = vld [vmem:[%s754_s1 + $0x30] sm:$0xff]   ;;  %v531_v10 = vld [vmem:[%s754_s1 + $0x38] sm:$0xff]  }
   0x4   :  { %v542_v7 = vld [vmem:[%s755_s0 + $0x44] ss:$8 sps:$4 sm:$0xff]   ;;  %488 = vmatprep.mubr.msk.bf16.mxu0 %vm243_vm0, %v539_v6  ;;  %v534_v13 = vld [vmem:[%s754_s1 + $0x50] sm:$0xff]   ;;  %v535_v14 = vld [vmem:[%s754_s1 + $0x58] sm:$0xff]  }
   0x5   :  { %492 = vmatprep.mubr.msk.bf16.mxu1 %vm243_vm0, %v542_v7  ;;  %v532_v11 = vld [vmem:[%s754_s1 + $0x40] sm:$0xff]   ;;  %v533_v12 = vld [vmem:[%s754_s1 + $0x48] sm:$0xff]   ;;  %v543_v18 = vld [vmem:[%s755_s0 + $0x14] ss:$8 sps:$4 sm:$0xff]  }
   0x6   :  { %271 = vmatpush1.bf16.msra.mxu0 %v525_v2  ;;  %511 = vmatpush1.bf16.msra.mxu1 %v525_v2  ;;  %v536_v15 = vld [vmem:[%s754_s1 + $0x60] sm:$0xff]   ;;  %v545_v19 = vld [vmem:[%s755_s0 + $0x54] ss:$8 sps:$4 sm:$0xff]   ;;  %v547_v20 = vld [vmem:[%s755_s0 + $0x10] ss:$8 sps:$4 sm:$0xff]  }
   0x7   :  { %272 = vmatprep.subr.bf16.mxu0 %v561_v0  ;;  %499 = vmatprep.subr.bf16.mxu1 %v561_v0  ;;  %v537_v16 = vld [vmem:[%s755_s0] ss:$8 sps:$4 sm:$0xff]   ;;  %v548_v21 = vld [vmem:[%s755_s0 + $0x50] ss:$8 sps:$4 sm:$0xff]   ;;  %v549_v22 = vld [vmem:[%s755_s0 + $0x24] ss:$8 sps:$4 sm:$0xff]  }
   0x8   :  { %v540_v17 = vld [vmem:[%s755_s0 + $0x40] ss:$8 sps:$4 sm:$0xff]   ;;  %v551_v23 = vld [vmem:[%s755_s0 + $0x64] ss:$8 sps:$4 sm:$0xff]   ;;  %v555_v26 = vld [vmem:[%s755_s0 + $0x34] ss:$8 sps:$4 sm:$0xff]  }
   0x9   :  { %v553_v24 = vld [vmem:[%s755_s0 + $0x20] ss:$8 sps:$4 sm:$0xff]   ;;  %v557_v27 = vld [vmem:[%s755_s0 + $0x74] ss:$8 sps:$4 sm:$0xff]   ;;  %v559_v28 = vld [vmem:[%s755_s0 + $0x30] ss:$8 sps:$4 sm:$0xff]  }
   0xa   :  { %273 = vmatpush1.bf16.msra.mxu0 %v526_v3  ;;  %512 = vmatpush1.bf16.msra.mxu1 %v526_v3  ;;  %v554_v25 = vld [vmem:[%s755_s0 + $0x60] ss:$8 sps:$4 sm:$0xff]   ;;  %v560_v29 = vld [vmem:[%s755_s0 + $0x70] ss:$8 sps:$4 sm:$0xff]  }
   0xb   :  { %274 = vmatprep.subr.bf16.mxu0 %v561_v0  ;;  %500 = vmatprep.subr.bf16.mxu1 %v561_v0  ;;  %v496_v30 = vld [vmem:[%s756_s2] ss:$0 sm:$0xff] }
   0xe   :  { %275 = vmatpush1.bf16.msra.mxu0 %v527_v4  ;;  %513 = vmatpush1.bf16.msra.mxu1 %v527_v4 }
   0xf   :  { %276 = vmatprep.subr.bf16.mxu0 %v561_v0  ;;  %501 = vmatprep.subr.bf16.mxu1 %v561_v0 }
  0x12   :  { %277 = vmatpush1.bf16.msra.mxu0 %v528_v5  ;;  %514 = vmatpush1.bf16.msra.mxu1 %v528_v5 }
  0x13   :  { %278 = vmatprep.subr.bf16.mxu0 %v561_v0  ;;  %502 = vmatprep.subr.bf16.mxu1 %v561_v0 }
  0x16   :  { %279 = vmatpush1.bf16.msra.mxu0 %v529_v8  ;;  %515 = vmatpush1.bf16.msra.mxu1 %v529_v8 }
  0x17   :  { %280 = vmatprep.subr.bf16.mxu0 %v561_v0  ;;  %503 = vmatprep.subr.bf16.mxu1 %v561_v0 }
  0x1a   :  { %281 = vmatpush1.bf16.msra.mxu0 %v530_v9  ;;  %516 = vmatpush1.bf16.msra.mxu1 %v530_v9 }
  0x1b   :  { %282 = vmatprep.subr.bf16.mxu0 %v561_v0  ;;  %504 = vmatprep.subr.bf16.mxu1 %v561_v0 }
  0x1e   :  { %283 = vmatpush1.bf16.msra.mxu0 %v531_v10  ;;  %517 = vmatpush1.bf16.msra.mxu1 %v531_v10 }
  0x1f   :  { %284 = vmatprep.subr.bf16.mxu0 %v561_v0  ;;  %505 = vmatprep.subr.bf16.mxu1 %v561_v0 }
  0x22   :  { %285 = vmatpush1.bf16.msra.mxu0 %v532_v11  ;;  %518 = vmatpush1.bf16.msra.mxu1 %v532_v11 }
  0x23   :  { %286 = vmatprep.subr.bf16.mxu0 %v561_v0  ;;  %506 = vmatprep.subr.bf16.mxu1 %v561_v0 }
  0x26   :  { %287 = vmatpush1.bf16.msra.mxu0 %v533_v12  ;;  %519 = vmatpush1.bf16.msra.mxu1 %v533_v12 }
  0x27   :  { %288 = vmatprep.subr.bf16.mxu0 %v561_v0  ;;  %507 = vmatprep.subr.bf16.mxu1 %v561_v0 }
  0x2a   :  { %289 = vmatpush1.bf16.msra.mxu0 %v534_v13  ;;  %520 = vmatpush1.bf16.msra.mxu1 %v534_v13 }
  0x2b   :  { %290 = vmatprep.subr.bf16.mxu0 %v561_v0  ;;  %508 = vmatprep.subr.bf16.mxu1 %v561_v0 }
  0x2e   :  { %291 = vmatpush1.bf16.msra.mxu0 %v535_v14  ;;  %521 = vmatpush1.bf16.msra.mxu1 %v535_v14 }
  0x2f   :  { %292 = vmatprep.subr.bf16.mxu0 %v561_v0  ;;  %509 = vmatprep.subr.bf16.mxu1 %v561_v0 }
  0x32   :  { %293 = vmatpush1.bf16.msra.mxu0 %v536_v15  ;;  %522 = vmatpush1.bf16.msra.mxu1 %v536_v15 }
  0x35   :  { %301 = vmatmul.mubr.bf16.vlgmr.msra.gmra.mrb[0].mxu0 %v537_v16  ;;  %333 = vmatmul.mubr.bf16.vlgmr.msra.gmra.mrb[0].mxu1 %v540_v17 }
  0x36   :  { %489 = vmatprep.mubr.msk.bf16.mxu0 %vm243_vm0, %v543_v18  ;;  %493 = vmatprep.mubr.msk.bf16.mxu1 %vm243_vm0, %v545_v19 }
  0x3d   :  { %309 = vmatmul.mubr.bf16.gmra.mrb[4].mxu0 %v547_v20  ;;  %341 = vmatmul.mubr.bf16.gmra.mrb[4].mxu1 %v548_v21 }
  0x3e   :  { %490 = vmatprep.mubr.msk.bf16.mxu0 %vm243_vm0, %v549_v22  ;;  %494 = vmatprep.mubr.msk.bf16.mxu1 %vm243_vm0, %v551_v23 }
  0x45   :  { %317 = vmatmul.mubr.bf16.gmra.mrb[8].mxu0 %v553_v24  ;;  %349 = vmatmul.mubr.bf16.gmra.mrb[8].mxu1 %v554_v25 }
  0x46   :  { %491 = vmatprep.mubr.msk.bf16.mxu0 %vm243_vm0, %v555_v26  ;;  %495 = vmatprep.mubr.msk.bf16.mxu1 %vm243_vm0, %v557_v27 }
  0x4d   :  { %325 = vmatmul.mubr.bf16.gmra.mrb[12].mxu0 %v559_v28  ;;  %357 = vmatmul.mubr.bf16.gmra.mrb[12].mxu1 %v560_v29 }
 0x108   :  { %v302_v31 = vpop.f32.mrb[0].mxu0  ;;  %v334_v32 = vpop.f32.mrb[0].mxu1 }
 0x109   :  { %v423_v33 = vadd.f32 %v496_v30, %v302_v31  ;;  %v431_v34 = vadd.f32 %v496_v30, %v334_v32  ;;  %v304_v35 = vpop.f32.mrb[1].mxu0  ;;  %v336_v36 = vpop.f32.mrb[1].mxu1 }
 0x10a   :  { %v305_v37 = vpop.f32.mrb[2].mxu0  ;;  %v337_v38 = vpop.f32.mrb[2].mxu1 }
 0x10b   :  { %439 = vst [vmem:[%s757_s3] sm:$0xff] %v423_v33  ;;  %447 = vst [vmem:[%s757_s3 + $0x40] sm:$0xff] %v431_v34  ;;  %v424_v39 = vadd.f32 %v496_v30, %v305_v37  ;;  %v432_v40 = vadd.f32 %v496_v30, %v337_v38  ;;  %v307_v41 = vpop.f32.mrb[3].mxu0  ;;  %v339_v42 = vpop.f32.mrb[3].mxu1 }
 0x10d   :  { %440 = vst [vmem:[%s757_s3 + $0x8] sm:$0xff] %v424_v39  ;;  %448 = vst [vmem:[%s757_s3 + $0x48] sm:$0xff] %v432_v40 }
 0x110   :  { %v310_v43 = vpop.f32.mrb[4].mxu0  ;;  %v342_v44 = vpop.f32.mrb[4].mxu1 }
 0x111   :  { %v425_v45 = vadd.f32 %v496_v30, %v310_v43  ;;  %v433_v46 = vadd.f32 %v496_v30, %v342_v44  ;;  %v312_v47 = vpop.f32.mrb[5].mxu0  ;;  %v344_v48 = vpop.f32.mrb[5].mxu1 }
 0x112   :  { %v313_v49 = vpop.f32.mrb[6].mxu0  ;;  %v345_v50 = vpop.f32.mrb[6].mxu1 }
 0x113   :  { %441 = vst [vmem:[%s757_s3 + $0x10] sm:$0xff] %v425_v45  ;;  %449 = vst [vmem:[%s757_s3 + $0x50] sm:$0xff] %v433_v46  ;;  %v426_v51 = vadd.f32 %v496_v30, %v313_v49  ;;  %v434_v52 = vadd.f32 %v496_v30, %v345_v50  ;;  %v315_v53 = vpop.f32.mrb[7].mxu0  ;;  %v347_v54 = vpop.f32.mrb[7].mxu1 }
 0x115   :  { %442 = vst [vmem:[%s757_s3 + $0x18] sm:$0xff] %v426_v51  ;;  %450 = vst [vmem:[%s757_s3 + $0x58] sm:$0xff] %v434_v52 }
 0x118   :  { %v318_v55 = vpop.f32.mrb[8].mxu0  ;;  %v350_v56 = vpop.f32.mrb[8].mxu1 }
 0x119   :  { %v427_v57 = vadd.f32 %v496_v30, %v318_v55  ;;  %v435_v58 = vadd.f32 %v496_v30, %v350_v56  ;;  %v320_v59 = vpop.f32.mrb[9].mxu0  ;;  %v352_v60 = vpop.f32.mrb[9].mxu1 }
 0x11a   :  { %v321_v61 = vpop.f32.mrb[10].mxu0  ;;  %v353_v62 = vpop.f32.mrb[10].mxu1 }
 0x11b   :  { %443 = vst [vmem:[%s757_s3 + $0x20] sm:$0xff] %v427_v57  ;;  %451 = vst [vmem:[%s757_s3 + $0x60] sm:$0xff] %v435_v58  ;;  %v428_v63 = vadd.f32 %v496_v30, %v321_v61  ;;  %v436_v0 = vadd.f32 %v496_v30, %v353_v62  ;;  %v323_v1 = vpop.f32.mrb[11].mxu0  ;;  %v355_v2 = vpop.f32.mrb[11].mxu1 }
 0x11d   :  { %444 = vst [vmem:[%s757_s3 + $0x28] sm:$0xff] %v428_v63  ;;  %452 = vst [vmem:[%s757_s3 + $0x68] sm:$0xff] %v436_v0 }
 0x120   :  { %v326_v3 = vpop.f32.mrb[12].mxu0  ;;  %v358_v4 = vpop.f32.mrb[12].mxu1 }
 0x121   :  { %v429_v5 = vadd.f32 %v496_v30, %v326_v3  ;;  %v437_v6 = vadd.f32 %v496_v30, %v358_v4  ;;  %v328_v7 = vpop.f32.mrb[13].mxu0  ;;  %v360_v8 = vpop.f32.mrb[13].mxu1 }
 0x122   :  { %v329_v9 = vpop.f32.mrb[14].mxu0  ;;  %v361_v10 = vpop.f32.mrb[14].mxu1 }
 0x123   :  { %445 = vst [vmem:[%s757_s3 + $0x30] sm:$0xff] %v429_v5  ;;  %453 = vst [vmem:[%s757_s3 + $0x70] sm:$0xff] %v437_v6  ;;  %v430_v11 = vadd.f32 %v496_v30, %v329_v9  ;;  %v438_v12 = vadd.f32 %v496_v30, %v361_v10  ;;  %v331_v13 = vpop.f32.mrb[15].mxu0  ;;  %v363_v14 = vpop.f32.mrb[15].mxu1 }
 0x125   :  { %446 = vst [vmem:[%s757_s3 + $0x38] sm:$0xff] %v430_v11  ;;  %454 = vst [vmem:[%s757_s3 + $0x78] sm:$0xff] %v438_v12 }

// kernel: conv_embedding_to_seq_fwd.62
= control target key start
LH: loop header
LB: loop body
LE: loop exit
PB: predicated region body
PF: predicated region fallthrough
CT: control target
= control target key end

     0   :  { %v36_v2 = vlaneseq  ;;  %s127_s5 = inlined_call_operand.vmem [shape: f32[1,128], index: 5, kind: input, shape index: {}]   ;;  %s128_s0 = inlined_call_operand.vmem [shape: f32[8,128], index: 0, kind: input, shape index: {}]   ;;  %s129_s4 = inlined_call_operand.vmem [shape: f32[1,128], index: 4, kind: input, shape index: {}]   ;;  %s130_s2 = inlined_call_operand.vmem [shape: f32[1,128], index: 2, kind: input, shape index: {}]   ;;  %s131_s3 = inlined_call_operand.vmem [shape: f32[1,128], index: 3, kind: input, shape index: {}]   ;;  %s132_s1 = inlined_call_operand.vmem [shape: f32[8,128], index: 1, kind: input, shape index: {}]   ;;  %s133_s6 = inlined_call_operand.vmem [shape: f32[8,128], index: 6, kind: output, shape index: {}]  }
   0x1   :  { %v32_v0 = vld [vmem:[%s127_s5] sm:$0x1] }
   0x2   :  { %v33_v1 = vadd.f32 1e-05, %v32_v0  ;;  %v37_v3 = vshrl.u32 %v36_v2, 7  ;;  %v23_v4 = vld [vmem:[%s128_s0] sm:$0xff] }
   0x3   :  { %v66_v5 = vld [vmem:[%s129_s4] ss:$0 sm:$0xff] }
   0x4   :  { %69 = vrsqrt.f32 %v33_v1  ;;  %v38_v6 = vsub.s32 0, %v37_v3  ;;  %v31_v7 = vsub.f32 %v23_v4, %v66_v5  ;;  %v67_v10 = vld [vmem:[%s130_s2] ss:$0 sm:$0xff] }
   0x5   :  { %v68_v12 = vld [vmem:[%s131_s3] ss:$0 sm:$0xff] }
   0x6   :  { %v58_v14 = vld [vmem:[%s132_s1] sm:$0xff] }
   0xe   :  { %v70_v8 = vpop.eup %69 }
   0xf   :  { %v39_v9 = vrot.slane %v70_v8, %v38_v6 }
  0x11   :  { %v41_v11 = vmul.f32 %v39_v9, %v31_v7 }
  0x13   :  { %v49_v13 = vmul.f32 %v67_v10, %v41_v11 }
  0x15   :  { %v57_v15 = vadd.f32 %v68_v12, %v49_v13 }
  0x17   :  { %v59_v16 = vadd.f32 %v58_v14, %v57_v15 }
  0x19   :  { %v60_v17 = vmax.f32 %v59_v16, 0.0 }
  0x1b   :  { %61 = vst [vmem:[%s133_s6] sm:$0xff] %v60_v17 }

// kernel: conv_embedding_to_seq_fwd.47
= control target key start
LH: loop header
LB: loop body
LE: loop exit
PB: predicated region body
PF: predicated region fallthrough
CT: control target
= control target key end

     0   :  { %s1214_s12 = smov 0   ;;  %s1216_s13 = smov 0   ;;  %s1377_s0 = inlined_call_operand.vmem [shape: bf16[2048,112], index: 0, kind: input, shape index: {}]   ;;  %s1378_s1 = inlined_call_operand.vmem [shape: bf16[112,128], index: 1, kind: input, shape index: {}]   ;;  %s1379_s2 = inlined_call_operand.vmem [shape: f32[1,128], index: 2, kind: input, shape index: {}]   ;;  %s1380_s3 = inlined_call_operand.vmem [shape: f32[2048,128], index: 3, kind: output, shape index: {}]  }
   0x1   :  { %s1218_s14 = smov 0  }
   0x2 LB: > { %s32_s15 = sadd.s32 1, %s1188_s13  ;;  %p993_p0 = scmp.ge.s32.totalorder %s1192_s14, 1  ;;  %s1192_s14 = sphi %s1218_s14, %s13_s14   ;;  %s1188_s13 = sphi %s1216_s13, %s1382_s13   ;;  %s1184_s12 = sphi %s1214_s12, %s1381_s12  }
   0x3   : > { %p34_p1 = scmp.ge.s32.totalorder %s32_s15, 8  ;;  %p188_p2 = scmp.lt.s32.totalorder %s1192_s14, 9 }
   0x5   : > { %s1384_s15 = smov (%p34_p1, %s32_s15), 0  ;;  %p189_p3 = pnand %p993_p0, %p188_p2 }
   0x6   : > { %v1147_v0 = vld [vmem:[%s1378_s1] sm:$0xff] (!%p189_p3)   ;;  %s994_s18 = sshll.u32 (!%p189_p3), %s1184_s12, 5  ;;  %v1148_v1 = vld [vmem:[%s1378_s1 + $0x8] sm:$0xff] (!%p189_p3)   ;;  %v1149_v2 = vld [vmem:[%s1378_s1 + $0x10] sm:$0xff] (!%p189_p3)   ;;  %vm496_vm0 = vcmask (!%p189_p3), 916480  }
   0x7   : > { %192 = sbr.rel (%p189_p3) target bundleno = 277 (0x115), region = 32  ;;  %p230_p4 = scmp.lt.s32.totalorder (!%p189_p3), %s994_s18, 255  ;;  %1063 = vmatprep.subr.bf16.mxu0 (!%p189_p3), %v1147_v0  ;;  %1109 = vmatprep.subr.bf16.mxu1 (!%p189_p3), %v1147_v0  ;;  %v1150_v3 = vld [vmem:[%s1378_s1 + $0x18] sm:$0xff] (!%p189_p3)   ;;  %v1151_v6 = vld [vmem:[%s1378_s1 + $0x20] sm:$0xff] (!%p189_p3)   ;;  %v1152_v7 = vld [vmem:[%s1378_s1 + $0x28] sm:$0xff] (!%p189_p3)  }
   0x8   : > { %1064 = vmatpush3.bf16.msra.mxu0 (!%p189_p3), %v1147_v0  ;;  %1116 = vmatpush3.bf16.msra.mxu1 (!%p189_p3), %v1147_v0  ;;  %v1153_v8 = vld [vmem:[%s1378_s1 + $0x30] sm:$0xff] (!%p189_p3)   ;;  %v1297_v23 = vld [vmem:[%s1379_s2] ss:$0 sm:$0xff] (!%p189_p3) }
   0x9   : > { %1065 = vmatprep.subr.bf16.mxu0 (!%p189_p3), %v1148_v1  ;;  %1110 = vmatprep.subr.bf16.mxu1 (!%p189_p3), %v1148_v1 }
   0xc   : > { %1066 = vmatpush3.bf16.msra.mxu0 (!%p189_p3), %v1148_v1  ;;  %1117 = vmatpush3.bf16.msra.mxu1 (!%p189_p3), %v1148_v1 }
   0xd   : > { %1067 = vmatprep.subr.bf16.mxu0 (!%p189_p3), %v1149_v2  ;;  %1111 = vmatprep.subr.bf16.mxu1 (!%p189_p3), %v1149_v2 }
   0xe   : > { %s1386_s18 = smov (!%p230_p4, %s994_s18), 255 }
   0xf   : > { %s995_s23 = sshll.u32 %s1386_s18, 2  ;;  %s997_s8 = sshll.u32 %s1386_s18, 3 }
  0x10   : > { %s1250_s28 = scalar_lea.vmem %s1377_s0, %s995_s23  ;;  %1068 = vmatpush3.bf16.msra.mxu0 %v1149_v2  ;;  %1118 = vmatpush3.bf16.msra.mxu1 %v1149_v2  ;;  %s1302_s16 = scalar_lea.vmem %s1380_s3, %s997_s8 }
  0x11   : > { %v1154_v4 = vld [vmem:[%s1250_s28] sm:$0xff]   ;;  %1069 = vmatprep.subr.bf16.mxu0 %v1150_v3  ;;  %1112 = vmatprep.subr.bf16.mxu1 %v1150_v3  ;;  %v1156_v9 = vld [vmem:[%s1250_s28 + $0x8] sm:$0xff]   ;;  %v1158_v11 = vld [vmem:[%s1250_s28 + $0x10] sm:$0xff]  }
  0x12   : > { %v1155_v5 = vld [vmem:[%s1250_s28 + $0x40] sm:$0xff]   ;;  %1077 = vmatprep.mubr.msk.bf16.mxu0 %vm496_vm0, %v1154_v4  ;;  %v1157_v10 = vld [vmem:[%s1250_s28 + $0x48] sm:$0xff]   ;;  %v1159_v12 = vld [vmem:[%s1250_s28 + $0x50] sm:$0xff]  }
  0x13   : > { %1093 = vmatprep.mubr.msk.bf16.mxu1 %vm496_vm0, %v1155_v5  ;;  %v1160_v13 = vld [vmem:[%s1250_s28 + $0x18] sm:$0xff]   ;;  %v1162_v15 = vld [vmem:[%s1250_s28 + $0x20] sm:$0xff]   ;;  %v1164_v17 = vld [vmem:[%s1250_s28 + $0x28] sm:$0xff]  }
  0x14   : > { %1070 = vmatpush3.bf16.msra.mxu0 %v1150_v3  ;;  %1119 = vmatpush3.bf16.msra.mxu1 %v1150_v3  ;;  %v1161_v14 = vld [vmem:[%s1250_s28 + $0x58] sm:$0xff]   ;;  %v1163_v16 = vld [vmem:[%s1250_s28 + $0x60] sm:$0xff]   ;;  %v1165_v18 = vld [vmem:[%s1250_s28 + $0x68] sm:$0xff]  }
  0x15   : > { %1071 = vmatprep.subr.bf16.mxu0 %v1151_v6  ;;  %1113 = vmatprep.subr.bf16.mxu1 %v1151_v6  ;;  %v1166_v19 = vld [vmem:[%s1250_s28 + $0x30] sm:$0xff]   ;;  %v1168_v21 = vld [vmem:[%s1250_s28 + $0x38] sm:$0xff]  }
  0x16   : > { %v1167_v20 = vld [vmem:[%s1250_s28 + $0x70] sm:$0xff]   ;;  %v1169_v22 = vld [vmem:[%s1250_s28 + $0x78] sm:$0xff]  }
  0x18   : > { %1072 = vmatpush3.bf16.msra.mxu0 %v1151_v6  ;;  %1120 = vmatpush3.bf16.msra.mxu1 %v1151_v6 }
  0x19   : > { %1073 = vmatprep.subr.bf16.mxu0 %v1152_v7  ;;  %1114 = vmatprep.subr.bf16.mxu1 %v1152_v7 }
  0x1c   : > { %1074 = vmatpush3.bf16.msra.mxu0 %v1152_v7  ;;  %1121 = vmatpush3.bf16.msra.mxu1 %v1152_v7 }
  0x1d   : > { %1075 = vmatprep.subr.bf16.mxu0 %v1153_v8  ;;  %1115 = vmatprep.subr.bf16.mxu1 %v1153_v8 }
  0x20   : > { %1076 = vmatpush3.bf16.msra.mxu0 %v1153_v8  ;;  %1122 = vmatpush3.bf16.msra.mxu1 %v1153_v8 }
  0x23   : > { %1078 = vmatmul.mubr.msk.bf16.vlgmr.msra.gmra.mrb[0].mxu0 %vm496_vm0, %v1156_v9  ;;  %1094 = vmatmul.mubr.msk.bf16.vlgmr.msra.gmra.mrb[0].mxu1 %vm496_vm0, %v1157_v10 }
  0x24   : > { %1081 = vmatprep.mubr.msk.bf16.mxu0 %vm496_vm0, %v1158_v11  ;;  %1097 = vmatprep.mubr.msk.bf16.mxu1 %vm496_vm0, %v1159_v12 }
  0x2b   : > { %1082 = vmatmul.mubr.msk.bf16.gmra.mrb[4].mxu0 %vm496_vm0, %v1160_v13  ;;  %1098 = vmatmul.mubr.msk.bf16.gmra.mrb[4].mxu1 %vm496_vm0, %v1161_v14 }
  0x2c   : > { %1085 = vmatprep.mubr.msk.bf16.mxu0 %vm496_vm0, %v1162_v15  ;;  %1101 = vmatprep.mubr.msk.bf16.mxu1 %vm496_vm0, %v1163_v16 }
  0x33   : > { %1086 = vmatmul.mubr.msk.bf16.gmra.mrb[8].mxu0 %vm496_vm0, %v1164_v17  ;;  %1102 = vmatmul.mubr.msk.bf16.gmra.mrb[8].mxu1 %vm496_vm0, %v1165_v18 }
  0x34   : > { %1089 = vmatprep.mubr.msk.bf16.mxu0 %vm496_vm0, %v1166_v19  ;;  %1105 = vmatprep.mubr.msk.bf16.mxu1 %vm496_vm0, %v1167_v20 }
  0x3b   : > { %1090 = vmatmul.mubr.msk.bf16.gmra.mrb[12].mxu0 %vm496_vm0, %v1168_v21  ;;  %1106 = vmatmul.mubr.msk.bf16.gmra.mrb[12].mxu1 %vm496_vm0, %v1169_v22 }
  0xf6   : > { %v1079_v24 = vpop.f32.mrb[0].mxu0  ;;  %v1095_v25 = vpop.f32.mrb[0].mxu1 }
  0xf7   : > { %v814_v26 = vadd.f32 %v1079_v24, %v1297_v23  ;;  %v830_v27 = vadd.f32 %v1095_v25, %v1297_v23  ;;  %v579_v28 = vpop.f32.mrb[1].mxu0  ;;  %v643_v29 = vpop.f32.mrb[1].mxu1 }
  0xf8   : > { %v812_v30 = vadd.f32 %v1297_v23, %v579_v28  ;;  %v828_v31 = vadd.f32 %v1297_v23, %v643_v29  ;;  %v1080_v32 = vpop.f32.mrb[2].mxu0  ;;  %v1096_v33 = vpop.f32.mrb[2].mxu1 }
  0xf9   : > { %846 = vst [vmem:[%s1302_s16 + $0x10] sm:$0xff] %v814_v26  ;;  %862 = vst [vmem:[%s1302_s16 + $0x90] sm:$0xff] %v830_v27  ;;  %v815_v34 = vadd.f32 %v1080_v32, %v1297_v23  ;;  %v831_v35 = vadd.f32 %v1096_v33, %v1297_v23  ;;  %v582_v36 = vpop.f32.mrb[3].mxu0  ;;  %v646_v37 = vpop.f32.mrb[3].mxu1 }
  0xfa   : > { %844 = vst [vmem:[%s1302_s16] sm:$0xff] %v812_v30  ;;  %860 = vst [vmem:[%s1302_s16 + $0x80] sm:$0xff] %v828_v31  ;;  %v813_v38 = vadd.f32 %v1297_v23, %v582_v36  ;;  %v829_v39 = vadd.f32 %v1297_v23, %v646_v37 }
  0xfb   : > { %847 = vst [vmem:[%s1302_s16 + $0x18] sm:$0xff] %v815_v34  ;;  %863 = vst [vmem:[%s1302_s16 + $0x98] sm:$0xff] %v831_v35 }
  0xfc   : > { %845 = vst [vmem:[%s1302_s16 + $0x8] sm:$0xff] %v813_v38  ;;  %861 = vst [vmem:[%s1302_s16 + $0x88] sm:$0xff] %v829_v39 }
  0xfe   : > { %v1083_v40 = vpop.f32.mrb[4].mxu0  ;;  %v1099_v41 = vpop.f32.mrb[4].mxu1 }
  0xff   : > { %v818_v42 = vadd.f32 %v1083_v40, %v1297_v23  ;;  %v834_v43 = vadd.f32 %v1099_v41, %v1297_v23  ;;  %v595_v44 = vpop.f32.mrb[5].mxu0  ;;  %v659_v45 = vpop.f32.mrb[5].mxu1 }
 0x100   : > { %v816_v46 = vadd.f32 %v1297_v23, %v595_v44  ;;  %v832_v47 = vadd.f32 %v1297_v23, %v659_v45  ;;  %v1084_v48 = vpop.f32.mrb[6].mxu0  ;;  %v1100_v49 = vpop.f32.mrb[6].mxu1 }
 0x101   : > { %850 = vst [vmem:[%s1302_s16 + $0x30] sm:$0xff] %v818_v42  ;;  %866 = vst [vmem:[%s1302_s16 + $0xb0] sm:$0xff] %v834_v43  ;;  %v819_v50 = vadd.f32 %v1084_v48, %v1297_v23  ;;  %v835_v51 = vadd.f32 %v1100_v49, %v1297_v23  ;;  %v598_v52 = vpop.f32.mrb[7].mxu0  ;;  %v662_v53 = vpop.f32.mrb[7].mxu1 }
 0x102   : > { %848 = vst [vmem:[%s1302_s16 + $0x20] sm:$0xff] %v816_v46  ;;  %864 = vst [vmem:[%s1302_s16 + $0xa0] sm:$0xff] %v832_v47  ;;  %v817_v54 = vadd.f32 %v1297_v23, %v598_v52  ;;  %v833_v55 = vadd.f32 %v1297_v23, %v662_v53 }
 0x103   : > { %851 = vst [vmem:[%s1302_s16 + $0x38] sm:$0xff] %v819_v50  ;;  %867 = vst [vmem:[%s1302_s16 + $0xb8] sm:$0xff] %v835_v51 }
 0x104   : > { %849 = vst [vmem:[%s1302_s16 + $0x28] sm:$0xff] %v817_v54  ;;  %865 = vst [vmem:[%s1302_s16 + $0xa8] sm:$0xff] %v833_v55 }
 0x106   : > { %v1087_v56 = vpop.f32.mrb[8].mxu0  ;;  %v1103_v57 = vpop.f32.mrb[8].mxu1 }
 0x107   : > { %v822_v58 = vadd.f32 %v1087_v56, %v1297_v23  ;;  %v838_v59 = vadd.f32 %v1103_v57, %v1297_v23  ;;  %v611_v60 = vpop.f32.mrb[9].mxu0  ;;  %v675_v61 = vpop.f32.mrb[9].mxu1 }
 0x108   : > { %v820_v62 = vadd.f32 %v1297_v23, %v611_v60  ;;  %v836_v63 = vadd.f32 %v1297_v23, %v675_v61  ;;  %v1088_v0 = vpop.f32.mrb[10].mxu0  ;;  %v1104_v1 = vpop.f32.mrb[10].mxu1 }
 0x109   : > { %854 = vst [vmem:[%s1302_s16 + $0x50] sm:$0xff] %v822_v58  ;;  %870 = vst [vmem:[%s1302_s16 + $0xd0] sm:$0xff] %v838_v59  ;;  %v823_v2 = vadd.f32 %v1088_v0, %v1297_v23  ;;  %v839_v3 = vadd.f32 %v1104_v1, %v1297_v23  ;;  %v614_v4 = vpop.f32.mrb[11].mxu0  ;;  %v678_v5 = vpop.f32.mrb[11].mxu1 }
 0x10a   : > { %852 = vst [vmem:[%s1302_s16 + $0x40] sm:$0xff] %v820_v62  ;;  %868 = vst [vmem:[%s1302_s16 + $0xc0] sm:$0xff] %v836_v63  ;;  %v821_v6 = vadd.f32 %v1297_v23, %v614_v4  ;;  %v837_v7 = vadd.f32 %v1297_v23, %v678_v5 }
 0x10b   : > { %855 = vst [vmem:[%s1302_s16 + $0x58] sm:$0xff] %v823_v2  ;;  %871 = vst [vmem:[%s1302_s16 + $0xd8] sm:$0xff] %v839_v3 }
 0x10c   : > { %853 = vst [vmem:[%s1302_s16 + $0x48] sm:$0xff] %v821_v6  ;;  %869 = vst [vmem:[%s1302_s16 + $0xc8] sm:$0xff] %v837_v7 }
 0x10e   : > { %v1091_v8 = vpop.f32.mrb[12].mxu0  ;;  %v1107_v9 = vpop.f32.mrb[12].mxu1 }
 0x10f   : > { %v826_v10 = vadd.f32 %v1091_v8, %v1297_v23  ;;  %v842_v11 = vadd.f32 %v1107_v9, %v1297_v23  ;;  %v627_v12 = vpop.f32.mrb[13].mxu0  ;;  %v691_v13 = vpop.f32.mrb[13].mxu1 }
 0x110   : > { %v824_v14 = vadd.f32 %v1297_v23, %v627_v12  ;;  %v840_v15 = vadd.f32 %v1297_v23, %v691_v13  ;;  %v1092_v16 = vpop.f32.mrb[14].mxu0  ;;  %v1108_v17 = vpop.f32.mrb[14].mxu1 }
 0x111   : > { %858 = vst [vmem:[%s1302_s16 + $0x70] sm:$0xff] %v826_v10  ;;  %874 = vst [vmem:[%s1302_s16 + $0xf0] sm:$0xff] %v842_v11  ;;  %v827_v18 = vadd.f32 %v1092_v16, %v1297_v23  ;;  %v843_v19 = vadd.f32 %v1108_v17, %v1297_v23  ;;  %v630_v20 = vpop.f32.mrb[15].mxu0  ;;  %v694_v21 = vpop.f32.mrb[15].mxu1 }
 0x112   : > { %856 = vst [vmem:[%s1302_s16 + $0x60] sm:$0xff] %v824_v14  ;;  %872 = vst [vmem:[%s1302_s16 + $0xe0] sm:$0xff] %v840_v15  ;;  %v825_v22 = vadd.f32 %v1297_v23, %v630_v20  ;;  %v841_v24 = vadd.f32 %v1297_v23, %v694_v21 }
 0x113   : > { %859 = vst [vmem:[%s1302_s16 + $0x78] sm:$0xff] %v827_v18  ;;  %875 = vst [vmem:[%s1302_s16 + $0xf8] sm:$0xff] %v843_v19 }
 0x114   : > { %857 = vst [vmem:[%s1302_s16 + $0x68] sm:$0xff] %v825_v22  ;;  %873 = vst [vmem:[%s1302_s16 + $0xe8] sm:$0xff] %v841_v24 }
 0x115 PF: > { %s13_s14 = sadd.s32 1, %s1192_s14   ;;  %s1381_s12 = smov %s1188_s13 }
 0x116   : > { %p10_p5 = scmp.ge.s32.totalorder %s13_s14, 10   ;;  %s1382_s13 = smov %s1384_s15 }
 0x118   :  { %12 = sbr.rel (!%p10_p5) target bundleno = 2 (0x2), region = 76 }

// kernel: conv_embedding_to_seq_fwd.63
= control target key start
LH: loop header
LB: loop body
LE: loop exit
PB: predicated region body
PF: predicated region fallthrough
CT: control target
= control target key end

     0   :  { %vm123_vm0 = vcmask 261120   ;;  %s511_s1 = inlined_call_operand.vmem [shape: bf16[32,128], index: 1, kind: input, shape index: {}]   ;;  %s512_s0 = inlined_call_operand.vmem [shape: bf16[128,32], index: 0, kind: input, shape index: {}]   ;;  %s513_s2 = inlined_call_operand.vmem [shape: f32[1,128], index: 2, kind: input, shape index: {}]   ;;  %s514_s3 = inlined_call_operand.vmem [shape: f32[128,128], index: 3, kind: output, shape index: {}]  }
   0x1   :  { %v392_v0 = vld [vmem:[%s511_s1] sm:$0xff]   ;;  %v393_v1 = vld [vmem:[%s511_s1 + $0x8] sm:$0xff]   ;;  %v398_v6 = vld [vmem:[%s512_s0 + $0x10] sm:$0xff]  }
   0x2   :  { %368 = vmatprep.subr.bf16.mxu0 %v392_v0  ;;  %388 = vmatprep.subr.bf16.mxu1 %v392_v0  ;;  %v394_v2 = vld [vmem:[%s512_s0] sm:$0xff]   ;;  %v396_v4 = vld [vmem:[%s512_s0 + $0x8] sm:$0xff]   ;;  %v399_v7 = vld [vmem:[%s512_s0 + $0x30] sm:$0xff]  }
   0x3   :  { %369 = vmatpush3.bf16.msra.mxu0 %v392_v0  ;;  %390 = vmatpush3.bf16.msra.mxu1 %v392_v0  ;;  %v395_v3 = vld [vmem:[%s512_s0 + $0x20] sm:$0xff]   ;;  %v397_v5 = vld [vmem:[%s512_s0 + $0x28] sm:$0xff]   ;;  %v400_v8 = vld [vmem:[%s512_s0 + $0x18] sm:$0xff]  }
   0x4   :  { %370 = vmatprep.subr.bf16.mxu0 %v393_v1  ;;  %389 = vmatprep.subr.bf16.mxu1 %v393_v1  ;;  %v401_v9 = vld [vmem:[%s512_s0 + $0x38] sm:$0xff]   ;;  %v357_v10 = vld [vmem:[%s513_s2] ss:$0 sm:$0xff] }
   0x5   :  { %372 = vmatprep.mubr.msk.bf16.mxu0 %vm123_vm0, %v394_v2  ;;  %380 = vmatprep.mubr.msk.bf16.mxu1 %vm123_vm0, %v395_v3 }
   0x7   :  { %371 = vmatpush3.bf16.msra.mxu0 %v393_v1  ;;  %391 = vmatpush3.bf16.msra.mxu1 %v393_v1 }
   0xa   :  { %373 = vmatmul.mubr.msk.bf16.vlgmr.msra.gmra.mrb[0].mxu0 %vm123_vm0, %v396_v4  ;;  %381 = vmatmul.mubr.msk.bf16.vlgmr.msra.gmra.mrb[0].mxu1 %vm123_vm0, %v397_v5 }
   0xb   :  { %376 = vmatprep.mubr.msk.bf16.mxu0 %vm123_vm0, %v398_v6  ;;  %384 = vmatprep.mubr.msk.bf16.mxu1 %vm123_vm0, %v399_v7 }
  0x12   :  { %377 = vmatmul.mubr.msk.bf16.gmra.mrb[4].mxu0 %vm123_vm0, %v400_v8  ;;  %385 = vmatmul.mubr.msk.bf16.gmra.mrb[4].mxu1 %vm123_vm0, %v401_v9 }
  0xdd   :  { %v374_v11 = vpop.f32.mrb[0].mxu0  ;;  %v382_v12 = vpop.f32.mrb[0].mxu1 }
  0xde   :  { %v305_v13 = vadd.f32 %v374_v11, %v357_v10  ;;  %v313_v14 = vadd.f32 %v382_v12, %v357_v10  ;;  %v182_v15 = vpop.f32.mrb[1].mxu0  ;;  %v214_v16 = vpop.f32.mrb[1].mxu1 }
  0xdf   :  { %v303_v17 = vadd.f32 %v357_v10, %v182_v15  ;;  %v311_v18 = vadd.f32 %v357_v10, %v214_v16  ;;  %v375_v19 = vpop.f32.mrb[2].mxu0  ;;  %v383_v20 = vpop.f32.mrb[2].mxu1 }
  0xe0   :  { %321 = vst [vmem:[%s514_s3 + $0x10] sm:$0xff] %v305_v13  ;;  %329 = vst [vmem:[%s514_s3 + $0x50] sm:$0xff] %v313_v14  ;;  %v306_v21 = vadd.f32 %v375_v19, %v357_v10  ;;  %v314_v22 = vadd.f32 %v383_v20, %v357_v10  ;;  %v185_v23 = vpop.f32.mrb[3].mxu0  ;;  %v217_v24 = vpop.f32.mrb[3].mxu1 }
  0xe1   :  { %319 = vst [vmem:[%s514_s3] sm:$0xff] %v303_v17  ;;  %327 = vst [vmem:[%s514_s3 + $0x40] sm:$0xff] %v311_v18  ;;  %v304_v25 = vadd.f32 %v357_v10, %v185_v23  ;;  %v312_v26 = vadd.f32 %v357_v10, %v217_v24 }
  0xe2   :  { %322 = vst [vmem:[%s514_s3 + $0x18] sm:$0xff] %v306_v21  ;;  %330 = vst [vmem:[%s514_s3 + $0x58] sm:$0xff] %v314_v22 }
  0xe3   :  { %320 = vst [vmem:[%s514_s3 + $0x8] sm:$0xff] %v304_v25  ;;  %328 = vst [vmem:[%s514_s3 + $0x48] sm:$0xff] %v312_v26 }
  0xe5   :  { %v378_v27 = vpop.f32.mrb[4].mxu0  ;;  %v386_v28 = vpop.f32.mrb[4].mxu1 }
  0xe6   :  { %v309_v29 = vadd.f32 %v378_v27, %v357_v10  ;;  %v317_v30 = vadd.f32 %v386_v28, %v357_v10  ;;  %v198_v31 = vpop.f32.mrb[5].mxu0  ;;  %v230_v32 = vpop.f32.mrb[5].mxu1 }
  0xe7   :  { %v307_v33 = vadd.f32 %v357_v10, %v198_v31  ;;  %v315_v34 = vadd.f32 %v357_v10, %v230_v32  ;;  %v379_v35 = vpop.f32.mrb[6].mxu0  ;;  %v387_v36 = vpop.f32.mrb[6].mxu1 }
  0xe8   :  { %325 = vst [vmem:[%s514_s3 + $0x30] sm:$0xff] %v309_v29  ;;  %333 = vst [vmem:[%s514_s3 + $0x70] sm:$0xff] %v317_v30  ;;  %v310_v37 = vadd.f32 %v379_v35, %v357_v10  ;;  %v318_v38 = vadd.f32 %v387_v36, %v357_v10  ;;  %v201_v39 = vpop.f32.mrb[7].mxu0  ;;  %v233_v40 = vpop.f32.mrb[7].mxu1 }
  0xe9   :  { %323 = vst [vmem:[%s514_s3 + $0x20] sm:$0xff] %v307_v33  ;;  %331 = vst [vmem:[%s514_s3 + $0x60] sm:$0xff] %v315_v34  ;;  %v308_v41 = vadd.f32 %v357_v10, %v201_v39  ;;  %v316_v42 = vadd.f32 %v357_v10, %v233_v40 }
  0xea   :  { %326 = vst [vmem:[%s514_s3 + $0x38] sm:$0xff] %v310_v37  ;;  %334 = vst [vmem:[%s514_s3 + $0x78] sm:$0xff] %v318_v38 }
  0xeb   :  { %324 = vst [vmem:[%s514_s3 + $0x28] sm:$0xff] %v308_v41  ;;  %332 = vst [vmem:[%s514_s3 + $0x68] sm:$0xff] %v316_v42 }

// kernel: conv_embedding_to_seq_fwd.64
= control target key start
LH: loop header
LB: loop body
LE: loop exit
PB: predicated region body
PF: predicated region fallthrough
CT: control target
= control target key end

     0   :  { %s637_s1 = inlined_call_operand.vmem [shape: bf16[384,128], index: 1, kind: input, shape index: {}]   ;;  %s638_s0 = inlined_call_operand.vmem [shape: bf16[32,384], index: 0, kind: input, shape index: {}]   ;;  %s639_s2 = inlined_call_operand.vmem [shape: f32[1,128], index: 2, kind: input, shape index: {}]   ;;  %s640_s3 = inlined_call_operand.vmem [shape: f32[32,128], index: 3, kind: output, shape index: {}]  }
   0x1   :  { %v480_v0 = vld [vmem:[%s637_s1 + $0x40] sm:$0xff]   ;;  %v483_v3 = vld [vmem:[%s637_s1 + $0x48] sm:$0xff]   ;;  %v486_v6 = vld [vmem:[%s637_s1 + $0x50] sm:$0xff]  }
   0x2   :  { %v481_v1 = vld [vmem:[%s637_s1] sm:$0xff]   ;;  %422 = vmatprep.subr.bf16.mxu0 %v480_v0  ;;  %v484_v4 = vld [vmem:[%s637_s1 + $0x8] sm:$0xff]   ;;  %v487_v7 = vld [vmem:[%s637_s1 + $0x10] sm:$0xff]  }
   0x3   :  { %v482_v2 = vld [vmem:[%s637_s1 + $0x80] sm:$0xff]   ;;  %423 = vmatpush3.bf16.msra.mxu0 %v481_v1  ;;  %v485_v5 = vld [vmem:[%s637_s1 + $0x88] sm:$0xff]   ;;  %v488_v8 = vld [vmem:[%s637_s1 + $0x90] sm:$0xff]  }
   0x4   :  { %460 = vmatprep.subr.bf16.mxu1 %v482_v2  ;;  %424 = vmatprep.subr.bf16.mxu0 %v483_v3  ;;  %v489_v9 = vld [vmem:[%s637_s1 + $0x58] sm:$0xff]   ;;  %v492_v12 = vld [vmem:[%s637_s1 + $0x60] sm:$0xff]   ;;  %v495_v15 = vld [vmem:[%s637_s1 + $0x68] sm:$0xff]  }
   0x5   :  { %461 = vmatpush3.bf16.msra.mxu1 %v482_v2  ;;  %v490_v10 = vld [vmem:[%s637_s1 + $0x18] sm:$0xff]   ;;  %v494_v13 = vld [vmem:[%s637_s1 + $0xa0] sm:$0xff]   ;;  %v497_v16 = vld [vmem:[%s637_s1 + $0xa8] sm:$0xff]  }
   0x6   :  { %462 = vmatprep.subr.bf16.mxu1 %v485_v5  ;;  %v491_v11 = vld [vmem:[%s637_s1 + $0x98] sm:$0xff]   ;;  %v493_v14 = vld [vmem:[%s637_s1 + $0x20] sm:$0xff]   ;;  %v496_v17 = vld [vmem:[%s637_s1 + $0x28] sm:$0xff]  }
   0x7   :  { %425 = vmatpush3.bf16.msra.mxu0 %v484_v4  ;;  %v498_v18 = vld [vmem:[%s637_s1 + $0x70] sm:$0xff]   ;;  %v501_v21 = vld [vmem:[%s637_s1 + $0x78] sm:$0xff]   ;;  %v504_v26 = vld [vmem:[%s638_s0] ss:$12 sps:$4 sm:$0xff]  }
   0x8   :  { %426 = vmatprep.subr.bf16.mxu0 %v486_v6  ;;  %v499_v19 = vld [vmem:[%s637_s1 + $0x30] sm:$0xff]   ;;  %v503_v22 = vld [vmem:[%s637_s1 + $0xb8] sm:$0xff]   ;;  %v508_v28 = vld [vmem:[%s638_s0 + $0x20] ss:$12 sps:$4 sm:$0xff]  }
   0x9   :  { %463 = vmatpush3.bf16.msra.mxu1 %v485_v5  ;;  %v500_v20 = vld [vmem:[%s637_s1 + $0xb0] sm:$0xff]   ;;  %v502_v25 = vld [vmem:[%s637_s1 + $0x38] sm:$0xff]   ;;  %v421_v37 = vld [vmem:[%s639_s2] ss:$0 sm:$0xff] }
   0xa   :  { %464 = vmatprep.subr.bf16.mxu1 %v488_v8  ;;  %v506_v23 = vld [vmem:[%s638_s0 + $0x4] ss:$12 sps:$4 sm:$0xff]   ;;  %v507_v24 = vld [vmem:[%s638_s0 + $0x8] ss:$12 sps:$4 sm:$0xff]  }
   0xb   :  { %427 = vmatpush3.bf16.msra.mxu0 %v487_v7  ;;  %291 = vmatprep.mubr.bf16.mxu0 %v506_v23  ;;  %v509_v27 = vld [vmem:[%s638_s0 + $0x1c] ss:$12 sps:$4 sm:$0xff]   ;;  %v511_v29 = vld [vmem:[%s638_s0 + $0x18] ss:$12 sps:$4 sm:$0xff]  }
   0xc   :  { %428 = vmatprep.subr.bf16.mxu0 %v489_v9  ;;  %476 = vmatprep.mubr.bf16.mxu1 %v507_v24 }
   0xd   :  { %465 = vmatpush3.bf16.msra.mxu1 %v488_v8 }
   0xe   :  { %466 = vmatprep.subr.bf16.mxu1 %v491_v11 }
   0xf   :  { %429 = vmatpush3.bf16.msra.mxu0 %v490_v10 }
  0x10   :  { %430 = vmatprep.subr.bf16.mxu0 %v492_v12 }
  0x11   :  { %467 = vmatpush3.bf16.msra.mxu1 %v491_v11 }
  0x12   :  { %468 = vmatprep.subr.bf16.mxu1 %v494_v13 }
  0x13   :  { %431 = vmatpush3.bf16.msra.mxu0 %v493_v14 }
  0x14   :  { %432 = vmatprep.subr.bf16.mxu0 %v495_v15 }
  0x15   :  { %469 = vmatpush3.bf16.msra.mxu1 %v494_v13 }
  0x16   :  { %470 = vmatprep.subr.bf16.mxu1 %v497_v16 }
  0x17   :  { %433 = vmatpush3.bf16.msra.mxu0 %v496_v17 }
  0x18   :  { %434 = vmatprep.subr.bf16.mxu0 %v498_v18 }
  0x19   :  { %471 = vmatpush3.bf16.msra.mxu1 %v497_v16 }
  0x1a   :  { %472 = vmatprep.subr.bf16.mxu1 %v500_v20 }
  0x1b   :  { %435 = vmatpush3.bf16.msra.mxu0 %v499_v19 }
  0x1c   :  { %436 = vmatprep.subr.bf16.mxu0 %v501_v21 }
  0x1d   :  { %473 = vmatpush3.bf16.msra.mxu1 %v500_v20 }
  0x1e   :  { %474 = vmatprep.subr.bf16.mxu1 %v503_v22 }
  0x1f   :  { %437 = vmatpush3.bf16.msra.mxu0 %v502_v25 }
  0x21   :  { %475 = vmatpush3.bf16.msra.mxu1 %v503_v22 }
  0x22   :  { %292 = vmatmul.mubr.bf16.vlgmr.msra.gmra.mrb[0].mxu0 %v504_v26 }
  0x23   :  { %299 = vmatprep.mubr.bf16.mxu0 %v509_v27 }
  0x24   :  { %477 = vmatmul.mubr.bf16.vlgmr.msra.gmra.mrb[0].mxu1 %v508_v28 }
  0x2a   :  { %300 = vmatmul.mubr.bf16.gmra.mrb[4].mxu0 %v511_v29 }
  0xf5   :  { %v438_v30 = vpop.f32.mrb[0].mxu0 }
  0xf6   :  { %v439_v31 = vpop.f32.mrb[1].mxu0 }
  0xf7   :  { %v440_v32 = vadd.f32 %v439_v31, %v438_v30  ;;  %v441_v33 = vpop.f32.mrb[2].mxu0  ;;  %v478_v34 = vpop.f32.mrb[0].mxu1 }
  0xf8   :  { %v442_v35 = vpop.f32.mrb[3].mxu0  ;;  %v342_v36 = vpop.f32.mrb[1].mxu1 }
  0xf9   :  { %v443_v38 = vadd.f32 %v442_v35, %v441_v33  ;;  %v343_v39 = vadd.f32 %v440_v32, %v342_v36  ;;  %v479_v40 = vpop.f32.mrb[2].mxu1 }
  0xfa   :  { %v345_v41 = vpop.f32.mrb[3].mxu1 }
  0xfb   :  { %v379_v42 = vadd.f32 %v421_v37, %v343_v39  ;;  %v346_v43 = vadd.f32 %v443_v38, %v345_v41 }
  0xfd   :  { %383 = vst [vmem:[%s640_s3] sm:$0xff] %v379_v42  ;;  %v380_v44 = vadd.f32 %v421_v37, %v346_v43  ;;  %v444_v45 = vpop.f32.mrb[4].mxu0 }
  0xfe   :  { %v445_v46 = vpop.f32.mrb[5].mxu0 }
  0xff   :  { %384 = vst [vmem:[%s640_s3 + $0x8] sm:$0xff] %v380_v44  ;;  %v446_v47 = vadd.f32 %v445_v46, %v444_v45  ;;  %v447_v48 = vpop.f32.mrb[6].mxu0 }
 0x100   :  { %v448_v49 = vpop.f32.mrb[7].mxu0 }
 0x101   :  { %v351_v50 = vadd.f32 %v478_v34, %v446_v47  ;;  %v449_v51 = vadd.f32 %v448_v49, %v447_v48 }
 0x103   :  { %v381_v52 = vadd.f32 %v421_v37, %v351_v50  ;;  %v354_v53 = vadd.f32 %v479_v40, %v449_v51 }
 0x105   :  { %385 = vst [vmem:[%s640_s3 + $0x10] sm:$0xff] %v381_v52  ;;  %v382_v54 = vadd.f32 %v421_v37, %v354_v53 }
 0x107   :  { %386 = vst [vmem:[%s640_s3 + $0x18] sm:$0xff] %v382_v54 }

// kernel: conv_embedding_to_seq_fwd.70
= control target key start
LH: loop header
LB: loop body
LE: loop exit
PB: predicated region body
PF: predicated region fallthrough
CT: control target
= control target key end

     0   :  { %v123_v0 = vmov 0.0   ;;  %vm124_vm0 = vmmov 0   ;;  %vm38_vm1 = vcmask 130048   ;;  %s160_s1 = inlined_call_operand.vmem [shape: bf16[16,128], index: 1, kind: input, shape index: {}]   ;;  %s161_s0 = inlined_call_operand.vmem [shape: bf16[16,16], index: 0, kind: input, shape index: {}]   ;;  %s162_s2 = inlined_call_operand.vmem [shape: f32[1,128], index: 2, kind: input, shape index: {}]   ;;  %s163_s3 = inlined_call_operand.vmem [shape: f32[16,128], index: 3, kind: output, shape index: {}]  }
   0x1   :  { %113 = vmatprep.subr.bf16.mxu0 %v123_v0  ;;  %v121_v1 = vld [vmem:[%s160_s1] sm:$0xff]   ;;  %115 = vmatprep.mubr.msk.bf16.mxu0 %vm124_vm0, %v123_v0 }
   0x2   :  { %v122_v2 = vld [vmem:[%s161_s0] sm:$0xff]   ;;  %114 = vmatpush3.bf16.msra.mxu0 %v121_v1 }
   0x3   :  { %v110_v3 = vld [vmem:[%s162_s2] ss:$0 sm:$0xff] }
   0x5   :  { %116 = vmatmul.mubr.msk.bf16.vlgmr.msra.gmra.mrb[0].mxu0 %vm38_vm1, %v122_v2 }
  0xd8   :  { %v76_v4 = vpop.f32.mrb[0].mxu0 }
  0xd9   :  { %v99_v5 = vadd.f32 %v110_v3, %v76_v4  ;;  %v117_v6 = vpop.f32.mrb[1].mxu0 }
  0xda   :  { %v79_v7 = vpop.f32.mrb[2].mxu0 }
  0xdb   :  { %101 = vst [vmem:[%s163_s3] sm:$0xff] %v99_v5  ;;  %v100_v8 = vadd.f32 %v110_v3, %v79_v7  ;;  %v118_v9 = vpop.f32.mrb[3].mxu0 }
  0xdd   :  { %102 = vst [vmem:[%s163_s3 + $0x8] sm:$0xff] %v100_v8 }

// kernel: conv_embedding_to_seq_fwd.66
= control target key start
LH: loop header
LB: loop body
LE: loop exit
PB: predicated region body
PF: predicated region fallthrough
CT: control target
= control target key end

     0   :  { %s1106_s12 = smov 0   ;;  %s1187_s0 = inlined_call_operand.vmem [shape: f32[2,4,8,4], index: 0, kind: input, shape index: {}]   ;;  %s1188_s1 = inlined_call_operand.vmem [shape: f32[2,4,8,4], index: 1, kind: input, shape index: {}]   ;;  %s1189_s2 = inlined_call_operand.vmem [shape: f32[2,4,8,4], index: 2, kind: input, shape index: {}]   ;;  %s1190_s3 = inlined_call_operand.vmem [shape: f32[2,4,8,4], index: 3, kind: output, shape index: {}]  }
   0x1 LB: > { %s963_s13 = sadd.s32 4294967295, %s1082_s12   ;;  %p967_p0 = scmp.ge.s32.totalorder %s1082_s12, 1  ;;  %s1082_s12 = sphi %s1106_s12, %s13_s12  }
   0x2   : > { %p157_p1 = scmp.lt.s32.totalorder %s1082_s12, 3 }
   0x4   : > { %p158_p2 = pnand %p967_p0, %p157_p1 }
   0x5   : > { %p191_p3 = scmp.lt.s32.totalorder (!%p158_p2), %s963_s13, 1  ;;  %v1084_v0 = vmov (!%p158_p2), 0.0   ;;  %vm1085_vm0 = vmmov (!%p158_p2), 0   ;;  %vm223_vm1 = vcmask (!%p158_p2), 31744   ;;  %v532_v9 = vlaneseq (!%p158_p2) }
   0x6   : > { %161 = sbr.rel (%p158_p2) target bundleno = 770 (0x302), region = 32  ;;  %1010 = vmatprep.subr.mxu0 (!%p158_p2), %v1084_v0  ;;  %1012 = vmatprep.mubr.msk.f32.mxu0 (!%p158_p2), %vm1085_vm0, %v1084_v0  ;;  %vm543_vm3 = vcmask (!%p158_p2), 64512  }
   0x7   : > { %1015 = vmatprep.subr.mxu1 (!%p158_p2), %v1084_v0  ;;  %1017 = vmatprep.mubr.msk.f32.mxu1 (!%p158_p2), %vm1085_vm0, %v1084_v0  ;;  %v533_v10 = vshrl.u32 (!%p158_p2), %v532_v9, 7  ;;  %v535_v11 = vand.u32 (!%p158_p2), 127, %v532_v9 }
   0x9   : > { %vm536_vm2 = vcmp.gt.s32.totalorder (!%p158_p2), %v535_v11, %v533_v10 }
   0xd   : > { %s1192_s13 = smov (!%p191_p3, %s963_s13), 1 }
   0xe   : > { %s1120_s14 = sshll.u32 %s1192_s13, 5 }
   0xf   : > { %s200_s17 = scalar_lea.vmem %s1188_s1, %s1120_s14  ;;  %s195_s20 = scalar_lea.vmem %s1187_s0, %s1120_s14 }
  0x10   : > { %v215_v1 = vld [vmem:[%s200_s17] sm:$0xff]  ;;  %v216_v2 = vld [vmem:[%s200_s17 + $0x8] sm:$0xff]  ;;  %v217_v5 = vld [vmem:[%s200_s17 + $0x10] sm:$0xff]  ;;  %s205_s23 = scalar_lea.vmem %s1189_s2, %s1120_s14  ;;  %s210_s26 = scalar_lea.vmem %s1190_s3, %s1120_s14 }
  0x11   : > { %1011 = vmatpush3.xpose.msk.msra.mxu0 %vm223_vm1, %v215_v1  ;;  %v211_v3 = vld [vmem:[%s195_s20] sm:$0xff]  ;;  %1016 = vmatpush3.xpose.msk.msra.mxu1 %vm223_vm1, %v216_v2  ;;  %v212_v4 = vld [vmem:[%s195_s20 + $0x8] sm:$0xff]  ;;  %v218_v6 = vld [vmem:[%s200_s17 + $0x18] sm:$0xff] }
  0x12   : > { %1020 = vmatprep.subr.mxu0 %v1084_v0  ;;  %1025 = vmatprep.subr.mxu1 %v1084_v0  ;;  %v213_v7 = vld [vmem:[%s195_s20 + $0x10] sm:$0xff]  ;;  %v214_v8 = vld [vmem:[%s195_s20 + $0x18] sm:$0xff]  ;;  %v219_v52 = vld [vmem:[%s205_s23] sm:$0xff] }
  0x13   : > { %v220_v53 = vld [vmem:[%s205_s23 + $0x8] sm:$0xff]  ;;  %v221_v60 = vld [vmem:[%s205_s23 + $0x10] sm:$0xff]  ;;  %v222_v1 = vld [vmem:[%s205_s23 + $0x18] sm:$0xff] }
  0x14   : > { %1013 = vmatmul.mubr.msk.f32.vlgmr.msra.gmra.mrb[0].mxu0 %vm223_vm1, %v211_v3  ;;  %1018 = vmatmul.mubr.msk.f32.vlgmr.msra.gmra.mrb[0].mxu1 %vm223_vm1, %v212_v4 }
  0x15   : > { %1021 = vmatpush3.xpose.msk.msra.mxu0 %vm223_vm1, %v217_v5  ;;  %1022 = vmatprep.mubr.msk.f32.mxu0 %vm1085_vm0, %v1084_v0 }
  0x16   : > { %1026 = vmatpush3.xpose.msk.msra.mxu1 %vm223_vm1, %v218_v6  ;;  %1027 = vmatprep.mubr.msk.f32.mxu1 %vm1085_vm0, %v1084_v0 }
  0x17   : > { %1030 = vmatprep.subr.mxu0 %v1084_v0  ;;  %1035 = vmatprep.subr.mxu1 %v1084_v0 }
  0x18   : > { %1023 = vmatmul.mubr.msk.f32.vlgmr.msra.gmra.mrb[2].mxu0 %vm223_vm1, %v213_v7 }
  0x19   : > { %1028 = vmatmul.mubr.msk.f32.vlgmr.msra.gmra.mrb[2].mxu1 %vm223_vm1, %v214_v8  ;;  %1032 = vmatprep.mubr.msk.f32.mxu0 %vm1085_vm0, %v1084_v0 }
  0x1a   : > { %1037 = vmatprep.mubr.msk.f32.mxu1 %vm1085_vm0, %v1084_v0  ;;  %1031 = vmatpush3.msra.mxu0 %v219_v52 }
  0x1b   : > { %1040 = vmatprep.subr.mxu0 %v1084_v0  ;;  %1036 = vmatpush3.msra.mxu1 %v220_v53 }
  0x1c   : > { %1045 = vmatprep.subr.mxu1 %v1084_v0 }
  0xe7   : > { %v296_v12 = vpop.f32.mrb[0].mxu0  ;;  %v372_v13 = vpop.f32.mrb[0].mxu1 }
  0xe8   : > { %v528_v14 = vmul.f32 0.5, %v296_v12  ;;  %v1014_v15 = vpop.f32.mrb[1].mxu0  ;;  %v529_v16 = vmul.f32 0.5, %v372_v13  ;;  %v1019_v17 = vpop.f32.mrb[1].mxu1 }
  0xea   : > { %v539_v18 = vsel %vm536_vm2, -1e+30, %v528_v14  ;;  %v540_v19 = vsel %vm536_vm2, -1e+30, %v529_v16 }
  0xeb   : > { %v448_v20 = vpop.f32.mrb[2].mxu0  ;;  %v544_v21 = vsel %vm543_vm3, %v539_v18, -inf  ;;  %v547_v27 = vsel %vm543_vm3, %v540_v19, -inf }
  0xec   : > { %v530_v22 = vmul.f32 0.5, %v448_v20  ;;  %545 = vmax.xlane.f32.xlu0 %v544_v21  ;;  %v1024_v23 = vpop.f32.mrb[3].mxu0  ;;  %v524_v24 = vpop.f32.mrb[2].mxu1 }
  0xed   : > { %v531_v25 = vmul.f32 0.5, %v524_v24  ;;  %v1029_v26 = vpop.f32.mrb[3].mxu1 }
  0xee   : > { %v541_v28 = vsel %vm536_vm2, -1e+30, %v530_v22 }
  0xef   : > { %v550_v29 = vsel %vm543_vm3, %v541_v28, -inf  ;;  %v542_v30 = vsel %vm536_vm2, -1e+30, %v531_v25 }
  0xf0   : > { %548 = vmax.xlane.f32.xlu0 %v547_v27  ;;  %551 = vmax.xlane.f32.xlu1 %v550_v29  ;;  %v553_v31 = vsel %vm543_vm3, %v542_v30, -inf }
  0xf4   : > { %554 = vmax.xlane.f32.xlu1 %v553_v31 }
 0x179   : > { %v546_v32 = vpop.xlane.xlu0 %545 }
 0x17a   : > { %v556_v33 = vsub.f32 %v539_v18, %v546_v32 }
 0x17c   : > { %v560_v34 = vmul.f32 1.442695, %v556_v33 }
 0x17d   : > { %v549_v35 = vpop.xlane.xlu0 %548  ;;  %v552_v36 = vpop.xlane.xlu1 %551 }
 0x17e   : > { %1060 = vpow2.f32 %v560_v34  ;;  %v557_v37 = vsub.f32 %v540_v19, %v549_v35  ;;  %v558_v38 = vsub.f32 %v541_v28, %v552_v36 }
 0x180   : > { %v562_v39 = vmul.f32 1.442695, %v557_v37  ;;  %v564_v40 = vmul.f32 1.442695, %v558_v38 }
 0x181   : > { %v555_v41 = vpop.xlane.xlu1 %554 }
 0x182   : > { %1062 = vpow2.f32 %v562_v39  ;;  %v559_v42 = vsub.f32 %v542_v30, %v555_v41 }
 0x183   : > { %1064 = vpow2.f32 %v564_v40 }
 0x184   : > { %v566_v43 = vmul.f32 1.442695, %v559_v42 }
 0x186   : > { %1066 = vpow2.f32 %v566_v43 }
 0x188   : > { %v1061_v44 = vpop.eup %1060 }
 0x189   : > { %v568_v45 = vsel %vm543_vm3, %v1061_v44, 0.0 }
 0x18a   : > { %569 = vadd.xlane.f32.xlu0 %v568_v45 }
 0x18c   : > { %v1063_v46 = vpop.eup %1062 }
 0x18d   : > { %v1065_v47 = vpop.eup %1064  ;;  %v571_v48 = vsel %vm543_vm3, %v1063_v46, 0.0 }
 0x18e   : > { %572 = vadd.xlane.f32.xlu1 %v571_v48  ;;  %v574_v49 = vsel %vm543_vm3, %v1065_v47, 0.0 }
 0x18f   : > { %575 = vadd.xlane.f32.xlu0 %v574_v49 }
 0x190   : > { %v1067_v50 = vpop.eup %1066 }
 0x191   : > { %v577_v51 = vsel %vm543_vm3, %v1067_v50, 0.0 }
 0x192   : > { %578 = vadd.xlane.f32.xlu1 %v577_v51 }
 0x217   : > { %v570_v54 = vpop.xlane.xlu0 %569 }
 0x218   : > { %1068 = vrcp.f32 %v570_v54 }
 0x21b   : > { %v573_v55 = vpop.xlane.xlu1 %572 }
 0x21c   : > { %v576_v56 = vpop.xlane.xlu0 %575  ;;  %1070 = vrcp.f32 %v573_v55 }
 0x21d   : > { %1072 = vrcp.f32 %v576_v56 }
 0x21f   : > { %v579_v57 = vpop.xlane.xlu1 %578 }
 0x220   : > { %1074 = vrcp.f32 %v579_v57 }
 0x222   : > { %v1069_v58 = vpop.eup %1068 }
 0x223   : > { %v584_v59 = vmul.f32 %v1069_v58, %v1061_v44 }
 0x225   : > { %1033 = vmatmul.mubr.msk.f32.vlgmr.msra.gmra.mrb[4].mxu0 %vm543_vm3, %v584_v59 }
 0x226   : > { %v1071_v61 = vpop.eup %1070  ;;  %1041 = vmatpush3.msra.mxu0 %v221_v60  ;;  %1042 = vmatprep.mubr.msk.f32.mxu0 %vm1085_vm0, %v1084_v0 }
 0x227   : > { %v1073_v62 = vpop.eup %1072  ;;  %v585_v63 = vmul.f32 %v1071_v61, %v1063_v46 }
 0x228   : > { %v586_v2 = vmul.f32 %v1073_v62, %v1065_v47 }
 0x229   : > { %1038 = vmatmul.mubr.msk.f32.vlgmr.msra.gmra.mrb[4].mxu1 %vm543_vm3, %v585_v63 }
 0x22a   : > { %v1075_v3 = vpop.eup %1074  ;;  %1043 = vmatmul.mubr.msk.f32.vlgmr.msra.gmra.mrb[6].mxu0 %vm543_vm3, %v586_v2  ;;  %1046 = vmatpush3.msra.mxu1 %v222_v1 }
 0x22b   : > { %v587_v4 = vmul.f32 %v1075_v3, %v1067_v50  ;;  %1047 = vmatprep.mubr.msk.f32.mxu1 %vm1085_vm0, %v1084_v0 }
 0x22d   : > { %1048 = vmatmul.mubr.msk.f32.vlgmr.msra.gmra.mrb[6].mxu1 %vm543_vm3, %v587_v4 }
 0x2f8   : > { %v657_v5 = vpop.f32.mrb[4].mxu0 }
 0x2f9   : > { %880 = vst.msk [vmem:[%s210_s26] sm:$0xff] %vm223_vm1, %v657_v5  ;;  %v1034_v6 = vpop.f32.mrb[5].mxu0 }
 0x2fc   : > { %v730_v7 = vpop.f32.mrb[4].mxu1 }
 0x2fd   : > { %881 = vst.msk [vmem:[%s210_s26 + $0x8] sm:$0xff] %vm223_vm1, %v730_v7  ;;  %v803_v8 = vpop.f32.mrb[6].mxu0  ;;  %v1039_v9 = vpop.f32.mrb[5].mxu1 }
 0x2fe   : > { %882 = vst.msk [vmem:[%s210_s26 + $0x10] sm:$0xff] %vm223_vm1, %v803_v8  ;;  %v1044_v10 = vpop.f32.mrb[7].mxu0 }
 0x300   : > { %v876_v11 = vpop.f32.mrb[6].mxu1 }
 0x301   : > { %883 = vst.msk [vmem:[%s210_s26 + $0x18] sm:$0xff] %vm223_vm1, %v876_v11  ;;  %v1049_v0 = vpop.f32.mrb[7].mxu1 }
 0x302 PF: > { %s13_s12 = sadd.s32 1, %s1082_s12  }
 0x303   : > { %p10_p4 = scmp.ge.s32.totalorder %s13_s12, 4  }
 0x305   :  { %12 = sbr.rel (!%p10_p4) target bundleno = 1 (0x1), region = 68 }

// kernel: conv_embedding_to_seq_fwd.68
= control target key start
LH: loop header
LB: loop body
LE: loop exit
PB: predicated region body
PF: predicated region fallthrough
CT: control target
= control target key end

     0   :  { %vm23_vm0 = vcmask 130048   ;;  %s136_s0 = inlined_call_operand.vmem [shape: f32[16,16], index: 0, kind: input, shape index: {}]   ;;  %s137_s1 = inlined_call_operand.vmem [shape: f32[16,16], index: 1, kind: input, shape index: {}]   ;;  %s138_s2 = inlined_call_operand.vmem [shape: f32[1,16], index: 2, kind: input, shape index: {}]   ;;  %s139_s3 = inlined_call_operand.vmem [shape: f32[1,16], index: 3, kind: input, shape index: {}]   ;;  %s140_s4 = inlined_call_operand.vmem [shape: f32[16,16], index: 4, kind: output, shape index: {}]  }
   0x1   :  { %v17_v0 = vld [vmem:[%s136_s0] sm:$0xff]  ;;  %v18_v2 = vld [vmem:[%s136_s0 + $0x8] sm:$0xff] }
   0x2   :  { %v19_v1 = vld [vmem:[%s137_s1] sm:$0xff]  ;;  %v20_v4 = vld [vmem:[%s137_s1 + $0x8] sm:$0xff] }
   0x3   :  { %v21_v3 = vadd.f32 %v19_v1, %v17_v0  ;;  %v22_v5 = vadd.f32 %v20_v4, %v18_v2  ;;  %v75_v25 = vld [vmem:[%s138_s2] ss:$0 sm:$0xff] }
   0x4   :  { %v76_v27 = vld [vmem:[%s139_s3] ss:$0 sm:$0xff] }
   0x5   :  { %v24_v6 = vsel %vm23_vm0, %v21_v3, 0.0  ;;  %v27_v7 = vsel %vm23_vm0, %v22_v5, 0.0 }
   0x6   :  { %25 = vadd.xlane.f32.xlu0 %v24_v6 }
   0xa   :  { %28 = vadd.xlane.f32.xlu0 %v27_v7 }
  0x93   :  { %v26_v8 = vpop.xlane.xlu0 %25 }
  0x94   :  { %v31_v9 = vmul.f32 0.0625, %v26_v8 }
  0x96   :  { %v33_v10 = vsub.f32 %v21_v3, %v31_v9 }
  0x97   :  { %v29_v11 = vpop.xlane.xlu0 %28 }
  0x98   :  { %v32_v12 = vmul.f32 0.0625, %v29_v11  ;;  %v35_v13 = vmul.f32 %v33_v10, %v33_v10 }
  0x9a   :  { %v34_v14 = vsub.f32 %v22_v5, %v32_v12  ;;  %v37_v15 = vsel %vm23_vm0, %v35_v13, 0.0 }
  0x9b   :  { %38 = vadd.xlane.f32.xlu1 %v37_v15 }
  0x9c   :  { %v36_v16 = vmul.f32 %v34_v14, %v34_v14 }
  0x9e   :  { %v40_v17 = vsel %vm23_vm0, %v36_v16, 0.0 }
  0x9f   :  { %41 = vadd.xlane.f32.xlu1 %v40_v17 }
 0x128   :  { %v39_v18 = vpop.xlane.xlu1 %38 }
 0x129   :  { %v43_v19 = vmul.f32 0.0625, %v39_v18 }
 0x12b   :  { %v45_v20 = vadd.f32 1e-05, %v43_v19 }
 0x12c   :  { %v42_v21 = vpop.xlane.xlu1 %41 }
 0x12d   :  { %77 = vrsqrt.f32 %v45_v20  ;;  %v44_v22 = vmul.f32 0.0625, %v42_v21 }
 0x12f   :  { %v46_v23 = vadd.f32 1e-05, %v44_v22 }
 0x131   :  { %79 = vrsqrt.f32 %v46_v23 }
 0x137   :  { %v78_v24 = vpop.eup %77 }
 0x138   :  { %v49_v26 = vmul.f32 %v78_v24, %v33_v10 }
 0x13a   :  { %v58_v28 = vmul.f32 %v75_v25, %v49_v26 }
 0x13b   :  { %v80_v29 = vpop.eup %79 }
 0x13c   :  { %v67_v30 = vadd.f32 %v76_v27, %v58_v28  ;;  %v50_v31 = vmul.f32 %v80_v29, %v34_v14 }
 0x13e   :  { %69 = vst.msk [vmem:[%s140_s4] sm:$0xff] %vm23_vm0, %v67_v30  ;;  %v59_v32 = vmul.f32 %v75_v25, %v50_v31 }
 0x140   :  { %v68_v33 = vadd.f32 %v76_v27, %v59_v32 }
 0x142   :  { %70 = vst.msk [vmem:[%s140_s4 + $0x8] sm:$0xff] %vm23_vm0, %v68_v33 }

// kernel: conv_embedding_to_seq_fwd.74
= control target key start
LH: loop header
LB: loop body
LE: loop exit
PB: predicated region body
PF: predicated region fallthrough
CT: control target
= control target key end

     0   :  { %v125_v0 = vmov 0.0   ;;  %vm126_vm0 = vmmov 0   ;;  %vm38_vm1 = vcmask 130048   ;;  %s162_s1 = inlined_call_operand.vmem [shape: bf16[16,128], index: 1, kind: input, shape index: {}]   ;;  %s163_s0 = inlined_call_operand.vmem [shape: bf16[16,16], index: 0, kind: input, shape index: {}]   ;;  %s164_s2 = inlined_call_operand.vmem [shape: f32[1,128], index: 2, kind: input, shape index: {}]   ;;  %s165_s3 = inlined_call_operand.vmem [shape: f32[16,128], index: 3, kind: output, shape index: {}]  }
   0x1   :  { %115 = vmatprep.subr.bf16.mxu0 %v125_v0  ;;  %v123_v1 = vld [vmem:[%s162_s1] sm:$0xff]   ;;  %117 = vmatprep.mubr.msk.bf16.mxu0 %vm126_vm0, %v125_v0 }
   0x2   :  { %v124_v2 = vld [vmem:[%s163_s0] sm:$0xff]   ;;  %116 = vmatpush3.bf16.msra.mxu0 %v123_v1 }
   0x3   :  { %v112_v3 = vld [vmem:[%s164_s2] ss:$0 sm:$0xff] }
   0x5   :  { %118 = vmatmul.mubr.msk.bf16.vlgmr.msra.gmra.mrb[0].mxu0 %vm38_vm1, %v124_v2 }
  0xd8   :  { %v76_v4 = vpop.f32.mrb[0].mxu0 }
  0xd9   :  { %v99_v5 = vadd.f32 %v112_v3, %v76_v4  ;;  %v119_v6 = vpop.f32.mrb[1].mxu0 }
  0xda   :  { %v79_v7 = vpop.f32.mrb[2].mxu0 }
  0xdb   :  { %v101_v8 = vmax.f32 %v99_v5, 0.0  ;;  %v100_v9 = vadd.f32 %v112_v3, %v79_v7  ;;  %v120_v10 = vpop.f32.mrb[3].mxu0 }
  0xdd   :  { %103 = vst [vmem:[%s165_s3] sm:$0xff] %v101_v8  ;;  %v102_v11 = vmax.f32 %v100_v9, 0.0 }
  0xdf   :  { %104 = vst [vmem:[%s165_s3 + $0x8] sm:$0xff] %v102_v11 }

// kernel: conv_embedding_to_seq_fwd.75
= control target key start
LH: loop header
LB: loop body
LE: loop exit
PB: predicated region body
PF: predicated region fallthrough
CT: control target
= control target key end

     0   :  { %v136_v0 = vmov 0.0   ;;  %vm137_vm0 = vmmov 0   ;;  %vm46_vm1 = vcmask 261120   ;;  %s176_s1 = inlined_call_operand.vmem [shape: bf16[32,128], index: 1, kind: input, shape index: {}]   ;;  %s177_s0 = inlined_call_operand.vmem [shape: bf16[16,32], index: 0, kind: input, shape index: {}]   ;;  %s178_s2 = inlined_call_operand.vmem [shape: f32[1,128], index: 2, kind: input, shape index: {}]   ;;  %s179_s3 = inlined_call_operand.vmem [shape: f32[16,128], index: 3, kind: output, shape index: {}]  }
   0x1   :  { %123 = vmatprep.subr.bf16.mxu0 %v136_v0  ;;  %v133_v1 = vld [vmem:[%s176_s1] sm:$0xff]   ;;  %127 = vmatprep.mubr.msk.bf16.mxu0 %vm137_vm0, %v136_v0  ;;  %v134_v2 = vld [vmem:[%s176_s1 + $0x8] sm:$0xff]  }
   0x2   :  { %124 = vmatpush3.bf16.msra.mxu0 %v133_v1  ;;  %v135_v3 = vld [vmem:[%s177_s0] sm:$0xff]  }
   0x3   :  { %125 = vmatprep.subr.bf16.mxu0 %v136_v0  ;;  %v119_v4 = vld [vmem:[%s178_s2] ss:$0 sm:$0xff] }
   0x6   :  { %126 = vmatpush3.bf16.msra.mxu0 %v134_v2 }
   0x9   :  { %128 = vmatmul.mubr.msk.bf16.vlgmr.msra.gmra.mrb[0].mxu0 %vm46_vm1, %v135_v3 }
  0xdc   :  { %v84_v5 = vpop.f32.mrb[0].mxu0 }
  0xdd   :  { %v107_v6 = vadd.f32 %v119_v4, %v84_v5  ;;  %v129_v7 = vpop.f32.mrb[1].mxu0 }
  0xde   :  { %v87_v8 = vpop.f32.mrb[2].mxu0 }
  0xdf   :  { %109 = vst [vmem:[%s179_s3] sm:$0xff] %v107_v6  ;;  %v108_v9 = vadd.f32 %v119_v4, %v87_v8  ;;  %v130_v10 = vpop.f32.mrb[3].mxu0 }
  0xe1   :  { %110 = vst [vmem:[%s179_s3 + $0x8] sm:$0xff] %v108_v9 }

// kernel: conv_embedding_to_seq_fwd.71
= control target key start
LH: loop header
LB: loop body
LE: loop exit
PB: predicated region body
PF: predicated region fallthrough
CT: control target
= control target key end

     0   :  { %s1112_s12 = smov 0   ;;  %s1193_s0 = inlined_call_operand.vmem [shape: f32[2,4,8,4], index: 0, kind: input, shape index: {}]   ;;  %s1194_s1 = inlined_call_operand.vmem [shape: f32[2,4,6,4], index: 1, kind: input, shape index: {}]   ;;  %s1195_s2 = inlined_call_operand.vmem [shape: f32[2,4,6,4], index: 2, kind: input, shape index: {}]   ;;  %s1196_s3 = inlined_call_operand.vmem [shape: f32[2,4,8,4], index: 3, kind: output, shape index: {}]  }
   0x1 LB: > { %s965_s13 = sadd.s32 4294967295, %s1088_s12   ;;  %p969_p0 = scmp.ge.s32.totalorder %s1088_s12, 1  ;;  %s1088_s12 = sphi %s1112_s12, %s13_s12  }
   0x2   : > { %p157_p1 = scmp.lt.s32.totalorder %s1088_s12, 3 }
   0x4   : > { %p158_p2 = pnand %p969_p0, %p157_p1 }
   0x5   : > { %p191_p3 = scmp.lt.s32.totalorder (!%p158_p2), %s965_s13, 1  ;;  %v1090_v0 = vmov (!%p158_p2), 0.0   ;;  %vm1091_vm0 = vmmov (!%p158_p2), 0   ;;  %vm223_vm1 = vcmask (!%p158_p2), 31744   ;;  %vm532_vm2 = vcmask (!%p158_p2), 48128  }
   0x6   : > { %161 = sbr.rel (%p158_p2) target bundleno = 769 (0x301), region = 32  ;;  %1016 = vmatprep.subr.mxu0 (!%p158_p2), %v1090_v0  ;;  %1018 = vmatprep.mubr.msk.f32.mxu0 (!%p158_p2), %vm1091_vm0, %v1090_v0  ;;  %vm580_vm3 = vcmask (!%p158_p2), 1045504  }
   0x7   : > { %1021 = vmatprep.subr.mxu1 (!%p158_p2), %v1090_v0  ;;  %1023 = vmatprep.mubr.msk.f32.mxu1 (!%p158_p2), %vm1091_vm0, %v1090_v0 }
   0xd   : > { %s1198_s13 = smov (!%p191_p3, %s965_s13), 1 }
   0xe   : > { %s1126_s14 = sshll.u32 %s1198_s13, 5 }
   0xf   : > { %s200_s17 = scalar_lea.vmem %s1194_s1, %s1126_s14  ;;  %s195_s20 = scalar_lea.vmem %s1193_s0, %s1126_s14 }
  0x10   : > { %v215_v1 = vld [vmem:[%s200_s17] sm:$0x3f]  ;;  %v216_v2 = vld [vmem:[%s200_s17 + $0x8] sm:$0x3f]  ;;  %v217_v5 = vld [vmem:[%s200_s17 + $0x10] sm:$0x3f]  ;;  %s205_s23 = scalar_lea.vmem %s1195_s2, %s1126_s14  ;;  %s210_s26 = scalar_lea.vmem %s1196_s3, %s1126_s14 }
  0x11   : > { %1017 = vmatpush3.xpose.msk.msra.mxu0 %vm223_vm1, %v215_v1  ;;  %v211_v3 = vld [vmem:[%s195_s20] sm:$0xff]  ;;  %1022 = vmatpush3.xpose.msk.msra.mxu1 %vm223_vm1, %v216_v2  ;;  %v212_v4 = vld [vmem:[%s195_s20 + $0x8] sm:$0xff]  ;;  %v218_v6 = vld [vmem:[%s200_s17 + $0x18] sm:$0x3f] }
  0x12   : > { %1026 = vmatprep.subr.mxu0 %v1090_v0  ;;  %1031 = vmatprep.subr.mxu1 %v1090_v0  ;;  %v213_v7 = vld [vmem:[%s195_s20 + $0x10] sm:$0xff]  ;;  %v214_v8 = vld [vmem:[%s195_s20 + $0x18] sm:$0xff]  ;;  %v219_v45 = vld [vmem:[%s205_s23] sm:$0x3f] }
  0x13   : > { %v220_v46 = vld [vmem:[%s205_s23 + $0x8] sm:$0x3f]  ;;  %v221_v53 = vld [vmem:[%s205_s23 + $0x10] sm:$0x3f]  ;;  %v222_v57 = vld [vmem:[%s205_s23 + $0x18] sm:$0x3f] }
  0x14   : > { %1019 = vmatmul.mubr.msk.f32.vlgmr.msra.gmra.mrb[0].mxu0 %vm223_vm1, %v211_v3  ;;  %1024 = vmatmul.mubr.msk.f32.vlgmr.msra.gmra.mrb[0].mxu1 %vm223_vm1, %v212_v4 }
  0x15   : > { %1027 = vmatpush3.xpose.msk.msra.mxu0 %vm223_vm1, %v217_v5  ;;  %1028 = vmatprep.mubr.msk.f32.mxu0 %vm1091_vm0, %v1090_v0 }
  0x16   : > { %1032 = vmatpush3.xpose.msk.msra.mxu1 %vm223_vm1, %v218_v6  ;;  %1033 = vmatprep.mubr.msk.f32.mxu1 %vm1091_vm0, %v1090_v0 }
  0x17   : > { %1036 = vmatprep.subr.mxu0 %v1090_v0  ;;  %1041 = vmatprep.subr.mxu1 %v1090_v0 }
  0x18   : > { %1029 = vmatmul.mubr.msk.f32.vlgmr.msra.gmra.mrb[2].mxu0 %vm223_vm1, %v213_v7 }
  0x19   : > { %1034 = vmatmul.mubr.msk.f32.vlgmr.msra.gmra.mrb[2].mxu1 %vm223_vm1, %v214_v8  ;;  %1038 = vmatprep.mubr.msk.f32.mxu0 %vm1091_vm0, %v1090_v0 }
  0x1a   : > { %1043 = vmatprep.mubr.msk.f32.mxu1 %vm1091_vm0, %v1090_v0  ;;  %1037 = vmatpush3.msk.msra.mxu0 %vm580_vm3, %v219_v45 }
  0x1b   : > { %1046 = vmatprep.subr.mxu0 %v1090_v0  ;;  %1042 = vmatpush3.msk.msra.mxu1 %vm580_vm3, %v220_v46 }
  0x1c   : > { %1051 = vmatprep.subr.mxu1 %v1090_v0 }
  0xe7   : > { %v296_v9 = vpop.f32.mrb[0].mxu0  ;;  %v372_v10 = vpop.f32.mrb[0].mxu1 }
  0xe8   : > { %v528_v11 = vmul.f32 0.5, %v296_v9  ;;  %v1020_v12 = vpop.f32.mrb[1].mxu0  ;;  %v529_v13 = vmul.f32 0.5, %v372_v10  ;;  %v1025_v14 = vpop.f32.mrb[1].mxu1 }
  0xea   : > { %v533_v15 = vsel %vm532_vm2, %v528_v11, -inf  ;;  %v536_v20 = vsel %vm532_vm2, %v529_v13, -inf }
  0xeb   : > { %534 = vmax.xlane.f32.xlu0 %v533_v15  ;;  %v448_v16 = vpop.f32.mrb[2].mxu0 }
  0xec   : > { %v530_v17 = vmul.f32 0.5, %v448_v16  ;;  %v1030_v18 = vpop.f32.mrb[3].mxu0  ;;  %v524_v19 = vpop.f32.mrb[2].mxu1 }
  0xed   : > { %v531_v21 = vmul.f32 0.5, %v524_v19  ;;  %v1035_v22 = vpop.f32.mrb[3].mxu1 }
  0xee   : > { %v539_v23 = vsel %vm532_vm2, %v530_v17, -inf }
  0xef   : > { %537 = vmax.xlane.f32.xlu0 %v536_v20  ;;  %540 = vmax.xlane.f32.xlu1 %v539_v23  ;;  %v542_v24 = vsel %vm532_vm2, %v531_v21, -inf }
  0xf3   : > { %543 = vmax.xlane.f32.xlu1 %v542_v24 }
 0x178   : > { %v535_v25 = vpop.xlane.xlu0 %534 }
 0x179   : > { %v545_v26 = vsub.f32 %v528_v11, %v535_v25 }
 0x17b   : > { %v549_v27 = vmul.f32 1.442695, %v545_v26 }
 0x17c   : > { %v538_v28 = vpop.xlane.xlu0 %537  ;;  %v541_v29 = vpop.xlane.xlu1 %540 }
 0x17d   : > { %1066 = vpow2.f32 %v549_v27  ;;  %v546_v30 = vsub.f32 %v529_v13, %v538_v28  ;;  %v547_v31 = vsub.f32 %v530_v17, %v541_v29 }
 0x17f   : > { %v551_v32 = vmul.f32 1.442695, %v546_v30  ;;  %v553_v33 = vmul.f32 1.442695, %v547_v31 }
 0x180   : > { %v544_v34 = vpop.xlane.xlu1 %543 }
 0x181   : > { %1068 = vpow2.f32 %v551_v32  ;;  %v548_v35 = vsub.f32 %v531_v21, %v544_v34 }
 0x182   : > { %1070 = vpow2.f32 %v553_v33 }
 0x183   : > { %v555_v36 = vmul.f32 1.442695, %v548_v35 }
 0x185   : > { %1072 = vpow2.f32 %v555_v36 }
 0x187   : > { %v1067_v37 = vpop.eup %1066 }
 0x188   : > { %v557_v38 = vsel %vm532_vm2, %v1067_v37, 0.0 }
 0x189   : > { %558 = vadd.xlane.f32.xlu0 %v557_v38 }
 0x18b   : > { %v1069_v39 = vpop.eup %1068 }
 0x18c   : > { %v1071_v40 = vpop.eup %1070  ;;  %v560_v41 = vsel %vm532_vm2, %v1069_v39, 0.0 }
 0x18d   : > { %561 = vadd.xlane.f32.xlu1 %v560_v41  ;;  %v563_v42 = vsel %vm532_vm2, %v1071_v40, 0.0 }
 0x18e   : > { %564 = vadd.xlane.f32.xlu0 %v563_v42 }
 0x18f   : > { %v1073_v43 = vpop.eup %1072 }
 0x190   : > { %v566_v44 = vsel %vm532_vm2, %v1073_v43, 0.0 }
 0x191   : > { %567 = vadd.xlane.f32.xlu1 %v566_v44 }
 0x216   : > { %v559_v47 = vpop.xlane.xlu0 %558 }
 0x217   : > { %1074 = vrcp.f32 %v559_v47 }
 0x21a   : > { %v562_v48 = vpop.xlane.xlu1 %561 }
 0x21b   : > { %v565_v49 = vpop.xlane.xlu0 %564  ;;  %1076 = vrcp.f32 %v562_v48 }
 0x21c   : > { %1078 = vrcp.f32 %v565_v49 }
 0x21e   : > { %v568_v50 = vpop.xlane.xlu1 %567 }
 0x21f   : > { %1080 = vrcp.f32 %v568_v50 }
 0x221   : > { %v1075_v51 = vpop.eup %1074 }
 0x222   : > { %v573_v52 = vmul.f32 %v1075_v51, %v1067_v37 }
 0x224   : > { %1039 = vmatmul.mubr.msk.f32.vlgmr.msra.gmra.mrb[4].mxu0 %vm532_vm2, %v573_v52 }
 0x225   : > { %v1077_v54 = vpop.eup %1076  ;;  %1047 = vmatpush3.msk.msra.mxu0 %vm580_vm3, %v221_v53  ;;  %1048 = vmatprep.mubr.msk.f32.mxu0 %vm1091_vm0, %v1090_v0 }
 0x226   : > { %v1079_v55 = vpop.eup %1078  ;;  %v574_v56 = vmul.f32 %v1077_v54, %v1069_v39 }
 0x227   : > { %v575_v58 = vmul.f32 %v1079_v55, %v1071_v40 }
 0x228   : > { %1044 = vmatmul.mubr.msk.f32.vlgmr.msra.gmra.mrb[4].mxu1 %vm532_vm2, %v574_v56 }
 0x229   : > { %v1081_v59 = vpop.eup %1080  ;;  %1049 = vmatmul.mubr.msk.f32.vlgmr.msra.gmra.mrb[6].mxu0 %vm532_vm2, %v575_v58  ;;  %1052 = vmatpush3.msk.msra.mxu1 %vm580_vm3, %v222_v57 }
 0x22a   : > { %v576_v60 = vmul.f32 %v1081_v59, %v1073_v43  ;;  %1053 = vmatprep.mubr.msk.f32.mxu1 %vm1091_vm0, %v1090_v0 }
 0x22c   : > { %1054 = vmatmul.mubr.msk.f32.vlgmr.msra.gmra.mrb[6].mxu1 %vm532_vm2, %v576_v60 }
 0x2f7   : > { %v650_v61 = vpop.f32.mrb[4].mxu0 }
 0x2f8   : > { %882 = vst.msk [vmem:[%s210_s26] sm:$0xff] %vm223_vm1, %v650_v61  ;;  %v1040_v62 = vpop.f32.mrb[5].mxu0 }
 0x2fb   : > { %v726_v63 = vpop.f32.mrb[4].mxu1 }
 0x2fc   : > { %883 = vst.msk [vmem:[%s210_s26 + $0x8] sm:$0xff] %vm223_vm1, %v726_v63  ;;  %v802_v1 = vpop.f32.mrb[6].mxu0  ;;  %v1045_v2 = vpop.f32.mrb[5].mxu1 }
 0x2fd   : > { %884 = vst.msk [vmem:[%s210_s26 + $0x10] sm:$0xff] %vm223_vm1, %v802_v1  ;;  %v1050_v3 = vpop.f32.mrb[7].mxu0 }
 0x2ff   : > { %v878_v4 = vpop.f32.mrb[6].mxu1 }
 0x300   : > { %885 = vst.msk [vmem:[%s210_s26 + $0x18] sm:$0xff] %vm223_vm1, %v878_v4  ;;  %v1055_v0 = vpop.f32.mrb[7].mxu1 }
 0x301 PF: > { %s13_s12 = sadd.s32 1, %s1088_s12  }
 0x302   : > { %p10_p4 = scmp.ge.s32.totalorder %s13_s12, 4  }
 0x304   :  { %12 = sbr.rel (!%p10_p4) target bundleno = 1 (0x1), region = 68 }

</bundles_post_ra>
